<compile_context>
chip_gen: v7x
topology: tpu7x:2x2x1
jax: 0.10.0
libtpu: 0.0.40
codegen_flags: <defaults>
</compile_context>

<pallas_src>
import functools

import jax
import jax.numpy as jnp
from jax.experimental import pallas as pl
from jax.experimental.pallas import tpu as pltpu


_MXU_DTYPE = jnp.bfloat16  # matmul operand dtype (MXU-native on v5e/v6e/v7x)


def _detect_num_tensorcores():
    try:
        dev = jax.devices()[0]
        if dev.platform == "tpu":
            kind = (dev.device_kind or "").lower()
            if any(tag in kind for tag in ("v7", "7x")):
                return 2
    except Exception:
        pass
    return 1


_NUM_TC = _detect_num_tensorcores()


def _apply_act(y, activation):
    if activation == "relu":
        return jnp.maximum(y, 0.0)
    if activation == "sigmoid":
        return jax.nn.sigmoid(y)
    if activation == "tanh":
        return jnp.tanh(y)
    return y


def _compiler_params(vmem_estimate_bytes, semantics):
    limit = int(min(64 << 20, max(16 << 20, vmem_estimate_bytes * 5 // 4 + (4 << 20))))
    return pltpu.CompilerParams(dimension_semantics=semantics,
                                vmem_limit_bytes=limit)


def _pick_block_m(M, row_bytes, resident_bytes, *, start=512, budget=24 << 20):
    """Largest M-tile whose double-buffered blocks (+ resident weights) fit."""
    bm = min(start, M)
    while bm > 8 and resident_bytes + 2 * bm * row_bytes > budget:
        bm //= 2
    if _NUM_TC >= 2 and bm >= M and M >= 16:
        bm = (M + 1) // 2  # >= 2 tiles so both v7x TensorCores get work
    if bm < M:
        bm = max(8, (bm // 8) * 8)
    return max(1, min(bm, M))


# --------------------------- dense (bulk matmul) kernel ---------------------------

def _make_dense_kernel(n_terms, has_residual, activation):
    def kernel(*refs):
        acc = None
        for i in range(n_terms):
            part = jnp.dot(refs[2 * i][...].astype(_MXU_DTYPE),
                           refs[2 * i + 1][...].astype(_MXU_DTYPE),
                           preferred_element_type=jnp.float32)
            acc = part if acc is None else acc + part
        idx = 2 * n_terms
        acc = acc + refs[idx][...].astype(jnp.float32)      # bias (1, N)
        idx += 1
        if has_residual:
            acc = acc + refs[idx][...].astype(jnp.float32)  # residual (bm, N)
            idx += 1
        o_ref = refs[idx]
        o_ref[...] = _apply_act(acc, activation).astype(o_ref.dtype)
    return kernel


def dense(terms, bias, *, activation=None, residual=None,
          out_dtype=jnp.float32, alias_residual=False, block_m=None):
    """act(sum_i x_i @ w_i + bias [+ residual]) as one tiled Pallas matmul.

    terms: list of (x_i (M, K_i), w_i (K_i, N)); bias: (N,); residual: (M, N).
    Only M is tiled ("parallel"); the small weights stay VMEM-resident.
    """
    M = terms[0][0].shape[0]
    N = terms[0][1].shape[1]
    n_terms = len(terms)
    has_res = residual is not None

    out_isz = jnp.dtype(out_dtype).itemsize
    row_bytes = sum(x.shape[1] * x.dtype.itemsize for x, _ in terms) + N * out_isz
    if has_res:
        row_bytes += N * residual.dtype.itemsize
    resident = 2 * (sum(w.size * w.dtype.itemsize for _, w in terms) + N * 4)
    bm = block_m if block_m is not None else _pick_block_m(M, row_bytes, resident)
    bm = min(bm, M)
    grid = (pl.cdiv(M, bm),)

    in_specs, args = [], []
    for x, w in terms:
        kdim = x.shape[1]
        in_specs.append(pl.BlockSpec((bm, kdim), lambda m: (m, 0)))
        args.append(x)
        # Grid-invariant weight block (fetched once across M tiles).
        in_specs.append(pl.BlockSpec((kdim, N), lambda m: (0, 0)))
        args.append(w)
    in_specs.append(pl.BlockSpec((1, N), lambda m: (0, 0)))
    args.append(bias.reshape(1, N))
    io_aliases = {}
    if has_res:
        if alias_residual and residual.dtype == jnp.dtype(out_dtype):
            io_aliases = {len(args): 0}          # residual buffer reused as output
        in_specs.append(pl.BlockSpec((bm, N), lambda m: (m, 0)))
        args.append(residual)

    flops = 2 * M * N * sum(x.shape[1] for x, _ in terms)
    bytes_accessed = (sum(x.size * x.dtype.itemsize + w.size * w.dtype.itemsize
                          for x, w in terms)
                      + N * 4 + M * N * out_isz
                      + (M * N * residual.dtype.itemsize if has_res else 0))
    transcendentals = M * N if activation in ("sigmoid", "tanh") else 0

    return pl.pallas_call(
        _make_dense_kernel(n_terms, has_res, activation),
        out_shape=jax.ShapeDtypeStruct((M, N), out_dtype),
        grid_spec=pltpu.PrefetchScalarGridSpec(
            num_scalar_prefetch=0,
            grid=grid,
            in_specs=in_specs,
            out_specs=pl.BlockSpec((bm, N), lambda m: (m, 0)),
        ),
        compiler_params=_compiler_params(resident + 2 * bm * row_bytes,
                                         ("parallel",)),
        cost_estimate=pl.CostEstimate(
            flops=flops, transcendentals=transcendentals,
            bytes_accessed=bytes_accessed),
        input_output_aliases=io_aliases,
    )(*args)


# ------------------------------ LSTM recurrence kernel ------------------------------

def _batch_tile(B):
    # Split the batch across TensorCores only on multi-TC chips (v7x); on
    # single-TC chips (v5e/v6e) the split is pure serial-grid overhead.
    if _NUM_TC >= 2 and B % 16 == 0:
        return B // 2
    return B


def _pick_time_chunk(T, bb, gate_width, itemsize, budget=4 << 20):
    """Time-chunk length bounding the per-buffer pre-gate block to ~budget."""
    rows = max(1, budget // max(1, bb * gate_width * itemsize))
    tc = max(1, min(T, rows))
    while T % tc:
        tc -= 1
    return tc


def lstm_recurrence(pre_gates, h0, c0, w_hh_t, *, time_chunk=None):
    """Serial LSTM recurrence with the input projection already hoisted out.

    pre_gates: (T, B, 4H) = x_t @ W_ih^T + (b_ih + b_hh), PyTorch gate order
               (i, f, g, o) along the last axis.
    h0, c0:    (B, H);  w_hh_t: (H, 4H) = W_hh^T.
    Returns (h_all (T, B, H) bf16, h_T (B, H) f32, c_T (B, H) f32).
    """
    T, B, G = pre_gates.shape
    H = h0.shape[-1]
    bb = _batch_tile(B)
    if time_chunk is None:
        tc = _pick_time_chunk(T, bb, G, pre_gates.dtype.itemsize)
    else:
        tc = max(1, min(int(time_chunk), T))
        while T % tc:
            tc -= 1

    def kernel(pg_ref, h0_ref, c0_ref, whh_ref, hall_ref, hT_ref, cT_ref,
               h_sc, c_sc):
        @pl.when(pl.program_id(1) == 0)
        def _():
            h_sc[...] = h0_ref[...].astype(jnp.float32)
            c_sc[...] = c0_ref[...].astype(jnp.float32)

        whh = whh_ref[...].astype(_MXU_DTYPE)   # hoisted out of the time loop

        def step(t, carry):
            h, c = carry
            # Only h @ W_hh^T sits on the serial critical path.
            gates = pg_ref[t].astype(jnp.float32) + jnp.dot(
                h.astype(_MXU_DTYPE), whh, preferred_element_type=jnp.float32)
            gate_if = jax.nn.sigmoid(gates[:, :2 * H])   # i,f in one EUP slab
            i_g = gate_if[:, :H]
            f_g = gate_if[:, H:]
            g_g = jnp.tanh(gates[:, 2 * H:3 * H])
            o_g = jax.nn.sigmoid(gates[:, 3 * H:])
            c = f_g * c + i_g * g_g
            h = o_g * jnp.tanh(c)
            hall_ref[t] = h.astype(hall_ref.dtype)
            return h, c

        h, c = jax.lax.fori_loop(0, tc, step, (h_sc[...], c_sc[...]),
                                 unroll=True if tc <= 8 else 4)
        h_sc[...] = h
        c_sc[...] = c

        @pl.when(pl.program_id(1) == pl.num_programs(1) - 1)
        def _():
            hT_ref[...] = h.astype(hT_ref.dtype)
            cT_ref[...] = c.astype(cT_ref.dtype)

    pg_isz = pre_gates.dtype.itemsize
    vmem_est = (2 * tc * bb * G * pg_isz + 2 * tc * bb * H * 2
                + 2 * H * G * w_hh_t.dtype.itemsize + 8 * bb * H * 4)

    return pl.pallas_call(
        kernel,
        out_shape=(
            jax.ShapeDtypeStruct((T, B, H), jnp.bfloat16),
            jax.ShapeDtypeStruct((B, H), jnp.float32),
            jax.ShapeDtypeStruct((B, H), jnp.float32),
        ),
        grid_spec=pltpu.PrefetchScalarGridSpec(
            num_scalar_prefetch=0,
            grid=(B // bb, T // tc),
            in_specs=[
                pl.BlockSpec((tc, bb, G), lambda b, t: (t, b, 0)),  # pre-gates
                pl.BlockSpec((bb, H), lambda b, t: (b, 0)),         # h0
                pl.BlockSpec((bb, H), lambda b, t: (b, 0)),         # c0
                pl.BlockSpec((H, G), lambda b, t: (0, 0)),          # W_hh^T
            ],
            out_specs=[
                pl.BlockSpec((tc, bb, H), lambda b, t: (t, b, 0)),  # all h_t
                pl.BlockSpec((bb, H), lambda b, t: (b, 0)),         # h_T
                pl.BlockSpec((bb, H), lambda b, t: (b, 0)),         # c_T
            ],
            scratch_shapes=[pltpu.VMEM((bb, H), jnp.float32),
                            pltpu.VMEM((bb, H), jnp.float32)],
        ),
        compiler_params=_compiler_params(vmem_est, ("parallel", "arbitrary")),
    )(pre_gates, h0, c0, w_hh_t)


# --------------------------- action heads (fused kernels) ---------------------------

def _headx_kernel(x_ref, w_ref, b_ref, o_ref):
    acc = jnp.dot(x_ref[...].astype(_MXU_DTYPE), w_ref[0].astype(_MXU_DTYPE),
                  preferred_element_type=jnp.float32)
    o_ref[0] = (acc + b_ref[0].astype(jnp.float32)).astype(o_ref.dtype)


def head_x_projection(x, wx_stack, b_stack):
    """x-dependent half of every head's dec1 (plus its bias) in ONE call.

    x: (M, H);  wx_stack: (n_heads, H, 2H);  b_stack: (n_heads, 1, 2H).
    Returns (n_heads, M, 2H) f32.  x stays VMEM-resident across the heads.
    """
    M, H = x.shape
    n_heads, _, twoH = wx_stack.shape
    row_bytes = H * x.dtype.itemsize + twoH * 4
    resident = 2 * (H * twoH * wx_stack.dtype.itemsize + twoH * 4)
    bm = _pick_block_m(M, row_bytes, resident)
    grid = (pl.cdiv(M, bm), n_heads)

    return pl.pallas_call(
        _headx_kernel,
        out_shape=jax.ShapeDtypeStruct((n_heads, M, twoH), jnp.float32),
        grid_spec=pltpu.PrefetchScalarGridSpec(
            num_scalar_prefetch=0,
            grid=grid,
            in_specs=[
                pl.BlockSpec((bm, H), lambda m, k: (m, 0)),
                pl.BlockSpec((1, H, twoH), lambda m, k: (k, 0, 0)),
                pl.BlockSpec((1, 1, twoH), lambda m, k: (k, 0, 0)),
            ],
            out_specs=pl.BlockSpec((1, bm, twoH), lambda m, k: (k, m, 0)),
        ),
        compiler_params=_compiler_params(resident + 2 * bm * row_bytes,
                                         ("parallel", "arbitrary")),
        cost_estimate=pl.CostEstimate(
            flops=2 * M * H * twoH * n_heads,
            transcendentals=0,
            bytes_accessed=M * H * x.dtype.itemsize
            + n_heads * (H * twoH * wx_stack.dtype.itemsize + M * twoH * 4)),
    )(x, wx_stack, b_stack)


def _fused_head_kernel(*refs, act, has_prev):
    if has_prev:
        (xdec_ref, prev_ref, wp_ref, w2_ref, b2_ref, wm_ref, bmap_ref,
         out_ref, emb_ref) = refs
        h1 = xdec_ref[0].astype(jnp.float32) + jnp.dot(
            prev_ref[...].astype(_MXU_DTYPE), wp_ref[...].astype(_MXU_DTYPE),
            preferred_element_type=jnp.float32)
    else:
        (xdec_ref, w2_ref, b2_ref, wm_ref, bmap_ref, out_ref, emb_ref) = refs
        h1 = xdec_ref[0].astype(jnp.float32)
    h1 = jnp.maximum(h1, 0.0)
    emb = jnp.dot(h1.astype(_MXU_DTYPE), w2_ref[...].astype(_MXU_DTYPE),
                  preferred_element_type=jnp.float32) + b2_ref[...].astype(jnp.float32)
    emb = jnp.maximum(emb, 0.0)
    out = jnp.dot(emb.astype(_MXU_DTYPE), wm_ref[...].astype(_MXU_DTYPE),
                  preferred_element_type=jnp.float32) + bmap_ref[...].astype(jnp.float32)
    out_ref[...] = _apply_act(out, act).astype(out_ref.dtype)
    emb_ref[...] = emb.astype(emb_ref.dtype)


def fused_action_head(xdec_all, head_idx, prev_embed, hp):
    """dec1(+prev) + ReLU + dec2 + ReLU + mapping of one head, fully fused.

    xdec_all: (n_heads, M, 2H) from head_x_projection (dec1 bias included).
    prev_embed: (M, H) bf16 or None.  Returns (out (M, Npad) f32, emb (M, H) bf16).
    """
    _, M, twoH = xdec_all.shape
    H = twoH // 2
    npad = hp["map_w_t"].shape[1]
    has_prev = prev_embed is not None

    row_bytes = twoH * 4 + npad * 4 + H * 2
    resident = 2 * ((twoH * H + H * npad) * 2 + (H + npad) * 4)
    if has_prev:
        row_bytes += H * prev_embed.dtype.itemsize
        resident += 2 * H * twoH * 2
    bm = _pick_block_m(M, row_bytes, resident)
    grid = (pl.cdiv(M, bm),)

    in_specs = [pl.BlockSpec((1, bm, twoH), lambda m, k=head_idx: (k, m, 0))]
    args = [xdec_all]
    if has_prev:
        in_specs += [pl.BlockSpec((bm, H), lambda m: (m, 0)),
                     pl.BlockSpec((H, twoH), lambda m: (0, 0))]
        args += [prev_embed, hp["dec1_wp"]]
    in_specs += [pl.BlockSpec((twoH, H), lambda m: (0, 0)),
                 pl.BlockSpec((1, H), lambda m: (0, 0)),
                 pl.BlockSpec((H, npad), lambda m: (0, 0)),
                 pl.BlockSpec((1, npad), lambda m: (0, 0))]
    args += [hp["dec2_w_t"], hp["dec2_b"].reshape(1, H),
             hp["map_w_t"], hp["map_b"].reshape(1, npad)]

    kernel = functools.partial(_fused_head_kernel, act=hp["map_act"],
                               has_prev=has_prev)
    flops = 2 * M * ((H * twoH if has_prev else 0) + twoH * H + H * npad)
    trans = M * npad if hp["map_act"] in ("sigmoid", "tanh") else 0
    bytes_acc = (M * twoH * 4 + (M * H * 2 if has_prev else 0)
                 + resident // 2 + M * npad * 4 + M * H * 2)

    return pl.pallas_call(
        kernel,
        out_shape=(jax.ShapeDtypeStruct((M, npad), jnp.float32),
                   jax.ShapeDtypeStruct((M, H), jnp.bfloat16)),
        grid_spec=pltpu.PrefetchScalarGridSpec(
            num_scalar_prefetch=0,
            grid=grid,
            in_specs=in_specs,
            out_specs=[pl.BlockSpec((bm, npad), lambda m: (m, 0)),
                       pl.BlockSpec((bm, H), lambda m: (m, 0))],
        ),
        compiler_params=_compiler_params(resident + 2 * bm * row_bytes,
                                         ("parallel",)),
        cost_estimate=pl.CostEstimate(flops=flops, transcendentals=trans,
                                      bytes_accessed=bytes_acc),
    )(*args)


# ------------------------------ full module forward ------------------------------

def deep_res_lstm_actor_forward(params, inputs, prev_state, *, time_chunk=None):
    """inputs: (T, B, input_size); prev_state: list of (h (1,B,H), c (1,B,H))."""
    T, B, _ = inputs.shape
    H = params["hidden_size"]

    # Fused input-embed + encoder (folded into one Linear at init time).
    x = dense([(inputs.reshape(T * B, -1), params["enc_w_t"])], params["enc_b"])

    new_states = []
    for layer, (h0, c0) in zip(params["layers"], prev_state):
        # Hoisted input projection: one (T*B, H) x (H, 4H) matmul, bf16 out.
        pg = dense([(x, layer["w_ih_t"])], layer["b_gates"],
                   out_dtype=jnp.bfloat16)
        h_all, hT, cT = lstm_recurrence(pg.reshape(T, B, 4 * H), h0[0], c0[0],
                                        layer["w_hh_t"], time_chunk=time_chunk)
        # Hoisted residual Linear + ReLU; residual buffer aliased onto output.
        x = dense([(h_all.reshape(T * B, H), layer["w_lin_t"])], layer["b_lin"],
                  activation="relu", residual=x, alias_residual=True)
        new_states.append((hT[None], cT[None]))

    # Autoregressive action heads: one wide kernel for every head's x-side
    # dec1, then one fused kernel per head (dec1+prev -> dec2 -> mapping).
    xdec = head_x_projection(x, params["dec1_wx_stack"], params["dec1_b_stack"])
    heads = list(params["button_heads"]) + [params["main_stick_head"],
                                            params["c_stick_head"],
                                            params["trigger_head"]]
    outs, prev = [], None
    for k, hp in enumerate(heads):
        out, prev = fused_action_head(xdec, k, prev, hp)
        outs.append(out[:, :hp["out_size"]].reshape(T, B, hp["out_size"]))

    buttons = outs[:5]
    return buttons, outs[5], outs[6], outs[7], new_states


# ------------------------------- pure-JAX reference -------------------------------

def _ref_forward(params, inputs, prev_state):
    T, B, _ = inputs.shape
    H = params["hidden_size"]
    bf16 = jnp.bfloat16

    def mm(a, w):  # bf16 operands, f32 accumulation (mirrors the kernels)
        return jnp.dot(a.astype(bf16), w.astype(bf16),
                       preferred_element_type=jnp.float32)

    x = mm(inputs.reshape(T * B, -1), params["enc_w_t"]) + params["enc_b"]

    new_states = []
    for layer, (h0, c0) in zip(params["layers"], prev_state):
        pg = (mm(x, layer["w_ih_t"]) + layer["b_gates"]).astype(bf16)
        pg = pg.reshape(T, B, 4 * H)
        h = h0[0].astype(jnp.float32)
        c = c0[0].astype(jnp.float32)
        hs = []
        for t in range(T):
            gates = pg[t].astype(jnp.float32) + mm(h, layer["w_hh_t"])
            i_g = jax.nn.sigmoid(gates[:, :H])
            f_g = jax.nn.sigmoid(gates[:, H:2 * H])
            g_g = jnp.tanh(gates[:, 2 * H:3 * H])
            o_g = jax.nn.sigmoid(gates[:, 3 * H:])
            c = f_g * c + i_g * g_g
            h = o_g * jnp.tanh(c)
            hs.append(h)
        h_all = jnp.stack(hs, 0).reshape(T * B, H)
        x = jnp.maximum(x + mm(h_all, layer["w_lin_t"]) + layer["b_lin"], 0.0)
        new_states.append((h[None], c[None]))

    def head_fn(hp, x2d, prev):
        d1 = mm(x2d, hp["dec1_wx"]) + hp["dec1_b"]
        if prev is not None:
            d1 = d1 + mm(prev, hp["dec1_wp"])
        h1 = jnp.maximum(d1, 0.0)
        emb = jnp.maximum(mm(h1, hp["dec2_w_t"]) + hp["dec2_b"], 0.0)
        out = _apply_act(mm(emb, hp["map_w_t"]) + hp["map_b"], hp["map_act"])
        return out[:, :hp["out_size"]].reshape(T, B, hp["out_size"]), emb

    emb = None
    buttons = []
    for hp in params["button_heads"]:
        o, emb = head_fn(hp, x, emb)
        buttons.append(o)
    main, emb = head_fn(params["main_stick_head"], x, emb)
    cst, emb = head_fn(params["c_stick_head"], x, emb)
    trig, emb = head_fn(params["trigger_head"], x, emb)
    return buttons, main, cst, trig, new_states


# -------------------------------------- init --------------------------------------

def _init_params(key, input_size, hidden_size, num_layers):
    H = hidden_size
    E = 32  # DeepResLSTMActor._input_embed_size
    wdt = jnp.bfloat16

    keys = iter(jax.random.split(key, 256))

    def uni(shape, fan_in):
        bound = 1.0 / float(fan_in) ** 0.5
        return jax.random.uniform(next(keys), shape, jnp.float32, -bound, bound)

    # Input embed (in->32) and encoder (32->H) have no nonlinearity between
    # them, so fold them into a single Linear at init time.
    embed_w, embed_b = uni((input_size, E), input_size), uni((E,), input_size)
    enc_w, enc_b = uni((E, H), E), uni((H,), E)

    params = {
        "hidden_size": H,
        "enc_w_t": (embed_w @ enc_w).astype(wdt),
        "enc_b": embed_b @ enc_w + enc_b,
        "layers": [],
    }
    for _ in range(num_layers):
        params["layers"].append({
            "w_ih_t": uni((H, 4 * H), H).astype(wdt),
            "w_hh_t": uni((H, 4 * H), H).astype(wdt),
            "b_gates": uni((4 * H,), H) + uni((4 * H,), H),   # b_ih + b_hh
            "w_lin_t": uni((H, H), H),
            "b_lin": uni((H,), H),
        })
        params["layers"][-1]["w_lin_t"] = params["layers"][-1]["w_lin_t"].astype(wdt)

    def head(out_size, act):
        dec1_w = uni((2 * H, 2 * H), 2 * H)      # rows [:H]: x part, [H:]: prev part
        map_w = uni((H, out_size), H)
        map_b = uni((out_size,), H)
        npad = 128 * ((out_size + 127) // 128)   # full-lane stores; slice outside
        return {
            "out_size": out_size,
            "map_act": act,
            "dec1_wx": dec1_w[:H].astype(wdt),
            "dec1_wp": dec1_w[H:].astype(wdt),
            "dec1_b": uni((2 * H,), 2 * H),
            "dec2_w_t": uni((2 * H, H), 2 * H).astype(wdt),
            "dec2_b": uni((H,), 2 * H),
            "map_w_t": jnp.pad(map_w, ((0, 0), (0, npad - out_size))).astype(wdt),
            "map_b": jnp.pad(map_b, (0, npad - out_size)),
        }

    params["button_heads"] = [head(1, "sigmoid") for _ in range(5)]
    params["main_stick_head"] = head(17, None)
    params["c_stick_head"] = head(17, None)
    params["trigger_head"] = head(5, None)

    ordered = params["button_heads"] + [params["main_stick_head"],
                                        params["c_stick_head"],
                                        params["trigger_head"]]
    params["dec1_wx_stack"] = jnp.stack([h["dec1_wx"] for h in ordered])            # (8,H,2H)
    params["dec1_b_stack"] = jnp.stack([h["dec1_b"] for h in ordered])[:, None, :]  # (8,1,2H)
    return params


# -------------------------------------- main --------------------------------------

if __name__ == "__main__":
    input_size, hidden_size, num_layers = 16, 32, 2
    seq_len, batch = 8, 4

    key = jax.random.PRNGKey(0)
    pkey, xkey = jax.random.split(key)
    params = _init_params(pkey, input_size, hidden_size, num_layers)

    inputs = jax.random.normal(xkey, (seq_len, batch, input_size), jnp.float32)
    prev_state = [
        (jnp.zeros((1, batch, hidden_size), jnp.float32),
         jnp.zeros((1, batch, hidden_size), jnp.float32))
        for _ in range(num_layers)
    ]

    # time_chunk=4 -> two T-chunks, exercising the VMEM-carried h/c path.
    fwd = jax.jit(functools.partial(deep_res_lstm_actor_forward, params,
                                    time_chunk=4))
    buttons, main_out, c_out, trig_out, new_states = fwd(inputs, prev_state)
    jax.block_until_ready((buttons, main_out, c_out, trig_out, new_states))

    rb, rm, rc, rt, rstates = _ref_forward(params, inputs, prev_state)

    def check(a, b, name):
        err = float(jnp.max(jnp.abs(a - b)))
        assert jnp.allclose(a, b, atol=2e-3, rtol=2e-3), f"{name}: max|err|={err}"

    for i, (b_out, r_out) in enumerate(zip(buttons, rb)):
        check(b_out, r_out, f"button_{i}")
    check(main_out, rm, "main_stick")
    check(c_out, rc, "c_stick")
    check(trig_out, rt, "trigger")
    for i, ((h, c), (rh, rc_)) in enumerate(zip(new_states, rstates)):
        check(h, rh, f"h_{i}")
        check(c, rc_, f"c_{i}")

    print("KERNEL_OK")
</pallas_src>

<mosaic_0001>
module attributes {stable_mosaic.version = 11 : i64} {
  func.func @kernel(%arg0: i32, %arg1: memref<32x32xf32, #tpu.memory_space<vmem>>, %arg2: memref<32x128xbf16, #tpu.memory_space<vmem>>, %arg3: memref<1x128xf32, #tpu.memory_space<vmem>>, %arg4: memref<32x128xbf16, #tpu.memory_space<vmem>>) attributes {dimension_semantics = [#tpu.dimension_semantics<parallel>], iteration_bounds = array<i64: 1>, scalar_prefetch = 0 : i64, scratch_operands = 0 : i64, tpu.core_type = #tpu.core_type<tc>, window_params = [{transform_indices = @transform_0, window_bounds = array<i64: 32, 32>}, {pipeline_mode = #tpu.pipeline_mode<synchronous>, transform_indices = @transform_1, window_bounds = array<i64: 32, 128>}, {pipeline_mode = #tpu.pipeline_mode<synchronous>, transform_indices = @transform_2, window_bounds = array<i64: 1, 128>}, {transform_indices = @transform_3, window_bounds = array<i64: 32, 128>}]} {
    %c0 = arith.constant 0 : index
    %c0_0 = arith.constant 0 : index
    %0 = vector.load %arg1[%c0, %c0_0] : memref<32x32xf32, #tpu.memory_space<vmem>>, vector<32x32xf32>
    %1 = arith.truncf %0 : vector<32x32xf32> to vector<32x32xbf16>
    %c0_1 = arith.constant 0 : index
    %c0_2 = arith.constant 0 : index
    %2 = vector.load %arg2[%c0_1, %c0_2] : memref<32x128xbf16, #tpu.memory_space<vmem>>, vector<32x128xbf16>
    %cst = arith.constant dense<0.000000e+00> : vector<32x128xf32>
    %3 = tpu.matmul %1, %2, %cst {dimension_numbers = #tpu.dot_dimension_numbers<[1], [0], [0], [1], [0, 0, 1, 1], [], []>} : vector<32x32xbf16>, vector<32x128xbf16>, vector<32x128xf32> -> vector<32x128xf32>
    %c0_3 = arith.constant 0 : index
    %c0_4 = arith.constant 0 : index
    %4 = vector.load %arg3[%c0_3, %c0_4] : memref<1x128xf32, #tpu.memory_space<vmem>>, vector<1x128xf32>
    %5 = vector.broadcast %4 : vector<1x128xf32> to vector<32x128xf32>
    %6 = arith.addf %3, %5 : vector<32x128xf32>
    %7 = arith.truncf %6 : vector<32x128xf32> to vector<32x128xbf16>
    %c0_5 = arith.constant 0 : index
    %c0_6 = arith.constant 0 : index
    %8 = vector.load %arg4[%c0_5, %c0_6] : memref<32x128xbf16, #tpu.memory_space<vmem>>, vector<32x128xbf16>
    tpu.vector_store %arg4[%c0_5, %c0_6], %7 {strides = array<i32>} : memref<32x128xbf16, #tpu.memory_space<vmem>>, vector<32x128xbf16>,
    return
  }
  func.func @transform_0(%arg0: i32) -> (i32, i32) {
    %c0_i32 = arith.constant 0 : i32
    %c0_i32_0 = arith.constant 0 : i32
    return %arg0, %c0_i32 : i32, i32
  }
  func.func @transform_1(%arg0: i32) -> (i32, i32) {
    %c0_i32 = arith.constant 0 : i32
    %c0_i32_0 = arith.constant 0 : i32
    %c0_i32_1 = arith.constant 0 : i32
    return %c0_i32, %c0_i32_0 : i32, i32
  }
  func.func @transform_2(%arg0: i32) -> (i32, i32) {
    %c0_i32 = arith.constant 0 : i32
    %c0_i32_0 = arith.constant 0 : i32
    %c0_i32_1 = arith.constant 0 : i32
    return %c0_i32, %c0_i32_0 : i32, i32
  }
  func.func @transform_3(%arg0: i32) -> (i32, i32) {
    %c0_i32 = arith.constant 0 : i32
    %c0_i32_0 = arith.constant 0 : i32
    return %arg0, %c0_i32 : i32, i32
  }
}

module attributes {stable_mosaic.version = 11 : i64} {
  func.func @kernel(%arg0: i32, %arg1: memref<32x32xbf16, #tpu.memory_space<vmem>>, %arg2: memref<32x32xbf16, #tpu.memory_space<vmem>>, %arg3: memref<1x32xf32, #tpu.memory_space<vmem>>, %arg4: memref<32x32xf32, #tpu.memory_space<vmem>>, %arg5: memref<32x32xf32, #tpu.memory_space<vmem>>) attributes {dimension_semantics = [#tpu.dimension_semantics<parallel>], iteration_bounds = array<i64: 1>, scalar_prefetch = 0 : i64, scratch_operands = 0 : i64, tpu.core_type = #tpu.core_type<tc>, window_params = [{transform_indices = @transform_0, window_bounds = array<i64: 32, 32>}, {pipeline_mode = #tpu.pipeline_mode<synchronous>, transform_indices = @transform_1, window_bounds = array<i64: 32, 32>}, {pipeline_mode = #tpu.pipeline_mode<synchronous>, transform_indices = @transform_2, window_bounds = array<i64: 1, 32>}, {transform_indices = @transform_3, window_bounds = array<i64: 32, 32>}, {transform_indices = @transform_4, window_bounds = array<i64: 32, 32>}]} {
    %c0 = arith.constant 0 : index
    %c0_0 = arith.constant 0 : index
    %0 = vector.load %arg1[%c0, %c0_0] : memref<32x32xbf16, #tpu.memory_space<vmem>>, vector<32x32xbf16>
    %c0_1 = arith.constant 0 : index
    %c0_2 = arith.constant 0 : index
    %1 = vector.load %arg2[%c0_1, %c0_2] : memref<32x32xbf16, #tpu.memory_space<vmem>>, vector<32x32xbf16>
    %cst = arith.constant dense<0.000000e+00> : vector<32x32xf32>
    %2 = tpu.matmul %0, %1, %cst {dimension_numbers = #tpu.dot_dimension_numbers<[1], [0], [0], [1], [0, 0, 1, 1], [], []>} : vector<32x32xbf16>, vector<32x32xbf16>, vector<32x32xf32> -> vector<32x32xf32>
    %c0_3 = arith.constant 0 : index
    %c0_4 = arith.constant 0 : index
    %3 = vector.load %arg3[%c0_3, %c0_4] : memref<1x32xf32, #tpu.memory_space<vmem>>, vector<1x32xf32>
    %4 = vector.broadcast %3 : vector<1x32xf32> to vector<32x32xf32>
    %5 = arith.addf %2, %4 : vector<32x32xf32>
    %c0_5 = arith.constant 0 : index
    %c0_6 = arith.constant 0 : index
    %6 = vector.load %arg4[%c0_5, %c0_6] : memref<32x32xf32, #tpu.memory_space<vmem>>, vector<32x32xf32>
    %7 = arith.addf %5, %6 : vector<32x32xf32>
    %cst_7 = arith.constant 0.000000e+00 : f32
    %8 = vector.broadcast %cst_7 : f32 to vector<32x32xf32>
    %9 = arith.maximumf %7, %8 : vector<32x32xf32>
    %c0_8 = arith.constant 0 : index
    %c0_9 = arith.constant 0 : index
    %10 = vector.load %arg5[%c0_8, %c0_9] : memref<32x32xf32, #tpu.memory_space<vmem>>, vector<32x32xf32>
    tpu.vector_store %arg5[%c0_8, %c0_9], %9 {strides = array<i32>} : memref<32x32xf32, #tpu.memory_space<vmem>>, vector<32x32xf32>,
    return
  }
  func.func @transform_0(%arg0: i32) -> (i32, i32) {
    %c0_i32 = arith.constant 0 : i32
    %c0_i32_0 = arith.constant 0 : i32
    return %arg0, %c0_i32 : i32, i32
  }
  func.func @transform_1(%arg0: i32) -> (i32, i32) {
    %c0_i32 = arith.constant 0 : i32
    %c0_i32_0 = arith.constant 0 : i32
    %c0_i32_1 = arith.constant 0 : i32
    return %c0_i32, %c0_i32_0 : i32, i32
  }
  func.func @transform_2(%arg0: i32) -> (i32, i32) {
    %c0_i32 = arith.constant 0 : i32
    %c0_i32_0 = arith.constant 0 : i32
    %c0_i32_1 = arith.constant 0 : i32
    return %c0_i32, %c0_i32_0 : i32, i32
  }
  func.func @transform_3(%arg0: i32) -> (i32, i32) {
    %c0_i32 = arith.constant 0 : i32
    %c0_i32_0 = arith.constant 0 : i32
    return %arg0, %c0_i32 : i32, i32
  }
  func.func @transform_4(%arg0: i32) -> (i32, i32) {
    %c0_i32 = arith.constant 0 : i32
    %c0_i32_0 = arith.constant 0 : i32
    return %arg0, %c0_i32 : i32, i32
  }
}

module attributes {stable_mosaic.version = 11 : i64} {
  func.func @kernel(%arg0: i32, %arg1: memref<32x16xf32, #tpu.memory_space<vmem>>, %arg2: memref<16x32xbf16, #tpu.memory_space<vmem>>, %arg3: memref<1x32xf32, #tpu.memory_space<vmem>>, %arg4: memref<32x32xf32, #tpu.memory_space<vmem>>) attributes {dimension_semantics = [#tpu.dimension_semantics<parallel>], iteration_bounds = array<i64: 1>, scalar_prefetch = 0 : i64, scratch_operands = 0 : i64, tpu.core_type = #tpu.core_type<tc>, window_params = [{transform_indices = @transform_0, window_bounds = array<i64: 32, 16>}, {pipeline_mode = #tpu.pipeline_mode<synchronous>, transform_indices = @transform_1, window_bounds = array<i64: 16, 32>}, {pipeline_mode = #tpu.pipeline_mode<synchronous>, transform_indices = @transform_2, window_bounds = array<i64: 1, 32>}, {transform_indices = @transform_3, window_bounds = array<i64: 32, 32>}]} {
    %c0 = arith.constant 0 : index
    %c0_0 = arith.constant 0 : index
    %0 = vector.load %arg1[%c0, %c0_0] : memref<32x16xf32, #tpu.memory_space<vmem>>, vector<32x16xf32>
    %1 = arith.truncf %0 : vector<32x16xf32> to vector<32x16xbf16>
    %c0_1 = arith.constant 0 : index
    %c0_2 = arith.constant 0 : index
    %2 = vector.load %arg2[%c0_1, %c0_2] : memref<16x32xbf16, #tpu.memory_space<vmem>>, vector<16x32xbf16>
    %cst = arith.constant dense<0.000000e+00> : vector<32x32xf32>
    %3 = tpu.matmul %1, %2, %cst {dimension_numbers = #tpu.dot_dimension_numbers<[1], [0], [0], [1], [0, 0, 1, 1], [], []>} : vector<32x16xbf16>, vector<16x32xbf16>, vector<32x32xf32> -> vector<32x32xf32>
    %c0_3 = arith.constant 0 : index
    %c0_4 = arith.constant 0 : index
    %4 = vector.load %arg3[%c0_3, %c0_4] : memref<1x32xf32, #tpu.memory_space<vmem>>, vector<1x32xf32>
    %5 = vector.broadcast %4 : vector<1x32xf32> to vector<32x32xf32>
    %6 = arith.addf %3, %5 : vector<32x32xf32>
    %c0_5 = arith.constant 0 : index
    %c0_6 = arith.constant 0 : index
    %7 = vector.load %arg4[%c0_5, %c0_6] : memref<32x32xf32, #tpu.memory_space<vmem>>, vector<32x32xf32>
    tpu.vector_store %arg4[%c0_5, %c0_6], %6 {strides = array<i32>} : memref<32x32xf32, #tpu.memory_space<vmem>>, vector<32x32xf32>,
    return
  }
  func.func @transform_0(%arg0: i32) -> (i32, i32) {
    %c0_i32 = arith.constant 0 : i32
    %c0_i32_0 = arith.constant 0 : i32
    return %arg0, %c0_i32 : i32, i32
  }
  func.func @transform_1(%arg0: i32) -> (i32, i32) {
    %c0_i32 = arith.constant 0 : i32
    %c0_i32_0 = arith.constant 0 : i32
    %c0_i32_1 = arith.constant 0 : i32
    return %c0_i32, %c0_i32_0 : i32, i32
  }
  func.func @transform_2(%arg0: i32) -> (i32, i32) {
    %c0_i32 = arith.constant 0 : i32
    %c0_i32_0 = arith.constant 0 : i32
    %c0_i32_1 = arith.constant 0 : i32
    return %c0_i32, %c0_i32_0 : i32, i32
  }
  func.func @transform_3(%arg0: i32) -> (i32, i32) {
    %c0_i32 = arith.constant 0 : i32
    %c0_i32_0 = arith.constant 0 : i32
    return %arg0, %c0_i32 : i32, i32
  }
}

module attributes {stable_mosaic.version = 11 : i64} {
  func.func @kernel(%arg0: i32, %arg1: i32, %arg2: memref<4x4x128xbf16, #tpu.memory_space<vmem>>, %arg3: memref<4x32xf32, #tpu.memory_space<vmem>>, %arg4: memref<4x32xf32, #tpu.memory_space<vmem>>, %arg5: memref<32x128xbf16, #tpu.memory_space<vmem>>, %arg6: memref<4x4x32xbf16, #tpu.memory_space<vmem>>, %arg7: memref<4x32xf32, #tpu.memory_space<vmem>>, %arg8: memref<4x32xf32, #tpu.memory_space<vmem>>, %arg9: memref<4x32xf32, #tpu.memory_space<vmem>>, %arg10: memref<4x32xf32, #tpu.memory_space<vmem>>) attributes {dimension_semantics = [#tpu.dimension_semantics<parallel>, #tpu.dimension_semantics<arbitrary>], iteration_bounds = array<i64: 1, 2>, scalar_prefetch = 0 : i64, scratch_operands = 2 : i64, tpu.core_type = #tpu.core_type<tc>, window_params = [{transform_indices = @transform_0, window_bounds = array<i64: 4, 4, 128>}, {transform_indices = @transform_1, window_bounds = array<i64: 4, 32>}, {transform_indices = @transform_2, window_bounds = array<i64: 4, 32>}, {pipeline_mode = #tpu.pipeline_mode<synchronous>, transform_indices = @transform_3, window_bounds = array<i64: 32, 128>}, {transform_indices = @transform_4, window_bounds = array<i64: 4, 4, 32>}, {transform_indices = @transform_5, window_bounds = array<i64: 4, 32>}, {transform_indices = @transform_6, window_bounds = array<i64: 4, 32>}]} {
    %c0_i32 = arith.constant 0 : i32
    %0 = arith.cmpi eq, %arg1, %c0_i32 : i32
    %1 = arith.extui %0 : i1 to i32
    %c0_i32_0 = arith.constant 0 : i32
    %2 = arith.cmpi ne, %1, %c0_i32_0 : i32
    scf.if %2 {
      %c0_40 = arith.constant 0 : index
      %c0_41 = arith.constant 0 : index
      %143 = vector.load %arg3[%c0_40, %c0_41] : memref<4x32xf32, #tpu.memory_space<vmem>>, vector<4x32xf32>
      %c0_42 = arith.constant 0 : index
      %c0_43 = arith.constant 0 : index
      %144 = vector.load %arg9[%c0_42, %c0_43] : memref<4x32xf32, #tpu.memory_space<vmem>>, vector<4x32xf32>
      tpu.vector_store %arg9[%c0_42, %c0_43], %143 {strides = array<i32>} : memref<4x32xf32, #tpu.memory_space<vmem>>, vector<4x32xf32>,
      %c0_44 = arith.constant 0 : index
      %c0_45 = arith.constant 0 : index
      %145 = vector.load %arg4[%c0_44, %c0_45] : memref<4x32xf32, #tpu.memory_space<vmem>>, vector<4x32xf32>
      %c0_46 = arith.constant 0 : index
      %c0_47 = arith.constant 0 : index
      %146 = vector.load %arg10[%c0_46, %c0_47] : memref<4x32xf32, #tpu.memory_space<vmem>>, vector<4x32xf32>
      tpu.vector_store %arg10[%c0_46, %c0_47], %145 {strides = array<i32>} : memref<4x32xf32, #tpu.memory_space<vmem>>, vector<4x32xf32>,
    } else {
    }
    %c0 = arith.constant 0 : index
    %c0_1 = arith.constant 0 : index
    %3 = vector.load %arg5[%c0, %c0_1] : memref<32x128xbf16, #tpu.memory_space<vmem>>, vector<32x128xbf16>
    %c0_2 = arith.constant 0 : index
    %c0_3 = arith.constant 0 : index
    %4 = vector.load %arg9[%c0_2, %c0_3] : memref<4x32xf32, #tpu.memory_space<vmem>>, vector<4x32xf32>
    %c0_4 = arith.constant 0 : index
    %c0_5 = arith.constant 0 : index
    %5 = vector.load %arg10[%c0_4, %c0_5] : memref<4x32xf32, #tpu.memory_space<vmem>>, vector<4x32xf32>
    %c0_i32_6 = arith.constant 0 : i32
    %6 = arith.index_cast %c0_i32_6 : i32 to index
    %c0_7 = arith.constant 0 : index
    %c0_8 = arith.constant 0 : index
    %7 = vector.load %arg2[%6, %c0_7, %c0_8] : memref<4x4x128xbf16, #tpu.memory_space<vmem>>, vector<1x4x128xbf16>
    %8 = vector.shape_cast %7 : vector<1x4x128xbf16> to vector<4x128xbf16>
    %9 = arith.extf %8 : vector<4x128xbf16> to vector<4x128xf32>
    %10 = arith.truncf %4 : vector<4x32xf32> to vector<4x32xbf16>
    %cst = arith.constant dense<0.000000e+00> : vector<4x128xf32>
    %11 = tpu.matmul %10, %3, %cst {dimension_numbers = #tpu.dot_dimension_numbers<[1], [0], [0], [1], [0, 0, 1, 1], [], []>} : vector<4x32xbf16>, vector<32x128xbf16>, vector<4x128xf32> -> vector<4x128xf32>
    %12 = arith.addf %9, %11 : vector<4x128xf32>
    %13 = vector.extract_strided_slice %12 {offsets = [0, 0], sizes = [4, 64], strides = [1, 1]} : vector<4x128xf32> to vector<4x64xf32>
    %14 = arith.negf %13 : vector<4x64xf32>
    %15 = math.exp %14 : vector<4x64xf32>
    %cst_9 = arith.constant 1.000000e+00 : f32
    %16 = vector.broadcast %cst_9 : f32 to vector<4x64xf32>
    %17 = arith.addf %16, %15 : vector<4x64xf32>
    %18 = arith.divf %16, %17 : vector<4x64xf32>
    %19 = vector.extract_strided_slice %18 {offsets = [0, 0], sizes = [4, 32], strides = [1, 1]} : vector<4x64xf32> to vector<4x32xf32>
    %20 = vector.extract_strided_slice %18 {offsets = [0, 32], sizes = [4, 32], strides = [1, 1]} : vector<4x64xf32> to vector<4x32xf32>
    %21 = vector.extract_strided_slice %12 {offsets = [0, 64], sizes = [4, 32], strides = [1, 1]} : vector<4x128xf32> to vector<4x32xf32>
    %22 = math.tanh %21 : vector<4x32xf32>
    %23 = vector.extract_strided_slice %12 {offsets = [0, 96], sizes = [4, 32], strides = [1, 1]} : vector<4x128xf32> to vector<4x32xf32>
    %24 = arith.negf %23 : vector<4x32xf32>
    %25 = math.exp %24 : vector<4x32xf32>
    %cst_10 = arith.constant 1.000000e+00 : f32
    %26 = vector.broadcast %cst_10 : f32 to vector<4x32xf32>
    %27 = arith.addf %26, %25 : vector<4x32xf32>
    %28 = arith.divf %26, %27 : vector<4x32xf32>
    %29 = arith.mulf %20, %5 : vector<4x32xf32>
    %30 = arith.mulf %19, %22 : vector<4x32xf32>
    %31 = arith.addf %29, %30 : vector<4x32xf32>
    %32 = math.tanh %31 : vector<4x32xf32>
    %33 = arith.mulf %28, %32 : vector<4x32xf32>
    %34 = arith.truncf %33 : vector<4x32xf32> to vector<4x32xbf16>
    %35 = arith.index_cast %c0_i32_6 : i32 to index
    %c0_11 = arith.constant 0 : index
    %c0_12 = arith.constant 0 : index
    %36 = vector.load %arg6[%35, %c0_11, %c0_12] : memref<4x4x32xbf16, #tpu.memory_space<vmem>>, vector<1x4x32xbf16>
    %37 = vector.shape_cast %36 : vector<1x4x32xbf16> to vector<4x32xbf16>
    %38 = vector.shape_cast %34 : vector<4x32xbf16> to vector<1x4x32xbf16>
    tpu.vector_store %arg6[%35, %c0_11, %c0_12], %38 {strides = array<i32>} : memref<4x4x32xbf16, #tpu.memory_space<vmem>>, vector<1x4x32xbf16>,
    %c1_i32 = arith.constant 1 : i32
    %39 = arith.index_cast %c1_i32 : i32 to index
    %c0_13 = arith.constant 0 : index
    %c0_14 = arith.constant 0 : index
    %40 = vector.load %arg2[%39, %c0_13, %c0_14] : memref<4x4x128xbf16, #tpu.memory_space<vmem>>, vector<1x4x128xbf16>
    %41 = vector.shape_cast %40 : vector<1x4x128xbf16> to vector<4x128xbf16>
    %42 = arith.extf %41 : vector<4x128xbf16> to vector<4x128xf32>
    %43 = arith.truncf %33 : vector<4x32xf32> to vector<4x32xbf16>
    %cst_15 = arith.constant dense<0.000000e+00> : vector<4x128xf32>
    %44 = tpu.matmul %43, %3, %cst_15 {dimension_numbers = #tpu.dot_dimension_numbers<[1], [0], [0], [1], [0, 0, 1, 1], [], []>} : vector<4x32xbf16>, vector<32x128xbf16>, vector<4x128xf32> -> vector<4x128xf32>
    %45 = arith.addf %42, %44 : vector<4x128xf32>
    %46 = vector.extract_strided_slice %45 {offsets = [0, 0], sizes = [4, 64], strides = [1, 1]} : vector<4x128xf32> to vector<4x64xf32>
    %47 = arith.negf %46 : vector<4x64xf32>
    %48 = math.exp %47 : vector<4x64xf32>
    %cst_16 = arith.constant 1.000000e+00 : f32
    %49 = vector.broadcast %cst_16 : f32 to vector<4x64xf32>
    %50 = arith.addf %49, %48 : vector<4x64xf32>
    %51 = arith.divf %49, %50 : vector<4x64xf32>
    %52 = vector.extract_strided_slice %51 {offsets = [0, 0], sizes = [4, 32], strides = [1, 1]} : vector<4x64xf32> to vector<4x32xf32>
    %53 = vector.extract_strided_slice %51 {offsets = [0, 32], sizes = [4, 32], strides = [1, 1]} : vector<4x64xf32> to vector<4x32xf32>
    %54 = vector.extract_strided_slice %45 {offsets = [0, 64], sizes = [4, 32], strides = [1, 1]} : vector<4x128xf32> to vector<4x32xf32>
    %55 = math.tanh %54 : vector<4x32xf32>
    %56 = vector.extract_strided_slice %45 {offsets = [0, 96], sizes = [4, 32], strides = [1, 1]} : vector<4x128xf32> to vector<4x32xf32>
    %57 = arith.negf %56 : vector<4x32xf32>
    %58 = math.exp %57 : vector<4x32xf32>
    %cst_17 = arith.constant 1.000000e+00 : f32
    %59 = vector.broadcast %cst_17 : f32 to vector<4x32xf32>
    %60 = arith.addf %59, %58 : vector<4x32xf32>
    %61 = arith.divf %59, %60 : vector<4x32xf32>
    %62 = arith.mulf %53, %31 : vector<4x32xf32>
    %63 = arith.mulf %52, %55 : vector<4x32xf32>
    %64 = arith.addf %62, %63 : vector<4x32xf32>
    %65 = math.tanh %64 : vector<4x32xf32>
    %66 = arith.mulf %61, %65 : vector<4x32xf32>
    %67 = arith.truncf %66 : vector<4x32xf32> to vector<4x32xbf16>
    %68 = arith.index_cast %c1_i32 : i32 to index
    %c0_18 = arith.constant 0 : index
    %c0_19 = arith.constant 0 : index
    %69 = vector.load %arg6[%68, %c0_18, %c0_19] : memref<4x4x32xbf16, #tpu.memory_space<vmem>>, vector<1x4x32xbf16>
    %70 = vector.shape_cast %69 : vector<1x4x32xbf16> to vector<4x32xbf16>
    %71 = vector.shape_cast %67 : vector<4x32xbf16> to vector<1x4x32xbf16>
    tpu.vector_store %arg6[%68, %c0_18, %c0_19], %71 {strides = array<i32>} : memref<4x4x32xbf16, #tpu.memory_space<vmem>>, vector<1x4x32xbf16>,
    %c2_i32 = arith.constant 2 : i32
    %72 = arith.index_cast %c2_i32 : i32 to index
    %c0_20 = arith.constant 0 : index
    %c0_21 = arith.constant 0 : index
    %73 = vector.load %arg2[%72, %c0_20, %c0_21] : memref<4x4x128xbf16, #tpu.memory_space<vmem>>, vector<1x4x128xbf16>
    %74 = vector.shape_cast %73 : vector<1x4x128xbf16> to vector<4x128xbf16>
    %75 = arith.extf %74 : vector<4x128xbf16> to vector<4x128xf32>
    %76 = arith.truncf %66 : vector<4x32xf32> to vector<4x32xbf16>
    %cst_22 = arith.constant dense<0.000000e+00> : vector<4x128xf32>
    %77 = tpu.matmul %76, %3, %cst_22 {dimension_numbers = #tpu.dot_dimension_numbers<[1], [0], [0], [1], [0, 0, 1, 1], [], []>} : vector<4x32xbf16>, vector<32x128xbf16>, vector<4x128xf32> -> vector<4x128xf32>
    %78 = arith.addf %75, %77 : vector<4x128xf32>
    %79 = vector.extract_strided_slice %78 {offsets = [0, 0], sizes = [4, 64], strides = [1, 1]} : vector<4x128xf32> to vector<4x64xf32>
    %80 = arith.negf %79 : vector<4x64xf32>
    %81 = math.exp %80 : vector<4x64xf32>
    %cst_23 = arith.constant 1.000000e+00 : f32
    %82 = vector.broadcast %cst_23 : f32 to vector<4x64xf32>
    %83 = arith.addf %82, %81 : vector<4x64xf32>
    %84 = arith.divf %82, %83 : vector<4x64xf32>
    %85 = vector.extract_strided_slice %84 {offsets = [0, 0], sizes = [4, 32], strides = [1, 1]} : vector<4x64xf32> to vector<4x32xf32>
    %86 = vector.extract_strided_slice %84 {offsets = [0, 32], sizes = [4, 32], strides = [1, 1]} : vector<4x64xf32> to vector<4x32xf32>
    %87 = vector.extract_strided_slice %78 {offsets = [0, 64], sizes = [4, 32], strides = [1, 1]} : vector<4x128xf32> to vector<4x32xf32>
    %88 = math.tanh %87 : vector<4x32xf32>
    %89 = vector.extract_strided_slice %78 {offsets = [0, 96], sizes = [4, 32], strides = [1, 1]} : vector<4x128xf32> to vector<4x32xf32>
    %90 = arith.negf %89 : vector<4x32xf32>
    %91 = math.exp %90 : vector<4x32xf32>
    %cst_24 = arith.constant 1.000000e+00 : f32
    %92 = vector.broadcast %cst_24 : f32 to vector<4x32xf32>
    %93 = arith.addf %92, %91 : vector<4x32xf32>
    %94 = arith.divf %92, %93 : vector<4x32xf32>
    %95 = arith.mulf %86, %64 : vector<4x32xf32>
    %96 = arith.mulf %85, %88 : vector<4x32xf32>
    %97 = arith.addf %95, %96 : vector<4x32xf32>
    %98 = math.tanh %97 : vector<4x32xf32>
    %99 = arith.mulf %94, %98 : vector<4x32xf32>
    %100 = arith.truncf %99 : vector<4x32xf32> to vector<4x32xbf16>
    %101 = arith.index_cast %c2_i32 : i32 to index
    %c0_25 = arith.constant 0 : index
    %c0_26 = arith.constant 0 : index
    %102 = vector.load %arg6[%101, %c0_25, %c0_26] : memref<4x4x32xbf16, #tpu.memory_space<vmem>>, vector<1x4x32xbf16>
    %103 = vector.shape_cast %102 : vector<1x4x32xbf16> to vector<4x32xbf16>
    %104 = vector.shape_cast %100 : vector<4x32xbf16> to vector<1x4x32xbf16>
    tpu.vector_store %arg6[%101, %c0_25, %c0_26], %104 {strides = array<i32>} : memref<4x4x32xbf16, #tpu.memory_space<vmem>>, vector<1x4x32xbf16>,
    %c3_i32 = arith.constant 3 : i32
    %105 = arith.index_cast %c3_i32 : i32 to index
    %c0_27 = arith.constant 0 : index
    %c0_28 = arith.constant 0 : index
    %106 = vector.load %arg2[%105, %c0_27, %c0_28] : memref<4x4x128xbf16, #tpu.memory_space<vmem>>, vector<1x4x128xbf16>
    %107 = vector.shape_cast %106 : vector<1x4x128xbf16> to vector<4x128xbf16>
    %108 = arith.extf %107 : vector<4x128xbf16> to vector<4x128xf32>
    %109 = arith.truncf %99 : vector<4x32xf32> to vector<4x32xbf16>
    %cst_29 = arith.constant dense<0.000000e+00> : vector<4x128xf32>
    %110 = tpu.matmul %109, %3, %cst_29 {dimension_numbers = #tpu.dot_dimension_numbers<[1], [0], [0], [1], [0, 0, 1, 1], [], []>} : vector<4x32xbf16>, vector<32x128xbf16>, vector<4x128xf32> -> vector<4x128xf32>
    %111 = arith.addf %108, %110 : vector<4x128xf32>
    %112 = vector.extract_strided_slice %111 {offsets = [0, 0], sizes = [4, 64], strides = [1, 1]} : vector<4x128xf32> to vector<4x64xf32>
    %113 = arith.negf %112 : vector<4x64xf32>
    %114 = math.exp %113 : vector<4x64xf32>
    %cst_30 = arith.constant 1.000000e+00 : f32
    %115 = vector.broadcast %cst_30 : f32 to vector<4x64xf32>
    %116 = arith.addf %115, %114 : vector<4x64xf32>
    %117 = arith.divf %115, %116 : vector<4x64xf32>
    %118 = vector.extract_strided_slice %117 {offsets = [0, 0], sizes = [4, 32], strides = [1, 1]} : vector<4x64xf32> to vector<4x32xf32>
    %119 = vector.extract_strided_slice %117 {offsets = [0, 32], sizes = [4, 32], strides = [1, 1]} : vector<4x64xf32> to vector<4x32xf32>
    %120 = vector.extract_strided_slice %111 {offsets = [0, 64], sizes = [4, 32], strides = [1, 1]} : vector<4x128xf32> to vector<4x32xf32>
    %121 = math.tanh %120 : vector<4x32xf32>
    %122 = vector.extract_strided_slice %111 {offsets = [0, 96], sizes = [4, 32], strides = [1, 1]} : vector<4x128xf32> to vector<4x32xf32>
    %123 = arith.negf %122 : vector<4x32xf32>
    %124 = math.exp %123 : vector<4x32xf32>
    %cst_31 = arith.constant 1.000000e+00 : f32
    %125 = vector.broadcast %cst_31 : f32 to vector<4x32xf32>
    %126 = arith.addf %125, %124 : vector<4x32xf32>
    %127 = arith.divf %125, %126 : vector<4x32xf32>
    %128 = arith.mulf %119, %97 : vector<4x32xf32>
    %129 = arith.mulf %118, %121 : vector<4x32xf32>
    %130 = arith.addf %128, %129 : vector<4x32xf32>
    %131 = math.tanh %130 : vector<4x32xf32>
    %132 = arith.mulf %127, %131 : vector<4x32xf32>
    %133 = arith.truncf %132 : vector<4x32xf32> to vector<4x32xbf16>
    %134 = arith.index_cast %c3_i32 : i32 to index
    %c0_32 = arith.constant 0 : index
    %c0_33 = arith.constant 0 : index
    %135 = vector.load %arg6[%134, %c0_32, %c0_33] : memref<4x4x32xbf16, #tpu.memory_space<vmem>>, vector<1x4x32xbf16>
    %136 = vector.shape_cast %135 : vector<1x4x32xbf16> to vector<4x32xbf16>
    %137 = vector.shape_cast %133 : vector<4x32xbf16> to vector<1x4x32xbf16>
    tpu.vector_store %arg6[%134, %c0_32, %c0_33], %137 {strides = array<i32>} : memref<4x4x32xbf16, #tpu.memory_space<vmem>>, vector<1x4x32xbf16>,
    %c4_i32 = arith.constant 4 : i32
    %c0_34 = arith.constant 0 : index
    %c0_35 = arith.constant 0 : index
    %138 = vector.load %arg9[%c0_34, %c0_35] : memref<4x32xf32, #tpu.memory_space<vmem>>, vector<4x32xf32>
    tpu.vector_store %arg9[%c0_34, %c0_35], %132 {strides = array<i32>} : memref<4x32xf32, #tpu.memory_space<vmem>>, vector<4x32xf32>,
    %c0_36 = arith.constant 0 : index
    %c0_37 = arith.constant 0 : index
    %139 = vector.load %arg10[%c0_36, %c0_37] : memref<4x32xf32, #tpu.memory_space<vmem>>, vector<4x32xf32>
    tpu.vector_store %arg10[%c0_36, %c0_37], %130 {strides = array<i32>} : memref<4x32xf32, #tpu.memory_space<vmem>>, vector<4x32xf32>,
    %c1_i32_38 = arith.constant 1 : i32
    %140 = arith.cmpi eq, %arg1, %c1_i32_38 : i32
    %141 = arith.extui %140 : i1 to i32
    %c0_i32_39 = arith.constant 0 : i32
    %142 = arith.cmpi ne, %141, %c0_i32_39 : i32
    scf.if %142 {
      %c0_40 = arith.constant 0 : index
      %c0_41 = arith.constant 0 : index
      %143 = vector.load %arg7[%c0_40, %c0_41] : memref<4x32xf32, #tpu.memory_space<vmem>>, vector<4x32xf32>
      tpu.vector_store %arg7[%c0_40, %c0_41], %132 {strides = array<i32>} : memref<4x32xf32, #tpu.memory_space<vmem>>, vector<4x32xf32>,
      %c0_42 = arith.constant 0 : index
      %c0_43 = arith.constant 0 : index
      %144 = vector.load %arg8[%c0_42, %c0_43] : memref<4x32xf32, #tpu.memory_space<vmem>>, vector<4x32xf32>
      tpu.vector_store %arg8[%c0_42, %c0_43], %130 {strides = array<i32>} : memref<4x32xf32, #tpu.memory_space<vmem>>, vector<4x32xf32>,
    } else {
    }
    return
  }
  func.func @transform_0(%arg0: i32, %arg1: i32) -> (i32, i32, i32) {
    %c0_i32 = arith.constant 0 : i32
    %c0_i32_0 = arith.constant 0 : i32
    return %arg1, %arg0, %c0_i32 : i32, i32, i32
  }
  func.func @transform_1(%arg0: i32, %arg1: i32) -> (i32, i32) {
    %c0_i32 = arith.constant 0 : i32
    %c0_i32_0 = arith.constant 0 : i32
    return %arg0, %c0_i32 : i32, i32
  }
  func.func @transform_2(%arg0: i32, %arg1: i32) -> (i32, i32) {
    %c0_i32 = arith.constant 0 : i32
    %c0_i32_0 = arith.constant 0 : i32
    return %arg0, %c0_i32 : i32, i32
  }
  func.func @transform_3(%arg0: i32, %arg1: i32) -> (i32, i32) {
    %c0_i32 = arith.constant 0 : i32
    %c0_i32_0 = arith.constant 0 : i32
    %c0_i32_1 = arith.constant 0 : i32
    return %c0_i32, %c0_i32_0 : i32, i32
  }
  func.func @transform_4(%arg0: i32, %arg1: i32) -> (i32, i32, i32) {
    %c0_i32 = arith.constant 0 : i32
    %c0_i32_0 = arith.constant 0 : i32
    return %arg1, %arg0, %c0_i32 : i32, i32, i32
  }
  func.func @transform_5(%arg0: i32, %arg1: i32) -> (i32, i32) {
    %c0_i32 = arith.constant 0 : i32
    %c0_i32_0 = arith.constant 0 : i32
    return %arg0, %c0_i32 : i32, i32
  }
  func.func @transform_6(%arg0: i32, %arg1: i32) -> (i32, i32) {
    %c0_i32 = arith.constant 0 : i32
    %c0_i32_0 = arith.constant 0 : i32
    return %arg0, %c0_i32 : i32, i32
  }
}

module attributes {stable_mosaic.version = 11 : i64} {
  func.func @_headx_kernel(%arg0: i32, %arg1: i32, %arg2: memref<32x32xf32, #tpu.memory_space<vmem>>, %arg3: memref<1x32x64xbf16, #tpu.memory_space<vmem>>, %arg4: memref<1x1x64xf32, #tpu.memory_space<vmem>>, %arg5: memref<1x32x64xf32, #tpu.memory_space<vmem>>) attributes {dimension_semantics = [#tpu.dimension_semantics<parallel>, #tpu.dimension_semantics<arbitrary>], iteration_bounds = array<i64: 1, 8>, scalar_prefetch = 0 : i64, scratch_operands = 0 : i64, tpu.core_type = #tpu.core_type<tc>, window_params = [{transform_indices = @transform_0, window_bounds = array<i64: 32, 32>}, {transform_indices = @transform_1, window_bounds = array<i64: 1, 32, 64>}, {transform_indices = @transform_2, window_bounds = array<i64: 1, 1, 64>}, {transform_indices = @transform_3, window_bounds = array<i64: 1, 32, 64>}]} {
    %c0 = arith.constant 0 : index
    %c0_0 = arith.constant 0 : index
    %0 = vector.load %arg2[%c0, %c0_0] : memref<32x32xf32, #tpu.memory_space<vmem>>, vector<32x32xf32>
    %1 = arith.truncf %0 : vector<32x32xf32> to vector<32x32xbf16>
    %c0_1 = arith.constant 0 : index
    %c0_2 = arith.constant 0 : index
    %c0_3 = arith.constant 0 : index
    %2 = vector.load %arg3[%c0_1, %c0_2, %c0_3] : memref<1x32x64xbf16, #tpu.memory_space<vmem>>, vector<1x32x64xbf16>
    %3 = vector.shape_cast %2 : vector<1x32x64xbf16> to vector<32x64xbf16>
    %cst = arith.constant dense<0.000000e+00> : vector<32x64xf32>
    %4 = tpu.matmul %1, %3, %cst {dimension_numbers = #tpu.dot_dimension_numbers<[1], [0], [0], [1], [0, 0, 1, 1], [], []>} : vector<32x32xbf16>, vector<32x64xbf16>, vector<32x64xf32> -> vector<32x64xf32>
    %c0_4 = arith.constant 0 : index
    %c0_5 = arith.constant 0 : index
    %c0_6 = arith.constant 0 : index
    %5 = vector.load %arg4[%c0_4, %c0_5, %c0_6] : memref<1x1x64xf32, #tpu.memory_space<vmem>>, vector<1x1x64xf32>
    %6 = vector.shape_cast %5 : vector<1x1x64xf32> to vector<1x64xf32>
    %7 = vector.broadcast %6 : vector<1x64xf32> to vector<32x64xf32>
    %8 = arith.addf %4, %7 : vector<32x64xf32>
    %c0_7 = arith.constant 0 : index
    %c0_8 = arith.constant 0 : index
    %c0_9 = arith.constant 0 : index
    %9 = vector.load %arg5[%c0_7, %c0_8, %c0_9] : memref<1x32x64xf32, #tpu.memory_space<vmem>>, vector<1x32x64xf32>
    %10 = vector.shape_cast %9 : vector<1x32x64xf32> to vector<32x64xf32>
    %11 = vector.shape_cast %8 : vector<32x64xf32> to vector<1x32x64xf32>
    tpu.vector_store %arg5[%c0_7, %c0_8, %c0_9], %11 {strides = array<i32>} : memref<1x32x64xf32, #tpu.memory_space<vmem>>, vector<1x32x64xf32>,
    return
  }
  func.func @transform_0(%arg0: i32, %arg1: i32) -> (i32, i32) {
    %c0_i32 = arith.constant 0 : i32
    %c0_i32_0 = arith.constant 0 : i32
    return %arg0, %c0_i32 : i32, i32
  }
  func.func @transform_1(%arg0: i32, %arg1: i32) -> (i32, i32, i32) {
    %c0_i32 = arith.constant 0 : i32
    %c0_i32_0 = arith.constant 0 : i32
    %c0_i32_1 = arith.constant 0 : i32
    return %arg1, %c0_i32, %c0_i32_0 : i32, i32, i32
  }
  func.func @transform_2(%arg0: i32, %arg1: i32) -> (i32, i32, i32) {
    %c0_i32 = arith.constant 0 : i32
    %c0_i32_0 = arith.constant 0 : i32
    %c0_i32_1 = arith.constant 0 : i32
    return %arg1, %c0_i32, %c0_i32_0 : i32, i32, i32
  }
  func.func @transform_3(%arg0: i32, %arg1: i32) -> (i32, i32, i32) {
    %c0_i32 = arith.constant 0 : i32
    %c0_i32_0 = arith.constant 0 : i32
    return %arg1, %arg0, %c0_i32 : i32, i32, i32
  }
}

module attributes {stable_mosaic.version = 11 : i64} {
  func.func @_fused_head_kernel(%arg0: i32, %arg1: memref<1x32x64xf32, #tpu.memory_space<vmem>>, %arg2: memref<32x32xbf16, #tpu.memory_space<vmem>>, %arg3: memref<32x64xbf16, #tpu.memory_space<vmem>>, %arg4: memref<64x32xbf16, #tpu.memory_space<vmem>>, %arg5: memref<1x32xf32, #tpu.memory_space<vmem>>, %arg6: memref<32x128xbf16, #tpu.memory_space<vmem>>, %arg7: memref<1x128xf32, #tpu.memory_space<vmem>>, %arg8: memref<32x128xf32, #tpu.memory_space<vmem>>, %arg9: memref<32x32xbf16, #tpu.memory_space<vmem>>) attributes {dimension_semantics = [#tpu.dimension_semantics<parallel>], iteration_bounds = array<i64: 1>, scalar_prefetch = 0 : i64, scratch_operands = 0 : i64, tpu.core_type = #tpu.core_type<tc>, window_params = [{transform_indices = @transform_0, window_bounds = array<i64: 1, 32, 64>}, {transform_indices = @transform_1, window_bounds = array<i64: 32, 32>}, {pipeline_mode = #tpu.pipeline_mode<synchronous>, transform_indices = @transform_2, window_bounds = array<i64: 32, 64>}, {pipeline_mode = #tpu.pipeline_mode<synchronous>, transform_indices = @transform_3, window_bounds = array<i64: 64, 32>}, {pipeline_mode = #tpu.pipeline_mode<synchronous>, transform_indices = @transform_4, window_bounds = array<i64: 1, 32>}, {pipeline_mode = #tpu.pipeline_mode<synchronous>, transform_indices = @transform_5, window_bounds = array<i64: 32, 128>}, {pipeline_mode = #tpu.pipeline_mode<synchronous>, transform_indices = @transform_6, window_bounds = array<i64: 1, 128>}, {transform_indices = @transform_7, window_bounds = array<i64: 32, 128>}, {transform_indices = @transform_8, window_bounds = array<i64: 32, 32>}]} {
    %c0 = arith.constant 0 : index
    %c0_0 = arith.constant 0 : index
    %c0_1 = arith.constant 0 : index
    %0 = vector.load %arg1[%c0, %c0_0, %c0_1] : memref<1x32x64xf32, #tpu.memory_space<vmem>>, vector<1x32x64xf32>
    %1 = vector.shape_cast %0 : vector<1x32x64xf32> to vector<32x64xf32>
    %c0_2 = arith.constant 0 : index
    %c0_3 = arith.constant 0 : index
    %2 = vector.load %arg2[%c0_2, %c0_3] : memref<32x32xbf16, #tpu.memory_space<vmem>>, vector<32x32xbf16>
    %c0_4 = arith.constant 0 : index
    %c0_5 = arith.constant 0 : index
    %3 = vector.load %arg3[%c0_4, %c0_5] : memref<32x64xbf16, #tpu.memory_space<vmem>>, vector<32x64xbf16>
    %cst = arith.constant dense<0.000000e+00> : vector<32x64xf32>
    %4 = tpu.matmul %2, %3, %cst {dimension_numbers = #tpu.dot_dimension_numbers<[1], [0], [0], [1], [0, 0, 1, 1], [], []>} : vector<32x32xbf16>, vector<32x64xbf16>, vector<32x64xf32> -> vector<32x64xf32>
    %5 = arith.addf %1, %4 : vector<32x64xf32>
    %cst_6 = arith.constant 0.000000e+00 : f32
    %6 = vector.broadcast %cst_6 : f32 to vector<32x64xf32>
    %7 = arith.maximumf %5, %6 : vector<32x64xf32>
    %8 = arith.truncf %7 : vector<32x64xf32> to vector<32x64xbf16>
    %c0_7 = arith.constant 0 : index
    %c0_8 = arith.constant 0 : index
    %9 = vector.load %arg4[%c0_7, %c0_8] : memref<64x32xbf16, #tpu.memory_space<vmem>>, vector<64x32xbf16>
    %cst_9 = arith.constant dense<0.000000e+00> : vector<32x32xf32>
    %10 = tpu.matmul %8, %9, %cst_9 {dimension_numbers = #tpu.dot_dimension_numbers<[1], [0], [0], [1], [0, 0, 1, 1], [], []>} : vector<32x64xbf16>, vector<64x32xbf16>, vector<32x32xf32> -> vector<32x32xf32>
    %c0_10 = arith.constant 0 : index
    %c0_11 = arith.constant 0 : index
    %11 = vector.load %arg5[%c0_10, %c0_11] : memref<1x32xf32, #tpu.memory_space<vmem>>, vector<1x32xf32>
    %12 = vector.broadcast %11 : vector<1x32xf32> to vector<32x32xf32>
    %13 = arith.addf %10, %12 : vector<32x32xf32>
    %cst_12 = arith.constant 0.000000e+00 : f32
    %14 = vector.broadcast %cst_12 : f32 to vector<32x32xf32>
    %15 = arith.maximumf %13, %14 : vector<32x32xf32>
    %16 = arith.truncf %15 : vector<32x32xf32> to vector<32x32xbf16>
    %c0_13 = arith.constant 0 : index
    %c0_14 = arith.constant 0 : index
    %17 = vector.load %arg6[%c0_13, %c0_14] : memref<32x128xbf16, #tpu.memory_space<vmem>>, vector<32x128xbf16>
    %cst_15 = arith.constant dense<0.000000e+00> : vector<32x128xf32>
    %18 = tpu.matmul %16, %17, %cst_15 {dimension_numbers = #tpu.dot_dimension_numbers<[1], [0], [0], [1], [0, 0, 1, 1], [], []>} : vector<32x32xbf16>, vector<32x128xbf16>, vector<32x128xf32> -> vector<32x128xf32>
    %c0_16 = arith.constant 0 : index
    %c0_17 = arith.constant 0 : index
    %19 = vector.load %arg7[%c0_16, %c0_17] : memref<1x128xf32, #tpu.memory_space<vmem>>, vector<1x128xf32>
    %20 = vector.broadcast %19 : vector<1x128xf32> to vector<32x128xf32>
    %21 = arith.addf %18, %20 : vector<32x128xf32>
    %22 = arith.negf %21 : vector<32x128xf32>
    %23 = math.exp %22 : vector<32x128xf32>
    %cst_18 = arith.constant 1.000000e+00 : f32
    %24 = vector.broadcast %cst_18 : f32 to vector<32x128xf32>
    %25 = arith.addf %24, %23 : vector<32x128xf32>
    %26 = arith.divf %24, %25 : vector<32x128xf32>
    %c0_19 = arith.constant 0 : index
    %c0_20 = arith.constant 0 : index
    %27 = vector.load %arg8[%c0_19, %c0_20] : memref<32x128xf32, #tpu.memory_space<vmem>>, vector<32x128xf32>
    tpu.vector_store %arg8[%c0_19, %c0_20], %26 {strides = array<i32>} : memref<32x128xf32, #tpu.memory_space<vmem>>, vector<32x128xf32>,
    %28 = arith.truncf %15 : vector<32x32xf32> to vector<32x32xbf16>
    %c0_21 = arith.constant 0 : index
    %c0_22 = arith.constant 0 : index
    %29 = vector.load %arg9[%c0_21, %c0_22] : memref<32x32xbf16, #tpu.memory_space<vmem>>, vector<32x32xbf16>
    tpu.vector_store %arg9[%c0_21, %c0_22], %28 {strides = array<i32>} : memref<32x32xbf16, #tpu.memory_space<vmem>>, vector<32x32xbf16>,
    return
  }
  func.func @transform_0(%arg0: i32) -> (i32, i32, i32) {
    %c2_i32 = arith.constant 2 : i32
    %c0_i32 = arith.constant 0 : i32
    %c0_i32_0 = arith.constant 0 : i32
    return %c2_i32, %arg0, %c0_i32 : i32, i32, i32
  }
  func.func @transform_1(%arg0: i32) -> (i32, i32) {
    %c0_i32 = arith.constant 0 : i32
    %c0_i32_0 = arith.constant 0 : i32
    return %arg0, %c0_i32 : i32, i32
  }
  func.func @transform_2(%arg0: i32) -> (i32, i32) {
    %c0_i32 = arith.constant 0 : i32
    %c0_i32_0 = arith.constant 0 : i32
    %c0_i32_1 = arith.constant 0 : i32
    return %c0_i32, %c0_i32_0 : i32, i32
  }
  func.func @transform_3(%arg0: i32) -> (i32, i32) {
    %c0_i32 = arith.constant 0 : i32
    %c0_i32_0 = arith.constant 0 : i32
    %c0_i32_1 = arith.constant 0 : i32
    return %c0_i32, %c0_i32_0 : i32, i32
  }
  func.func @transform_4(%arg0: i32) -> (i32, i32) {
    %c0_i32 = arith.constant 0 : i32
    %c0_i32_0 = arith.constant 0 : i32
    %c0_i32_1 = arith.constant 0 : i32
    return %c0_i32, %c0_i32_0 : i32, i32
  }
  func.func @transform_5(%arg0: i32) -> (i32, i32) {
    %c0_i32 = arith.constant 0 : i32
    %c0_i32_0 = arith.constant 0 : i32
    %c0_i32_1 = arith.constant 0 : i32
    return %c0_i32, %c0_i32_0 : i32, i32
  }
  func.func @transform_6(%arg0: i32) -> (i32, i32) {
    %c0_i32 = arith.constant 0 : i32
    %c0_i32_0 = arith.constant 0 : i32
    %c0_i32_1 = arith.constant 0 : i32
    return %c0_i32, %c0_i32_0 : i32, i32
  }
  func.func @transform_7(%arg0: i32) -> (i32, i32) {
    %c0_i32 = arith.constant 0 : i32
    %c0_i32_0 = arith.constant 0 : i32
    return %arg0, %c0_i32 : i32, i32
  }
  func.func @transform_8(%arg0: i32) -> (i32, i32) {
    %c0_i32 = arith.constant 0 : i32
    %c0_i32_0 = arith.constant 0 : i32
    return %arg0, %c0_i32 : i32, i32
  }
}

module attributes {stable_mosaic.version = 11 : i64} {
  func.func @_fused_head_kernel(%arg0: i32, %arg1: memref<1x32x64xf32, #tpu.memory_space<vmem>>, %arg2: memref<64x32xbf16, #tpu.memory_space<vmem>>, %arg3: memref<1x32xf32, #tpu.memory_space<vmem>>, %arg4: memref<32x128xbf16, #tpu.memory_space<vmem>>, %arg5: memref<1x128xf32, #tpu.memory_space<vmem>>, %arg6: memref<32x128xf32, #tpu.memory_space<vmem>>, %arg7: memref<32x32xbf16, #tpu.memory_space<vmem>>) attributes {dimension_semantics = [#tpu.dimension_semantics<parallel>], iteration_bounds = array<i64: 1>, scalar_prefetch = 0 : i64, scratch_operands = 0 : i64, tpu.core_type = #tpu.core_type<tc>, window_params = [{transform_indices = @transform_0, window_bounds = array<i64: 1, 32, 64>}, {pipeline_mode = #tpu.pipeline_mode<synchronous>, transform_indices = @transform_1, window_bounds = array<i64: 64, 32>}, {pipeline_mode = #tpu.pipeline_mode<synchronous>, transform_indices = @transform_2, window_bounds = array<i64: 1, 32>}, {pipeline_mode = #tpu.pipeline_mode<synchronous>, transform_indices = @transform_3, window_bounds = array<i64: 32, 128>}, {pipeline_mode = #tpu.pipeline_mode<synchronous>, transform_indices = @transform_4, window_bounds = array<i64: 1, 128>}, {transform_indices = @transform_5, window_bounds = array<i64: 32, 128>}, {transform_indices = @transform_6, window_bounds = array<i64: 32, 32>}]} {
    %c0 = arith.constant 0 : index
    %c0_0 = arith.constant 0 : index
    %c0_1 = arith.constant 0 : index
    %0 = vector.load %arg1[%c0, %c0_0, %c0_1] : memref<1x32x64xf32, #tpu.memory_space<vmem>>, vector<1x32x64xf32>
    %1 = vector.shape_cast %0 : vector<1x32x64xf32> to vector<32x64xf32>
    %cst = arith.constant 0.000000e+00 : f32
    %2 = vector.broadcast %cst : f32 to vector<32x64xf32>
    %3 = arith.maximumf %1, %2 : vector<32x64xf32>
    %4 = arith.truncf %3 : vector<32x64xf32> to vector<32x64xbf16>
    %c0_2 = arith.constant 0 : index
    %c0_3 = arith.constant 0 : index
    %5 = vector.load %arg2[%c0_2, %c0_3] : memref<64x32xbf16, #tpu.memory_space<vmem>>, vector<64x32xbf16>
    %cst_4 = arith.constant dense<0.000000e+00> : vector<32x32xf32>
    %6 = tpu.matmul %4, %5, %cst_4 {dimension_numbers = #tpu.dot_dimension_numbers<[1], [0], [0], [1], [0, 0, 1, 1], [], []>} : vector<32x64xbf16>, vector<64x32xbf16>, vector<32x32xf32> -> vector<32x32xf32>
    %c0_5 = arith.constant 0 : index
    %c0_6 = arith.constant 0 : index
    %7 = vector.load %arg3[%c0_5, %c0_6] : memref<1x32xf32, #tpu.memory_space<vmem>>, vector<1x32xf32>
    %8 = vector.broadcast %7 : vector<1x32xf32> to vector<32x32xf32>
    %9 = arith.addf %6, %8 : vector<32x32xf32>
    %cst_7 = arith.constant 0.000000e+00 : f32
    %10 = vector.broadcast %cst_7 : f32 to vector<32x32xf32>
    %11 = arith.maximumf %9, %10 : vector<32x32xf32>
    %12 = arith.truncf %11 : vector<32x32xf32> to vector<32x32xbf16>
    %c0_8 = arith.constant 0 : index
    %c0_9 = arith.constant 0 : index
    %13 = vector.load %arg4[%c0_8, %c0_9] : memref<32x128xbf16, #tpu.memory_space<vmem>>, vector<32x128xbf16>
    %cst_10 = arith.constant dense<0.000000e+00> : vector<32x128xf32>
    %14 = tpu.matmul %12, %13, %cst_10 {dimension_numbers = #tpu.dot_dimension_numbers<[1], [0], [0], [1], [0, 0, 1, 1], [], []>} : vector<32x32xbf16>, vector<32x128xbf16>, vector<32x128xf32> -> vector<32x128xf32>
    %c0_11 = arith.constant 0 : index
    %c0_12 = arith.constant 0 : index
    %15 = vector.load %arg5[%c0_11, %c0_12] : memref<1x128xf32, #tpu.memory_space<vmem>>, vector<1x128xf32>
    %16 = vector.broadcast %15 : vector<1x128xf32> to vector<32x128xf32>
    %17 = arith.addf %14, %16 : vector<32x128xf32>
    %18 = arith.negf %17 : vector<32x128xf32>
    %19 = math.exp %18 : vector<32x128xf32>
    %cst_13 = arith.constant 1.000000e+00 : f32
    %20 = vector.broadcast %cst_13 : f32 to vector<32x128xf32>
    %21 = arith.addf %20, %19 : vector<32x128xf32>
    %22 = arith.divf %20, %21 : vector<32x128xf32>
    %c0_14 = arith.constant 0 : index
    %c0_15 = arith.constant 0 : index
    %23 = vector.load %arg6[%c0_14, %c0_15] : memref<32x128xf32, #tpu.memory_space<vmem>>, vector<32x128xf32>
    tpu.vector_store %arg6[%c0_14, %c0_15], %22 {strides = array<i32>} : memref<32x128xf32, #tpu.memory_space<vmem>>, vector<32x128xf32>,
    %24 = arith.truncf %11 : vector<32x32xf32> to vector<32x32xbf16>
    %c0_16 = arith.constant 0 : index
    %c0_17 = arith.constant 0 : index
    %25 = vector.load %arg7[%c0_16, %c0_17] : memref<32x32xbf16, #tpu.memory_space<vmem>>, vector<32x32xbf16>
    tpu.vector_store %arg7[%c0_16, %c0_17], %24 {strides = array<i32>} : memref<32x32xbf16, #tpu.memory_space<vmem>>, vector<32x32xbf16>,
    return
  }
  func.func @transform_0(%arg0: i32) -> (i32, i32, i32) {
    %c0_i32 = arith.constant 0 : i32
    %c0_i32_0 = arith.constant 0 : i32
    %c0_i32_1 = arith.constant 0 : i32
    return %c0_i32, %arg0, %c0_i32_0 : i32, i32, i32
  }
  func.func @transform_1(%arg0: i32) -> (i32, i32) {
    %c0_i32 = arith.constant 0 : i32
    %c0_i32_0 = arith.constant 0 : i32
    %c0_i32_1 = arith.constant 0 : i32
    return %c0_i32, %c0_i32_0 : i32, i32
  }
  func.func @transform_2(%arg0: i32) -> (i32, i32) {
    %c0_i32 = arith.constant 0 : i32
    %c0_i32_0 = arith.constant 0 : i32
    %c0_i32_1 = arith.constant 0 : i32
    return %c0_i32, %c0_i32_0 : i32, i32
  }
  func.func @transform_3(%arg0: i32) -> (i32, i32) {
    %c0_i32 = arith.constant 0 : i32
    %c0_i32_0 = arith.constant 0 : i32
    %c0_i32_1 = arith.constant 0 : i32
    return %c0_i32, %c0_i32_0 : i32, i32
  }
  func.func @transform_4(%arg0: i32) -> (i32, i32) {
    %c0_i32 = arith.constant 0 : i32
    %c0_i32_0 = arith.constant 0 : i32
    %c0_i32_1 = arith.constant 0 : i32
    return %c0_i32, %c0_i32_0 : i32, i32
  }
  func.func @transform_5(%arg0: i32) -> (i32, i32) {
    %c0_i32 = arith.constant 0 : i32
    %c0_i32_0 = arith.constant 0 : i32
    return %arg0, %c0_i32 : i32, i32
  }
  func.func @transform_6(%arg0: i32) -> (i32, i32) {
    %c0_i32 = arith.constant 0 : i32
    %c0_i32_0 = arith.constant 0 : i32
    return %arg0, %c0_i32 : i32, i32
  }
}

module attributes {stable_mosaic.version = 11 : i64} {
  func.func @_fused_head_kernel(%arg0: i32, %arg1: memref<1x32x64xf32, #tpu.memory_space<vmem>>, %arg2: memref<32x32xbf16, #tpu.memory_space<vmem>>, %arg3: memref<32x64xbf16, #tpu.memory_space<vmem>>, %arg4: memref<64x32xbf16, #tpu.memory_space<vmem>>, %arg5: memref<1x32xf32, #tpu.memory_space<vmem>>, %arg6: memref<32x128xbf16, #tpu.memory_space<vmem>>, %arg7: memref<1x128xf32, #tpu.memory_space<vmem>>, %arg8: memref<32x128xf32, #tpu.memory_space<vmem>>, %arg9: memref<32x32xbf16, #tpu.memory_space<vmem>>) attributes {dimension_semantics = [#tpu.dimension_semantics<parallel>], iteration_bounds = array<i64: 1>, scalar_prefetch = 0 : i64, scratch_operands = 0 : i64, tpu.core_type = #tpu.core_type<tc>, window_params = [{transform_indices = @transform_0, window_bounds = array<i64: 1, 32, 64>}, {transform_indices = @transform_1, window_bounds = array<i64: 32, 32>}, {pipeline_mode = #tpu.pipeline_mode<synchronous>, transform_indices = @transform_2, window_bounds = array<i64: 32, 64>}, {pipeline_mode = #tpu.pipeline_mode<synchronous>, transform_indices = @transform_3, window_bounds = array<i64: 64, 32>}, {pipeline_mode = #tpu.pipeline_mode<synchronous>, transform_indices = @transform_4, window_bounds = array<i64: 1, 32>}, {pipeline_mode = #tpu.pipeline_mode<synchronous>, transform_indices = @transform_5, window_bounds = array<i64: 32, 128>}, {pipeline_mode = #tpu.pipeline_mode<synchronous>, transform_indices = @transform_6, window_bounds = array<i64: 1, 128>}, {transform_indices = @transform_7, window_bounds = array<i64: 32, 128>}, {transform_indices = @transform_8, window_bounds = array<i64: 32, 32>}]} {
    %c0 = arith.constant 0 : index
    %c0_0 = arith.constant 0 : index
    %c0_1 = arith.constant 0 : index
    %0 = vector.load %arg1[%c0, %c0_0, %c0_1] : memref<1x32x64xf32, #tpu.memory_space<vmem>>, vector<1x32x64xf32>
    %1 = vector.shape_cast %0 : vector<1x32x64xf32> to vector<32x64xf32>
    %c0_2 = arith.constant 0 : index
    %c0_3 = arith.constant 0 : index
    %2 = vector.load %arg2[%c0_2, %c0_3] : memref<32x32xbf16, #tpu.memory_space<vmem>>, vector<32x32xbf16>
    %c0_4 = arith.constant 0 : index
    %c0_5 = arith.constant 0 : index
    %3 = vector.load %arg3[%c0_4, %c0_5] : memref<32x64xbf16, #tpu.memory_space<vmem>>, vector<32x64xbf16>
    %cst = arith.constant dense<0.000000e+00> : vector<32x64xf32>
    %4 = tpu.matmul %2, %3, %cst {dimension_numbers = #tpu.dot_dimension_numbers<[1], [0], [0], [1], [0, 0, 1, 1], [], []>} : vector<32x32xbf16>, vector<32x64xbf16>, vector<32x64xf32> -> vector<32x64xf32>
    %5 = arith.addf %1, %4 : vector<32x64xf32>
    %cst_6 = arith.constant 0.000000e+00 : f32
    %6 = vector.broadcast %cst_6 : f32 to vector<32x64xf32>
    %7 = arith.maximumf %5, %6 : vector<32x64xf32>
    %8 = arith.truncf %7 : vector<32x64xf32> to vector<32x64xbf16>
    %c0_7 = arith.constant 0 : index
    %c0_8 = arith.constant 0 : index
    %9 = vector.load %arg4[%c0_7, %c0_8] : memref<64x32xbf16, #tpu.memory_space<vmem>>, vector<64x32xbf16>
    %cst_9 = arith.constant dense<0.000000e+00> : vector<32x32xf32>
    %10 = tpu.matmul %8, %9, %cst_9 {dimension_numbers = #tpu.dot_dimension_numbers<[1], [0], [0], [1], [0, 0, 1, 1], [], []>} : vector<32x64xbf16>, vector<64x32xbf16>, vector<32x32xf32> -> vector<32x32xf32>
    %c0_10 = arith.constant 0 : index
    %c0_11 = arith.constant 0 : index
    %11 = vector.load %arg5[%c0_10, %c0_11] : memref<1x32xf32, #tpu.memory_space<vmem>>, vector<1x32xf32>
    %12 = vector.broadcast %11 : vector<1x32xf32> to vector<32x32xf32>
    %13 = arith.addf %10, %12 : vector<32x32xf32>
    %cst_12 = arith.constant 0.000000e+00 : f32
    %14 = vector.broadcast %cst_12 : f32 to vector<32x32xf32>
    %15 = arith.maximumf %13, %14 : vector<32x32xf32>
    %16 = arith.truncf %15 : vector<32x32xf32> to vector<32x32xbf16>
    %c0_13 = arith.constant 0 : index
    %c0_14 = arith.constant 0 : index
    %17 = vector.load %arg6[%c0_13, %c0_14] : memref<32x128xbf16, #tpu.memory_space<vmem>>, vector<32x128xbf16>
    %cst_15 = arith.constant dense<0.000000e+00> : vector<32x128xf32>
    %18 = tpu.matmul %16, %17, %cst_15 {dimension_numbers = #tpu.dot_dimension_numbers<[1], [0], [0], [1], [0, 0, 1, 1], [], []>} : vector<32x32xbf16>, vector<32x128xbf16>, vector<32x128xf32> -> vector<32x128xf32>
    %c0_16 = arith.constant 0 : index
    %c0_17 = arith.constant 0 : index
    %19 = vector.load %arg7[%c0_16, %c0_17] : memref<1x128xf32, #tpu.memory_space<vmem>>, vector<1x128xf32>
    %20 = vector.broadcast %19 : vector<1x128xf32> to vector<32x128xf32>
    %21 = arith.addf %18, %20 : vector<32x128xf32>
    %22 = arith.negf %21 : vector<32x128xf32>
    %23 = math.exp %22 : vector<32x128xf32>
    %cst_18 = arith.constant 1.000000e+00 : f32
    %24 = vector.broadcast %cst_18 : f32 to vector<32x128xf32>
    %25 = arith.addf %24, %23 : vector<32x128xf32>
    %26 = arith.divf %24, %25 : vector<32x128xf32>
    %c0_19 = arith.constant 0 : index
    %c0_20 = arith.constant 0 : index
    %27 = vector.load %arg8[%c0_19, %c0_20] : memref<32x128xf32, #tpu.memory_space<vmem>>, vector<32x128xf32>
    tpu.vector_store %arg8[%c0_19, %c0_20], %26 {strides = array<i32>} : memref<32x128xf32, #tpu.memory_space<vmem>>, vector<32x128xf32>,
    %28 = arith.truncf %15 : vector<32x32xf32> to vector<32x32xbf16>
    %c0_21 = arith.constant 0 : index
    %c0_22 = arith.constant 0 : index
    %29 = vector.load %arg9[%c0_21, %c0_22] : memref<32x32xbf16, #tpu.memory_space<vmem>>, vector<32x32xbf16>
    tpu.vector_store %arg9[%c0_21, %c0_22], %28 {strides = array<i32>} : memref<32x32xbf16, #tpu.memory_space<vmem>>, vector<32x32xbf16>,
    return
  }
  func.func @transform_0(%arg0: i32) -> (i32, i32, i32) {
    %c1_i32 = arith.constant 1 : i32
    %c0_i32 = arith.constant 0 : i32
    %c0_i32_0 = arith.constant 0 : i32
    return %c1_i32, %arg0, %c0_i32 : i32, i32, i32
  }
  func.func @transform_1(%arg0: i32) -> (i32, i32) {
    %c0_i32 = arith.constant 0 : i32
    %c0_i32_0 = arith.constant 0 : i32
    return %arg0, %c0_i32 : i32, i32
  }
  func.func @transform_2(%arg0: i32) -> (i32, i32) {
    %c0_i32 = arith.constant 0 : i32
    %c0_i32_0 = arith.constant 0 : i32
    %c0_i32_1 = arith.constant 0 : i32
    return %c0_i32, %c0_i32_0 : i32, i32
  }
  func.func @transform_3(%arg0: i32) -> (i32, i32) {
    %c0_i32 = arith.constant 0 : i32
    %c0_i32_0 = arith.constant 0 : i32
    %c0_i32_1 = arith.constant 0 : i32
    return %c0_i32, %c0_i32_0 : i32, i32
  }
  func.func @transform_4(%arg0: i32) -> (i32, i32) {
    %c0_i32 = arith.constant 0 : i32
    %c0_i32_0 = arith.constant 0 : i32
    %c0_i32_1 = arith.constant 0 : i32
    return %c0_i32, %c0_i32_0 : i32, i32
  }
  func.func @transform_5(%arg0: i32) -> (i32, i32) {
    %c0_i32 = arith.constant 0 : i32
    %c0_i32_0 = arith.constant 0 : i32
    %c0_i32_1 = arith.constant 0 : i32
    return %c0_i32, %c0_i32_0 : i32, i32
  }
  func.func @transform_6(%arg0: i32) -> (i32, i32) {
    %c0_i32 = arith.constant 0 : i32
    %c0_i32_0 = arith.constant 0 : i32
    %c0_i32_1 = arith.constant 0 : i32
    return %c0_i32, %c0_i32_0 : i32, i32
  }
  func.func @transform_7(%arg0: i32) -> (i32, i32) {
    %c0_i32 = arith.constant 0 : i32
    %c0_i32_0 = arith.constant 0 : i32
    return %arg0, %c0_i32 : i32, i32
  }
  func.func @transform_8(%arg0: i32) -> (i32, i32) {
    %c0_i32 = arith.constant 0 : i32
    %c0_i32_0 = arith.constant 0 : i32
    return %arg0, %c0_i32 : i32, i32
  }
}

module attributes {stable_mosaic.version = 11 : i64} {
  func.func @_fused_head_kernel(%arg0: i32, %arg1: memref<1x32x64xf32, #tpu.memory_space<vmem>>, %arg2: memref<32x32xbf16, #tpu.memory_space<vmem>>, %arg3: memref<32x64xbf16, #tpu.memory_space<vmem>>, %arg4: memref<64x32xbf16, #tpu.memory_space<vmem>>, %arg5: memref<1x32xf32, #tpu.memory_space<vmem>>, %arg6: memref<32x128xbf16, #tpu.memory_space<vmem>>, %arg7: memref<1x128xf32, #tpu.memory_space<vmem>>, %arg8: memref<32x128xf32, #tpu.memory_space<vmem>>, %arg9: memref<32x32xbf16, #tpu.memory_space<vmem>>) attributes {dimension_semantics = [#tpu.dimension_semantics<parallel>], iteration_bounds = array<i64: 1>, scalar_prefetch = 0 : i64, scratch_operands = 0 : i64, tpu.core_type = #tpu.core_type<tc>, window_params = [{transform_indices = @transform_0, window_bounds = array<i64: 1, 32, 64>}, {transform_indices = @transform_1, window_bounds = array<i64: 32, 32>}, {pipeline_mode = #tpu.pipeline_mode<synchronous>, transform_indices = @transform_2, window_bounds = array<i64: 32, 64>}, {pipeline_mode = #tpu.pipeline_mode<synchronous>, transform_indices = @transform_3, window_bounds = array<i64: 64, 32>}, {pipeline_mode = #tpu.pipeline_mode<synchronous>, transform_indices = @transform_4, window_bounds = array<i64: 1, 32>}, {pipeline_mode = #tpu.pipeline_mode<synchronous>, transform_indices = @transform_5, window_bounds = array<i64: 32, 128>}, {pipeline_mode = #tpu.pipeline_mode<synchronous>, transform_indices = @transform_6, window_bounds = array<i64: 1, 128>}, {transform_indices = @transform_7, window_bounds = array<i64: 32, 128>}, {transform_indices = @transform_8, window_bounds = array<i64: 32, 32>}]} {
    %c0 = arith.constant 0 : index
    %c0_0 = arith.constant 0 : index
    %c0_1 = arith.constant 0 : index
    %0 = vector.load %arg1[%c0, %c0_0, %c0_1] : memref<1x32x64xf32, #tpu.memory_space<vmem>>, vector<1x32x64xf32>
    %1 = vector.shape_cast %0 : vector<1x32x64xf32> to vector<32x64xf32>
    %c0_2 = arith.constant 0 : index
    %c0_3 = arith.constant 0 : index
    %2 = vector.load %arg2[%c0_2, %c0_3] : memref<32x32xbf16, #tpu.memory_space<vmem>>, vector<32x32xbf16>
    %c0_4 = arith.constant 0 : index
    %c0_5 = arith.constant 0 : index
    %3 = vector.load %arg3[%c0_4, %c0_5] : memref<32x64xbf16, #tpu.memory_space<vmem>>, vector<32x64xbf16>
    %cst = arith.constant dense<0.000000e+00> : vector<32x64xf32>
    %4 = tpu.matmul %2, %3, %cst {dimension_numbers = #tpu.dot_dimension_numbers<[1], [0], [0], [1], [0, 0, 1, 1], [], []>} : vector<32x32xbf16>, vector<32x64xbf16>, vector<32x64xf32> -> vector<32x64xf32>
    %5 = arith.addf %1, %4 : vector<32x64xf32>
    %cst_6 = arith.constant 0.000000e+00 : f32
    %6 = vector.broadcast %cst_6 : f32 to vector<32x64xf32>
    %7 = arith.maximumf %5, %6 : vector<32x64xf32>
    %8 = arith.truncf %7 : vector<32x64xf32> to vector<32x64xbf16>
    %c0_7 = arith.constant 0 : index
    %c0_8 = arith.constant 0 : index
    %9 = vector.load %arg4[%c0_7, %c0_8] : memref<64x32xbf16, #tpu.memory_space<vmem>>, vector<64x32xbf16>
    %cst_9 = arith.constant dense<0.000000e+00> : vector<32x32xf32>
    %10 = tpu.matmul %8, %9, %cst_9 {dimension_numbers = #tpu.dot_dimension_numbers<[1], [0], [0], [1], [0, 0, 1, 1], [], []>} : vector<32x64xbf16>, vector<64x32xbf16>, vector<32x32xf32> -> vector<32x32xf32>
    %c0_10 = arith.constant 0 : index
    %c0_11 = arith.constant 0 : index
    %11 = vector.load %arg5[%c0_10, %c0_11] : memref<1x32xf32, #tpu.memory_space<vmem>>, vector<1x32xf32>
    %12 = vector.broadcast %11 : vector<1x32xf32> to vector<32x32xf32>
    %13 = arith.addf %10, %12 : vector<32x32xf32>
    %cst_12 = arith.constant 0.000000e+00 : f32
    %14 = vector.broadcast %cst_12 : f32 to vector<32x32xf32>
    %15 = arith.maximumf %13, %14 : vector<32x32xf32>
    %16 = arith.truncf %15 : vector<32x32xf32> to vector<32x32xbf16>
    %c0_13 = arith.constant 0 : index
    %c0_14 = arith.constant 0 : index
    %17 = vector.load %arg6[%c0_13, %c0_14] : memref<32x128xbf16, #tpu.memory_space<vmem>>, vector<32x128xbf16>
    %cst_15 = arith.constant dense<0.000000e+00> : vector<32x128xf32>
    %18 = tpu.matmul %16, %17, %cst_15 {dimension_numbers = #tpu.dot_dimension_numbers<[1], [0], [0], [1], [0, 0, 1, 1], [], []>} : vector<32x32xbf16>, vector<32x128xbf16>, vector<32x128xf32> -> vector<32x128xf32>
    %c0_16 = arith.constant 0 : index
    %c0_17 = arith.constant 0 : index
    %19 = vector.load %arg7[%c0_16, %c0_17] : memref<1x128xf32, #tpu.memory_space<vmem>>, vector<1x128xf32>
    %20 = vector.broadcast %19 : vector<1x128xf32> to vector<32x128xf32>
    %21 = arith.addf %18, %20 : vector<32x128xf32>
    %22 = arith.negf %21 : vector<32x128xf32>
    %23 = math.exp %22 : vector<32x128xf32>
    %cst_18 = arith.constant 1.000000e+00 : f32
    %24 = vector.broadcast %cst_18 : f32 to vector<32x128xf32>
    %25 = arith.addf %24, %23 : vector<32x128xf32>
    %26 = arith.divf %24, %25 : vector<32x128xf32>
    %c0_19 = arith.constant 0 : index
    %c0_20 = arith.constant 0 : index
    %27 = vector.load %arg8[%c0_19, %c0_20] : memref<32x128xf32, #tpu.memory_space<vmem>>, vector<32x128xf32>
    tpu.vector_store %arg8[%c0_19, %c0_20], %26 {strides = array<i32>} : memref<32x128xf32, #tpu.memory_space<vmem>>, vector<32x128xf32>,
    %28 = arith.truncf %15 : vector<32x32xf32> to vector<32x32xbf16>
    %c0_21 = arith.constant 0 : index
    %c0_22 = arith.constant 0 : index
    %29 = vector.load %arg9[%c0_21, %c0_22] : memref<32x32xbf16, #tpu.memory_space<vmem>>, vector<32x32xbf16>
    tpu.vector_store %arg9[%c0_21, %c0_22], %28 {strides = array<i32>} : memref<32x32xbf16, #tpu.memory_space<vmem>>, vector<32x32xbf16>,
    return
  }
  func.func @transform_0(%arg0: i32) -> (i32, i32, i32) {
    %c3_i32 = arith.constant 3 : i32
    %c0_i32 = arith.constant 0 : i32
    %c0_i32_0 = arith.constant 0 : i32
    return %c3_i32, %arg0, %c0_i32 : i32, i32, i32
  }
  func.func @transform_1(%arg0: i32) -> (i32, i32) {
    %c0_i32 = arith.constant 0 : i32
    %c0_i32_0 = arith.constant 0 : i32
    return %arg0, %c0_i32 : i32, i32
  }
  func.func @transform_2(%arg0: i32) -> (i32, i32) {
    %c0_i32 = arith.constant 0 : i32
    %c0_i32_0 = arith.constant 0 : i32
    %c0_i32_1 = arith.constant 0 : i32
    return %c0_i32, %c0_i32_0 : i32, i32
  }
  func.func @transform_3(%arg0: i32) -> (i32, i32) {
    %c0_i32 = arith.constant 0 : i32
    %c0_i32_0 = arith.constant 0 : i32
    %c0_i32_1 = arith.constant 0 : i32
    return %c0_i32, %c0_i32_0 : i32, i32
  }
  func.func @transform_4(%arg0: i32) -> (i32, i32) {
    %c0_i32 = arith.constant 0 : i32
    %c0_i32_0 = arith.constant 0 : i32
    %c0_i32_1 = arith.constant 0 : i32
    return %c0_i32, %c0_i32_0 : i32, i32
  }
  func.func @transform_5(%arg0: i32) -> (i32, i32) {
    %c0_i32 = arith.constant 0 : i32
    %c0_i32_0 = arith.constant 0 : i32
    %c0_i32_1 = arith.constant 0 : i32
    return %c0_i32, %c0_i32_0 : i32, i32
  }
  func.func @transform_6(%arg0: i32) -> (i32, i32) {
    %c0_i32 = arith.constant 0 : i32
    %c0_i32_0 = arith.constant 0 : i32
    %c0_i32_1 = arith.constant 0 : i32
    return %c0_i32, %c0_i32_0 : i32, i32
  }
  func.func @transform_7(%arg0: i32) -> (i32, i32) {
    %c0_i32 = arith.constant 0 : i32
    %c0_i32_0 = arith.constant 0 : i32
    return %arg0, %c0_i32 : i32, i32
  }
  func.func @transform_8(%arg0: i32) -> (i32, i32) {
    %c0_i32 = arith.constant 0 : i32
    %c0_i32_0 = arith.constant 0 : i32
    return %arg0, %c0_i32 : i32, i32
  }
}

module attributes {stable_mosaic.version = 11 : i64} {
  func.func @_fused_head_kernel(%arg0: i32, %arg1: memref<1x32x64xf32, #tpu.memory_space<vmem>>, %arg2: memref<32x32xbf16, #tpu.memory_space<vmem>>, %arg3: memref<32x64xbf16, #tpu.memory_space<vmem>>, %arg4: memref<64x32xbf16, #tpu.memory_space<vmem>>, %arg5: memref<1x32xf32, #tpu.memory_space<vmem>>, %arg6: memref<32x128xbf16, #tpu.memory_space<vmem>>, %arg7: memref<1x128xf32, #tpu.memory_space<vmem>>, %arg8: memref<32x128xf32, #tpu.memory_space<vmem>>, %arg9: memref<32x32xbf16, #tpu.memory_space<vmem>>) attributes {dimension_semantics = [#tpu.dimension_semantics<parallel>], iteration_bounds = array<i64: 1>, scalar_prefetch = 0 : i64, scratch_operands = 0 : i64, tpu.core_type = #tpu.core_type<tc>, window_params = [{transform_indices = @transform_0, window_bounds = array<i64: 1, 32, 64>}, {transform_indices = @transform_1, window_bounds = array<i64: 32, 32>}, {pipeline_mode = #tpu.pipeline_mode<synchronous>, transform_indices = @transform_2, window_bounds = array<i64: 32, 64>}, {pipeline_mode = #tpu.pipeline_mode<synchronous>, transform_indices = @transform_3, window_bounds = array<i64: 64, 32>}, {pipeline_mode = #tpu.pipeline_mode<synchronous>, transform_indices = @transform_4, window_bounds = array<i64: 1, 32>}, {pipeline_mode = #tpu.pipeline_mode<synchronous>, transform_indices = @transform_5, window_bounds = array<i64: 32, 128>}, {pipeline_mode = #tpu.pipeline_mode<synchronous>, transform_indices = @transform_6, window_bounds = array<i64: 1, 128>}, {transform_indices = @transform_7, window_bounds = array<i64: 32, 128>}, {transform_indices = @transform_8, window_bounds = array<i64: 32, 32>}]} {
    %c0 = arith.constant 0 : index
    %c0_0 = arith.constant 0 : index
    %c0_1 = arith.constant 0 : index
    %0 = vector.load %arg1[%c0, %c0_0, %c0_1] : memref<1x32x64xf32, #tpu.memory_space<vmem>>, vector<1x32x64xf32>
    %1 = vector.shape_cast %0 : vector<1x32x64xf32> to vector<32x64xf32>
    %c0_2 = arith.constant 0 : index
    %c0_3 = arith.constant 0 : index
    %2 = vector.load %arg2[%c0_2, %c0_3] : memref<32x32xbf16, #tpu.memory_space<vmem>>, vector<32x32xbf16>
    %c0_4 = arith.constant 0 : index
    %c0_5 = arith.constant 0 : index
    %3 = vector.load %arg3[%c0_4, %c0_5] : memref<32x64xbf16, #tpu.memory_space<vmem>>, vector<32x64xbf16>
    %cst = arith.constant dense<0.000000e+00> : vector<32x64xf32>
    %4 = tpu.matmul %2, %3, %cst {dimension_numbers = #tpu.dot_dimension_numbers<[1], [0], [0], [1], [0, 0, 1, 1], [], []>} : vector<32x32xbf16>, vector<32x64xbf16>, vector<32x64xf32> -> vector<32x64xf32>
    %5 = arith.addf %1, %4 : vector<32x64xf32>
    %cst_6 = arith.constant 0.000000e+00 : f32
    %6 = vector.broadcast %cst_6 : f32 to vector<32x64xf32>
    %7 = arith.maximumf %5, %6 : vector<32x64xf32>
    %8 = arith.truncf %7 : vector<32x64xf32> to vector<32x64xbf16>
    %c0_7 = arith.constant 0 : index
    %c0_8 = arith.constant 0 : index
    %9 = vector.load %arg4[%c0_7, %c0_8] : memref<64x32xbf16, #tpu.memory_space<vmem>>, vector<64x32xbf16>
    %cst_9 = arith.constant dense<0.000000e+00> : vector<32x32xf32>
    %10 = tpu.matmul %8, %9, %cst_9 {dimension_numbers = #tpu.dot_dimension_numbers<[1], [0], [0], [1], [0, 0, 1, 1], [], []>} : vector<32x64xbf16>, vector<64x32xbf16>, vector<32x32xf32> -> vector<32x32xf32>
    %c0_10 = arith.constant 0 : index
    %c0_11 = arith.constant 0 : index
    %11 = vector.load %arg5[%c0_10, %c0_11] : memref<1x32xf32, #tpu.memory_space<vmem>>, vector<1x32xf32>
    %12 = vector.broadcast %11 : vector<1x32xf32> to vector<32x32xf32>
    %13 = arith.addf %10, %12 : vector<32x32xf32>
    %cst_12 = arith.constant 0.000000e+00 : f32
    %14 = vector.broadcast %cst_12 : f32 to vector<32x32xf32>
    %15 = arith.maximumf %13, %14 : vector<32x32xf32>
    %16 = arith.truncf %15 : vector<32x32xf32> to vector<32x32xbf16>
    %c0_13 = arith.constant 0 : index
    %c0_14 = arith.constant 0 : index
    %17 = vector.load %arg6[%c0_13, %c0_14] : memref<32x128xbf16, #tpu.memory_space<vmem>>, vector<32x128xbf16>
    %cst_15 = arith.constant dense<0.000000e+00> : vector<32x128xf32>
    %18 = tpu.matmul %16, %17, %cst_15 {dimension_numbers = #tpu.dot_dimension_numbers<[1], [0], [0], [1], [0, 0, 1, 1], [], []>} : vector<32x32xbf16>, vector<32x128xbf16>, vector<32x128xf32> -> vector<32x128xf32>
    %c0_16 = arith.constant 0 : index
    %c0_17 = arith.constant 0 : index
    %19 = vector.load %arg7[%c0_16, %c0_17] : memref<1x128xf32, #tpu.memory_space<vmem>>, vector<1x128xf32>
    %20 = vector.broadcast %19 : vector<1x128xf32> to vector<32x128xf32>
    %21 = arith.addf %18, %20 : vector<32x128xf32>
    %22 = arith.negf %21 : vector<32x128xf32>
    %23 = math.exp %22 : vector<32x128xf32>
    %cst_18 = arith.constant 1.000000e+00 : f32
    %24 = vector.broadcast %cst_18 : f32 to vector<32x128xf32>
    %25 = arith.addf %24, %23 : vector<32x128xf32>
    %26 = arith.divf %24, %25 : vector<32x128xf32>
    %c0_19 = arith.constant 0 : index
    %c0_20 = arith.constant 0 : index
    %27 = vector.load %arg8[%c0_19, %c0_20] : memref<32x128xf32, #tpu.memory_space<vmem>>, vector<32x128xf32>
    tpu.vector_store %arg8[%c0_19, %c0_20], %26 {strides = array<i32>} : memref<32x128xf32, #tpu.memory_space<vmem>>, vector<32x128xf32>,
    %28 = arith.truncf %15 : vector<32x32xf32> to vector<32x32xbf16>
    %c0_21 = arith.constant 0 : index
    %c0_22 = arith.constant 0 : index
    %29 = vector.load %arg9[%c0_21, %c0_22] : memref<32x32xbf16, #tpu.memory_space<vmem>>, vector<32x32xbf16>
    tpu.vector_store %arg9[%c0_21, %c0_22], %28 {strides = array<i32>} : memref<32x32xbf16, #tpu.memory_space<vmem>>, vector<32x32xbf16>,
    return
  }
  func.func @transform_0(%arg0: i32) -> (i32, i32, i32) {
    %c4_i32 = arith.constant 4 : i32
    %c0_i32 = arith.constant 0 : i32
    %c0_i32_0 = arith.constant 0 : i32
    return %c4_i32, %arg0, %c0_i32 : i32, i32, i32
  }
  func.func @transform_1(%arg0: i32) -> (i32, i32) {
    %c0_i32 = arith.constant 0 : i32
    %c0_i32_0 = arith.constant 0 : i32
    return %arg0, %c0_i32 : i32, i32
  }
  func.func @transform_2(%arg0: i32) -> (i32, i32) {
    %c0_i32 = arith.constant 0 : i32
    %c0_i32_0 = arith.constant 0 : i32
    %c0_i32_1 = arith.constant 0 : i32
    return %c0_i32, %c0_i32_0 : i32, i32
  }
  func.func @transform_3(%arg0: i32) -> (i32, i32) {
    %c0_i32 = arith.constant 0 : i32
    %c0_i32_0 = arith.constant 0 : i32
    %c0_i32_1 = arith.constant 0 : i32
    return %c0_i32, %c0_i32_0 : i32, i32
  }
  func.func @transform_4(%arg0: i32) -> (i32, i32) {
    %c0_i32 = arith.constant 0 : i32
    %c0_i32_0 = arith.constant 0 : i32
    %c0_i32_1 = arith.constant 0 : i32
    return %c0_i32, %c0_i32_0 : i32, i32
  }
  func.func @transform_5(%arg0: i32) -> (i32, i32) {
    %c0_i32 = arith.constant 0 : i32
    %c0_i32_0 = arith.constant 0 : i32
    %c0_i32_1 = arith.constant 0 : i32
    return %c0_i32, %c0_i32_0 : i32, i32
  }
  func.func @transform_6(%arg0: i32) -> (i32, i32) {
    %c0_i32 = arith.constant 0 : i32
    %c0_i32_0 = arith.constant 0 : i32
    %c0_i32_1 = arith.constant 0 : i32
    return %c0_i32, %c0_i32_0 : i32, i32
  }
  func.func @transform_7(%arg0: i32) -> (i32, i32) {
    %c0_i32 = arith.constant 0 : i32
    %c0_i32_0 = arith.constant 0 : i32
    return %arg0, %c0_i32 : i32, i32
  }
  func.func @transform_8(%arg0: i32) -> (i32, i32) {
    %c0_i32 = arith.constant 0 : i32
    %c0_i32_0 = arith.constant 0 : i32
    return %arg0, %c0_i32 : i32, i32
  }
}

module attributes {stable_mosaic.version = 11 : i64} {
  func.func @_fused_head_kernel(%arg0: i32, %arg1: memref<1x32x64xf32, #tpu.memory_space<vmem>>, %arg2: memref<32x32xbf16, #tpu.memory_space<vmem>>, %arg3: memref<32x64xbf16, #tpu.memory_space<vmem>>, %arg4: memref<64x32xbf16, #tpu.memory_space<vmem>>, %arg5: memref<1x32xf32, #tpu.memory_space<vmem>>, %arg6: memref<32x128xbf16, #tpu.memory_space<vmem>>, %arg7: memref<1x128xf32, #tpu.memory_space<vmem>>, %arg8: memref<32x128xf32, #tpu.memory_space<vmem>>, %arg9: memref<32x32xbf16, #tpu.memory_space<vmem>>) attributes {dimension_semantics = [#tpu.dimension_semantics<parallel>], iteration_bounds = array<i64: 1>, scalar_prefetch = 0 : i64, scratch_operands = 0 : i64, tpu.core_type = #tpu.core_type<tc>, window_params = [{transform_indices = @transform_0, window_bounds = array<i64: 1, 32, 64>}, {transform_indices = @transform_1, window_bounds = array<i64: 32, 32>}, {pipeline_mode = #tpu.pipeline_mode<synchronous>, transform_indices = @transform_2, window_bounds = array<i64: 32, 64>}, {pipeline_mode = #tpu.pipeline_mode<synchronous>, transform_indices = @transform_3, window_bounds = array<i64: 64, 32>}, {pipeline_mode = #tpu.pipeline_mode<synchronous>, transform_indices = @transform_4, window_bounds = array<i64: 1, 32>}, {pipeline_mode = #tpu.pipeline_mode<synchronous>, transform_indices = @transform_5, window_bounds = array<i64: 32, 128>}, {pipeline_mode = #tpu.pipeline_mode<synchronous>, transform_indices = @transform_6, window_bounds = array<i64: 1, 128>}, {transform_indices = @transform_7, window_bounds = array<i64: 32, 128>}, {transform_indices = @transform_8, window_bounds = array<i64: 32, 32>}]} {
    %c0 = arith.constant 0 : index
    %c0_0 = arith.constant 0 : index
    %c0_1 = arith.constant 0 : index
    %0 = vector.load %arg1[%c0, %c0_0, %c0_1] : memref<1x32x64xf32, #tpu.memory_space<vmem>>, vector<1x32x64xf32>
    %1 = vector.shape_cast %0 : vector<1x32x64xf32> to vector<32x64xf32>
    %c0_2 = arith.constant 0 : index
    %c0_3 = arith.constant 0 : index
    %2 = vector.load %arg2[%c0_2, %c0_3] : memref<32x32xbf16, #tpu.memory_space<vmem>>, vector<32x32xbf16>
    %c0_4 = arith.constant 0 : index
    %c0_5 = arith.constant 0 : index
    %3 = vector.load %arg3[%c0_4, %c0_5] : memref<32x64xbf16, #tpu.memory_space<vmem>>, vector<32x64xbf16>
    %cst = arith.constant dense<0.000000e+00> : vector<32x64xf32>
    %4 = tpu.matmul %2, %3, %cst {dimension_numbers = #tpu.dot_dimension_numbers<[1], [0], [0], [1], [0, 0, 1, 1], [], []>} : vector<32x32xbf16>, vector<32x64xbf16>, vector<32x64xf32> -> vector<32x64xf32>
    %5 = arith.addf %1, %4 : vector<32x64xf32>
    %cst_6 = arith.constant 0.000000e+00 : f32
    %6 = vector.broadcast %cst_6 : f32 to vector<32x64xf32>
    %7 = arith.maximumf %5, %6 : vector<32x64xf32>
    %8 = arith.truncf %7 : vector<32x64xf32> to vector<32x64xbf16>
    %c0_7 = arith.constant 0 : index
    %c0_8 = arith.constant 0 : index
    %9 = vector.load %arg4[%c0_7, %c0_8] : memref<64x32xbf16, #tpu.memory_space<vmem>>, vector<64x32xbf16>
    %cst_9 = arith.constant dense<0.000000e+00> : vector<32x32xf32>
    %10 = tpu.matmul %8, %9, %cst_9 {dimension_numbers = #tpu.dot_dimension_numbers<[1], [0], [0], [1], [0, 0, 1, 1], [], []>} : vector<32x64xbf16>, vector<64x32xbf16>, vector<32x32xf32> -> vector<32x32xf32>
    %c0_10 = arith.constant 0 : index
    %c0_11 = arith.constant 0 : index
    %11 = vector.load %arg5[%c0_10, %c0_11] : memref<1x32xf32, #tpu.memory_space<vmem>>, vector<1x32xf32>
    %12 = vector.broadcast %11 : vector<1x32xf32> to vector<32x32xf32>
    %13 = arith.addf %10, %12 : vector<32x32xf32>
    %cst_12 = arith.constant 0.000000e+00 : f32
    %14 = vector.broadcast %cst_12 : f32 to vector<32x32xf32>
    %15 = arith.maximumf %13, %14 : vector<32x32xf32>
    %16 = arith.truncf %15 : vector<32x32xf32> to vector<32x32xbf16>
    %c0_13 = arith.constant 0 : index
    %c0_14 = arith.constant 0 : index
    %17 = vector.load %arg6[%c0_13, %c0_14] : memref<32x128xbf16, #tpu.memory_space<vmem>>, vector<32x128xbf16>
    %cst_15 = arith.constant dense<0.000000e+00> : vector<32x128xf32>
    %18 = tpu.matmul %16, %17, %cst_15 {dimension_numbers = #tpu.dot_dimension_numbers<[1], [0], [0], [1], [0, 0, 1, 1], [], []>} : vector<32x32xbf16>, vector<32x128xbf16>, vector<32x128xf32> -> vector<32x128xf32>
    %c0_16 = arith.constant 0 : index
    %c0_17 = arith.constant 0 : index
    %19 = vector.load %arg7[%c0_16, %c0_17] : memref<1x128xf32, #tpu.memory_space<vmem>>, vector<1x128xf32>
    %20 = vector.broadcast %19 : vector<1x128xf32> to vector<32x128xf32>
    %21 = arith.addf %18, %20 : vector<32x128xf32>
    %c0_18 = arith.constant 0 : index
    %c0_19 = arith.constant 0 : index
    %22 = vector.load %arg8[%c0_18, %c0_19] : memref<32x128xf32, #tpu.memory_space<vmem>>, vector<32x128xf32>
    tpu.vector_store %arg8[%c0_18, %c0_19], %21 {strides = array<i32>} : memref<32x128xf32, #tpu.memory_space<vmem>>, vector<32x128xf32>,
    %23 = arith.truncf %15 : vector<32x32xf32> to vector<32x32xbf16>
    %c0_20 = arith.constant 0 : index
    %c0_21 = arith.constant 0 : index
    %24 = vector.load %arg9[%c0_20, %c0_21] : memref<32x32xbf16, #tpu.memory_space<vmem>>, vector<32x32xbf16>
    tpu.vector_store %arg9[%c0_20, %c0_21], %23 {strides = array<i32>} : memref<32x32xbf16, #tpu.memory_space<vmem>>, vector<32x32xbf16>,
    return
  }
  func.func @transform_0(%arg0: i32) -> (i32, i32, i32) {
    %c6_i32 = arith.constant 6 : i32
    %c0_i32 = arith.constant 0 : i32
    %c0_i32_0 = arith.constant 0 : i32
    return %c6_i32, %arg0, %c0_i32 : i32, i32, i32
  }
  func.func @transform_1(%arg0: i32) -> (i32, i32) {
    %c0_i32 = arith.constant 0 : i32
    %c0_i32_0 = arith.constant 0 : i32
    return %arg0, %c0_i32 : i32, i32
  }
  func.func @transform_2(%arg0: i32) -> (i32, i32) {
    %c0_i32 = arith.constant 0 : i32
    %c0_i32_0 = arith.constant 0 : i32
    %c0_i32_1 = arith.constant 0 : i32
    return %c0_i32, %c0_i32_0 : i32, i32
  }
  func.func @transform_3(%arg0: i32) -> (i32, i32) {
    %c0_i32 = arith.constant 0 : i32
    %c0_i32_0 = arith.constant 0 : i32
    %c0_i32_1 = arith.constant 0 : i32
    return %c0_i32, %c0_i32_0 : i32, i32
  }
  func.func @transform_4(%arg0: i32) -> (i32, i32) {
    %c0_i32 = arith.constant 0 : i32
    %c0_i32_0 = arith.constant 0 : i32
    %c0_i32_1 = arith.constant 0 : i32
    return %c0_i32, %c0_i32_0 : i32, i32
  }
  func.func @transform_5(%arg0: i32) -> (i32, i32) {
    %c0_i32 = arith.constant 0 : i32
    %c0_i32_0 = arith.constant 0 : i32
    %c0_i32_1 = arith.constant 0 : i32
    return %c0_i32, %c0_i32_0 : i32, i32
  }
  func.func @transform_6(%arg0: i32) -> (i32, i32) {
    %c0_i32 = arith.constant 0 : i32
    %c0_i32_0 = arith.constant 0 : i32
    %c0_i32_1 = arith.constant 0 : i32
    return %c0_i32, %c0_i32_0 : i32, i32
  }
  func.func @transform_7(%arg0: i32) -> (i32, i32) {
    %c0_i32 = arith.constant 0 : i32
    %c0_i32_0 = arith.constant 0 : i32
    return %arg0, %c0_i32 : i32, i32
  }
  func.func @transform_8(%arg0: i32) -> (i32, i32) {
    %c0_i32 = arith.constant 0 : i32
    %c0_i32_0 = arith.constant 0 : i32
    return %arg0, %c0_i32 : i32, i32
  }
}

module attributes {stable_mosaic.version = 11 : i64} {
  func.func @_fused_head_kernel(%arg0: i32, %arg1: memref<1x32x64xf32, #tpu.memory_space<vmem>>, %arg2: memref<32x32xbf16, #tpu.memory_space<vmem>>, %arg3: memref<32x64xbf16, #tpu.memory_space<vmem>>, %arg4: memref<64x32xbf16, #tpu.memory_space<vmem>>, %arg5: memref<1x32xf32, #tpu.memory_space<vmem>>, %arg6: memref<32x128xbf16, #tpu.memory_space<vmem>>, %arg7: memref<1x128xf32, #tpu.memory_space<vmem>>, %arg8: memref<32x128xf32, #tpu.memory_space<vmem>>, %arg9: memref<32x32xbf16, #tpu.memory_space<vmem>>) attributes {dimension_semantics = [#tpu.dimension_semantics<parallel>], iteration_bounds = array<i64: 1>, scalar_prefetch = 0 : i64, scratch_operands = 0 : i64, tpu.core_type = #tpu.core_type<tc>, window_params = [{transform_indices = @transform_0, window_bounds = array<i64: 1, 32, 64>}, {transform_indices = @transform_1, window_bounds = array<i64: 32, 32>}, {pipeline_mode = #tpu.pipeline_mode<synchronous>, transform_indices = @transform_2, window_bounds = array<i64: 32, 64>}, {pipeline_mode = #tpu.pipeline_mode<synchronous>, transform_indices = @transform_3, window_bounds = array<i64: 64, 32>}, {pipeline_mode = #tpu.pipeline_mode<synchronous>, transform_indices = @transform_4, window_bounds = array<i64: 1, 32>}, {pipeline_mode = #tpu.pipeline_mode<synchronous>, transform_indices = @transform_5, window_bounds = array<i64: 32, 128>}, {pipeline_mode = #tpu.pipeline_mode<synchronous>, transform_indices = @transform_6, window_bounds = array<i64: 1, 128>}, {transform_indices = @transform_7, window_bounds = array<i64: 32, 128>}, {transform_indices = @transform_8, window_bounds = array<i64: 32, 32>}]} {
    %c0 = arith.constant 0 : index
    %c0_0 = arith.constant 0 : index
    %c0_1 = arith.constant 0 : index
    %0 = vector.load %arg1[%c0, %c0_0, %c0_1] : memref<1x32x64xf32, #tpu.memory_space<vmem>>, vector<1x32x64xf32>
    %1 = vector.shape_cast %0 : vector<1x32x64xf32> to vector<32x64xf32>
    %c0_2 = arith.constant 0 : index
    %c0_3 = arith.constant 0 : index
    %2 = vector.load %arg2[%c0_2, %c0_3] : memref<32x32xbf16, #tpu.memory_space<vmem>>, vector<32x32xbf16>
    %c0_4 = arith.constant 0 : index
    %c0_5 = arith.constant 0 : index
    %3 = vector.load %arg3[%c0_4, %c0_5] : memref<32x64xbf16, #tpu.memory_space<vmem>>, vector<32x64xbf16>
    %cst = arith.constant dense<0.000000e+00> : vector<32x64xf32>
    %4 = tpu.matmul %2, %3, %cst {dimension_numbers = #tpu.dot_dimension_numbers<[1], [0], [0], [1], [0, 0, 1, 1], [], []>} : vector<32x32xbf16>, vector<32x64xbf16>, vector<32x64xf32> -> vector<32x64xf32>
    %5 = arith.addf %1, %4 : vector<32x64xf32>
    %cst_6 = arith.constant 0.000000e+00 : f32
    %6 = vector.broadcast %cst_6 : f32 to vector<32x64xf32>
    %7 = arith.maximumf %5, %6 : vector<32x64xf32>
    %8 = arith.truncf %7 : vector<32x64xf32> to vector<32x64xbf16>
    %c0_7 = arith.constant 0 : index
    %c0_8 = arith.constant 0 : index
    %9 = vector.load %arg4[%c0_7, %c0_8] : memref<64x32xbf16, #tpu.memory_space<vmem>>, vector<64x32xbf16>
    %cst_9 = arith.constant dense<0.000000e+00> : vector<32x32xf32>
    %10 = tpu.matmul %8, %9, %cst_9 {dimension_numbers = #tpu.dot_dimension_numbers<[1], [0], [0], [1], [0, 0, 1, 1], [], []>} : vector<32x64xbf16>, vector<64x32xbf16>, vector<32x32xf32> -> vector<32x32xf32>
    %c0_10 = arith.constant 0 : index
    %c0_11 = arith.constant 0 : index
    %11 = vector.load %arg5[%c0_10, %c0_11] : memref<1x32xf32, #tpu.memory_space<vmem>>, vector<1x32xf32>
    %12 = vector.broadcast %11 : vector<1x32xf32> to vector<32x32xf32>
    %13 = arith.addf %10, %12 : vector<32x32xf32>
    %cst_12 = arith.constant 0.000000e+00 : f32
    %14 = vector.broadcast %cst_12 : f32 to vector<32x32xf32>
    %15 = arith.maximumf %13, %14 : vector<32x32xf32>
    %16 = arith.truncf %15 : vector<32x32xf32> to vector<32x32xbf16>
    %c0_13 = arith.constant 0 : index
    %c0_14 = arith.constant 0 : index
    %17 = vector.load %arg6[%c0_13, %c0_14] : memref<32x128xbf16, #tpu.memory_space<vmem>>, vector<32x128xbf16>
    %cst_15 = arith.constant dense<0.000000e+00> : vector<32x128xf32>
    %18 = tpu.matmul %16, %17, %cst_15 {dimension_numbers = #tpu.dot_dimension_numbers<[1], [0], [0], [1], [0, 0, 1, 1], [], []>} : vector<32x32xbf16>, vector<32x128xbf16>, vector<32x128xf32> -> vector<32x128xf32>
    %c0_16 = arith.constant 0 : index
    %c0_17 = arith.constant 0 : index
    %19 = vector.load %arg7[%c0_16, %c0_17] : memref<1x128xf32, #tpu.memory_space<vmem>>, vector<1x128xf32>
    %20 = vector.broadcast %19 : vector<1x128xf32> to vector<32x128xf32>
    %21 = arith.addf %18, %20 : vector<32x128xf32>
    %c0_18 = arith.constant 0 : index
    %c0_19 = arith.constant 0 : index
    %22 = vector.load %arg8[%c0_18, %c0_19] : memref<32x128xf32, #tpu.memory_space<vmem>>, vector<32x128xf32>
    tpu.vector_store %arg8[%c0_18, %c0_19], %21 {strides = array<i32>} : memref<32x128xf32, #tpu.memory_space<vmem>>, vector<32x128xf32>,
    %23 = arith.truncf %15 : vector<32x32xf32> to vector<32x32xbf16>
    %c0_20 = arith.constant 0 : index
    %c0_21 = arith.constant 0 : index
    %24 = vector.load %arg9[%c0_20, %c0_21] : memref<32x32xbf16, #tpu.memory_space<vmem>>, vector<32x32xbf16>
    tpu.vector_store %arg9[%c0_20, %c0_21], %23 {strides = array<i32>} : memref<32x32xbf16, #tpu.memory_space<vmem>>, vector<32x32xbf16>,
    return
  }
  func.func @transform_0(%arg0: i32) -> (i32, i32, i32) {
    %c7_i32 = arith.constant 7 : i32
    %c0_i32 = arith.constant 0 : i32
    %c0_i32_0 = arith.constant 0 : i32
    return %c7_i32, %arg0, %c0_i32 : i32, i32, i32
  }
  func.func @transform_1(%arg0: i32) -> (i32, i32) {
    %c0_i32 = arith.constant 0 : i32
    %c0_i32_0 = arith.constant 0 : i32
    return %arg0, %c0_i32 : i32, i32
  }
  func.func @transform_2(%arg0: i32) -> (i32, i32) {
    %c0_i32 = arith.constant 0 : i32
    %c0_i32_0 = arith.constant 0 : i32
    %c0_i32_1 = arith.constant 0 : i32
    return %c0_i32, %c0_i32_0 : i32, i32
  }
  func.func @transform_3(%arg0: i32) -> (i32, i32) {
    %c0_i32 = arith.constant 0 : i32
    %c0_i32_0 = arith.constant 0 : i32
    %c0_i32_1 = arith.constant 0 : i32
    return %c0_i32, %c0_i32_0 : i32, i32
  }
  func.func @transform_4(%arg0: i32) -> (i32, i32) {
    %c0_i32 = arith.constant 0 : i32
    %c0_i32_0 = arith.constant 0 : i32
    %c0_i32_1 = arith.constant 0 : i32
    return %c0_i32, %c0_i32_0 : i32, i32
  }
  func.func @transform_5(%arg0: i32) -> (i32, i32) {
    %c0_i32 = arith.constant 0 : i32
    %c0_i32_0 = arith.constant 0 : i32
    %c0_i32_1 = arith.constant 0 : i32
    return %c0_i32, %c0_i32_0 : i32, i32
  }
  func.func @transform_6(%arg0: i32) -> (i32, i32) {
    %c0_i32 = arith.constant 0 : i32
    %c0_i32_0 = arith.constant 0 : i32
    %c0_i32_1 = arith.constant 0 : i32
    return %c0_i32, %c0_i32_0 : i32, i32
  }
  func.func @transform_7(%arg0: i32) -> (i32, i32) {
    %c0_i32 = arith.constant 0 : i32
    %c0_i32_0 = arith.constant 0 : i32
    return %arg0, %c0_i32 : i32, i32
  }
  func.func @transform_8(%arg0: i32) -> (i32, i32) {
    %c0_i32 = arith.constant 0 : i32
    %c0_i32_0 = arith.constant 0 : i32
    return %arg0, %c0_i32 : i32, i32
  }
}

module attributes {stable_mosaic.version = 11 : i64} {
  func.func @_fused_head_kernel(%arg0: i32, %arg1: memref<1x32x64xf32, #tpu.memory_space<vmem>>, %arg2: memref<32x32xbf16, #tpu.memory_space<vmem>>, %arg3: memref<32x64xbf16, #tpu.memory_space<vmem>>, %arg4: memref<64x32xbf16, #tpu.memory_space<vmem>>, %arg5: memref<1x32xf32, #tpu.memory_space<vmem>>, %arg6: memref<32x128xbf16, #tpu.memory_space<vmem>>, %arg7: memref<1x128xf32, #tpu.memory_space<vmem>>, %arg8: memref<32x128xf32, #tpu.memory_space<vmem>>, %arg9: memref<32x32xbf16, #tpu.memory_space<vmem>>) attributes {dimension_semantics = [#tpu.dimension_semantics<parallel>], iteration_bounds = array<i64: 1>, scalar_prefetch = 0 : i64, scratch_operands = 0 : i64, tpu.core_type = #tpu.core_type<tc>, window_params = [{transform_indices = @transform_0, window_bounds = array<i64: 1, 32, 64>}, {transform_indices = @transform_1, window_bounds = array<i64: 32, 32>}, {pipeline_mode = #tpu.pipeline_mode<synchronous>, transform_indices = @transform_2, window_bounds = array<i64: 32, 64>}, {pipeline_mode = #tpu.pipeline_mode<synchronous>, transform_indices = @transform_3, window_bounds = array<i64: 64, 32>}, {pipeline_mode = #tpu.pipeline_mode<synchronous>, transform_indices = @transform_4, window_bounds = array<i64: 1, 32>}, {pipeline_mode = #tpu.pipeline_mode<synchronous>, transform_indices = @transform_5, window_bounds = array<i64: 32, 128>}, {pipeline_mode = #tpu.pipeline_mode<synchronous>, transform_indices = @transform_6, window_bounds = array<i64: 1, 128>}, {transform_indices = @transform_7, window_bounds = array<i64: 32, 128>}, {transform_indices = @transform_8, window_bounds = array<i64: 32, 32>}]} {
    %c0 = arith.constant 0 : index
    %c0_0 = arith.constant 0 : index
    %c0_1 = arith.constant 0 : index
    %0 = vector.load %arg1[%c0, %c0_0, %c0_1] : memref<1x32x64xf32, #tpu.memory_space<vmem>>, vector<1x32x64xf32>
    %1 = vector.shape_cast %0 : vector<1x32x64xf32> to vector<32x64xf32>
    %c0_2 = arith.constant 0 : index
    %c0_3 = arith.constant 0 : index
    %2 = vector.load %arg2[%c0_2, %c0_3] : memref<32x32xbf16, #tpu.memory_space<vmem>>, vector<32x32xbf16>
    %c0_4 = arith.constant 0 : index
    %c0_5 = arith.constant 0 : index
    %3 = vector.load %arg3[%c0_4, %c0_5] : memref<32x64xbf16, #tpu.memory_space<vmem>>, vector<32x64xbf16>
    %cst = arith.constant dense<0.000000e+00> : vector<32x64xf32>
    %4 = tpu.matmul %2, %3, %cst {dimension_numbers = #tpu.dot_dimension_numbers<[1], [0], [0], [1], [0, 0, 1, 1], [], []>} : vector<32x32xbf16>, vector<32x64xbf16>, vector<32x64xf32> -> vector<32x64xf32>
    %5 = arith.addf %1, %4 : vector<32x64xf32>
    %cst_6 = arith.constant 0.000000e+00 : f32
    %6 = vector.broadcast %cst_6 : f32 to vector<32x64xf32>
    %7 = arith.maximumf %5, %6 : vector<32x64xf32>
    %8 = arith.truncf %7 : vector<32x64xf32> to vector<32x64xbf16>
    %c0_7 = arith.constant 0 : index
    %c0_8 = arith.constant 0 : index
    %9 = vector.load %arg4[%c0_7, %c0_8] : memref<64x32xbf16, #tpu.memory_space<vmem>>, vector<64x32xbf16>
    %cst_9 = arith.constant dense<0.000000e+00> : vector<32x32xf32>
    %10 = tpu.matmul %8, %9, %cst_9 {dimension_numbers = #tpu.dot_dimension_numbers<[1], [0], [0], [1], [0, 0, 1, 1], [], []>} : vector<32x64xbf16>, vector<64x32xbf16>, vector<32x32xf32> -> vector<32x32xf32>
    %c0_10 = arith.constant 0 : index
    %c0_11 = arith.constant 0 : index
    %11 = vector.load %arg5[%c0_10, %c0_11] : memref<1x32xf32, #tpu.memory_space<vmem>>, vector<1x32xf32>
    %12 = vector.broadcast %11 : vector<1x32xf32> to vector<32x32xf32>
    %13 = arith.addf %10, %12 : vector<32x32xf32>
    %cst_12 = arith.constant 0.000000e+00 : f32
    %14 = vector.broadcast %cst_12 : f32 to vector<32x32xf32>
    %15 = arith.maximumf %13, %14 : vector<32x32xf32>
    %16 = arith.truncf %15 : vector<32x32xf32> to vector<32x32xbf16>
    %c0_13 = arith.constant 0 : index
    %c0_14 = arith.constant 0 : index
    %17 = vector.load %arg6[%c0_13, %c0_14] : memref<32x128xbf16, #tpu.memory_space<vmem>>, vector<32x128xbf16>
    %cst_15 = arith.constant dense<0.000000e+00> : vector<32x128xf32>
    %18 = tpu.matmul %16, %17, %cst_15 {dimension_numbers = #tpu.dot_dimension_numbers<[1], [0], [0], [1], [0, 0, 1, 1], [], []>} : vector<32x32xbf16>, vector<32x128xbf16>, vector<32x128xf32> -> vector<32x128xf32>
    %c0_16 = arith.constant 0 : index
    %c0_17 = arith.constant 0 : index
    %19 = vector.load %arg7[%c0_16, %c0_17] : memref<1x128xf32, #tpu.memory_space<vmem>>, vector<1x128xf32>
    %20 = vector.broadcast %19 : vector<1x128xf32> to vector<32x128xf32>
    %21 = arith.addf %18, %20 : vector<32x128xf32>
    %c0_18 = arith.constant 0 : index
    %c0_19 = arith.constant 0 : index
    %22 = vector.load %arg8[%c0_18, %c0_19] : memref<32x128xf32, #tpu.memory_space<vmem>>, vector<32x128xf32>
    tpu.vector_store %arg8[%c0_18, %c0_19], %21 {strides = array<i32>} : memref<32x128xf32, #tpu.memory_space<vmem>>, vector<32x128xf32>,
    %23 = arith.truncf %15 : vector<32x32xf32> to vector<32x32xbf16>
    %c0_20 = arith.constant 0 : index
    %c0_21 = arith.constant 0 : index
    %24 = vector.load %arg9[%c0_20, %c0_21] : memref<32x32xbf16, #tpu.memory_space<vmem>>, vector<32x32xbf16>
    tpu.vector_store %arg9[%c0_20, %c0_21], %23 {strides = array<i32>} : memref<32x32xbf16, #tpu.memory_space<vmem>>, vector<32x32xbf16>,
    return
  }
  func.func @transform_0(%arg0: i32) -> (i32, i32, i32) {
    %c5_i32 = arith.constant 5 : i32
    %c0_i32 = arith.constant 0 : i32
    %c0_i32_0 = arith.constant 0 : i32
    return %c5_i32, %arg0, %c0_i32 : i32, i32, i32
  }
  func.func @transform_1(%arg0: i32) -> (i32, i32) {
    %c0_i32 = arith.constant 0 : i32
    %c0_i32_0 = arith.constant 0 : i32
    return %arg0, %c0_i32 : i32, i32
  }
  func.func @transform_2(%arg0: i32) -> (i32, i32) {
    %c0_i32 = arith.constant 0 : i32
    %c0_i32_0 = arith.constant 0 : i32
    %c0_i32_1 = arith.constant 0 : i32
    return %c0_i32, %c0_i32_0 : i32, i32
  }
  func.func @transform_3(%arg0: i32) -> (i32, i32) {
    %c0_i32 = arith.constant 0 : i32
    %c0_i32_0 = arith.constant 0 : i32
    %c0_i32_1 = arith.constant 0 : i32
    return %c0_i32, %c0_i32_0 : i32, i32
  }
  func.func @transform_4(%arg0: i32) -> (i32, i32) {
    %c0_i32 = arith.constant 0 : i32
    %c0_i32_0 = arith.constant 0 : i32
    %c0_i32_1 = arith.constant 0 : i32
    return %c0_i32, %c0_i32_0 : i32, i32
  }
  func.func @transform_5(%arg0: i32) -> (i32, i32) {
    %c0_i32 = arith.constant 0 : i32
    %c0_i32_0 = arith.constant 0 : i32
    %c0_i32_1 = arith.constant 0 : i32
    return %c0_i32, %c0_i32_0 : i32, i32
  }
  func.func @transform_6(%arg0: i32) -> (i32, i32) {
    %c0_i32 = arith.constant 0 : i32
    %c0_i32_0 = arith.constant 0 : i32
    %c0_i32_1 = arith.constant 0 : i32
    return %c0_i32, %c0_i32_0 : i32, i32
  }
  func.func @transform_7(%arg0: i32) -> (i32, i32) {
    %c0_i32 = arith.constant 0 : i32
    %c0_i32_0 = arith.constant 0 : i32
    return %arg0, %c0_i32 : i32, i32
  }
  func.func @transform_8(%arg0: i32) -> (i32, i32) {
    %c0_i32 = arith.constant 0 : i32
    %c0_i32_0 = arith.constant 0 : i32
    return %arg0, %c0_i32 : i32, i32
  }
}

</mosaic_0001>

<bundles_post_ra>
// kernel: deep_res_lstm_actor_forward.16
= control target key start
LH: loop header
LB: loop body
LE: loop exit
PB: predicated region body
PF: predicated region fallthrough
CT: control target
= control target key end

     0   :  { %vm36_vm0 = vcmask 130048   ;;  %vm92_vm1 = vcmask 261120   ;;  %s165_s1 = inlined_call_operand.vmem [shape: bf16[16,32], index: 1, kind: input, shape index: {}]   ;;  %s166_s0 = inlined_call_operand.vmem [shape: f32[32,16], index: 0, kind: input, shape index: {}]   ;;  %s167_s2 = inlined_call_operand.vmem [shape: f32[1,32], index: 2, kind: input, shape index: {}]   ;;  %s168_s3 = inlined_call_operand.vmem [shape: f32[32,32], index: 3, kind: output, shape index: {}]  }
   0x1   :  { %v114_v0 = vld [vmem:[%s165_s1] sm:$0xff]   ;;  %v16_v2 = vld [vmem:[%s166_s0 + $0x8] sm:$0xff]  ;;  %v17_v3 = vld [vmem:[%s166_s0 + $0x10] sm:$0xff] }
   0x2   :  { %v15_v1 = vld [vmem:[%s166_s0] sm:$0xff]  ;;  %108 = vmatprep.subr.bf16.mxu0 %v114_v0  ;;  %v18_v5 = vld [vmem:[%s166_s0 + $0x18] sm:$0xff] }
   0x3   :  { %v19_v4 = vpack.c.bf16 %v16_v2, %v15_v1  ;;  %109 = vmatpush3.bf16.msra.mxu0 %v114_v0  ;;  %v20_v6 = vpack.c.bf16 %v18_v5, %v17_v3  ;;  %v101_v7 = vld [vmem:[%s167_s2] ss:$0 sm:$0xff] }
   0x5   :  { %110 = vmatprep.mubr.msk.bf16.mxu0 %vm36_vm0, %v19_v4 }
   0x6   :  { %111 = vmatmul.mubr.msk.bf16.vlgmr.msra.gmra.mrb[0].mxu0 %vm36_vm0, %v20_v6 }
  0xd9   :  { %v112_v8 = vpop.f32.mrb[0].mxu0 }
  0xda   :  { %v86_v9 = vadd.f32 %v112_v8, %v101_v7  ;;  %v77_v10 = vpop.f32.mrb[1].mxu0 }
  0xdb   :  { %v78_v11 = vadd.f32 %v101_v7, %v77_v10  ;;  %v113_v12 = vpop.f32.mrb[2].mxu0 }
  0xdc   :  { %95 = vst.msk [vmem:[%s168_s3 + $0x10] sm:$0xff] %vm92_vm1, %v86_v9  ;;  %v89_v13 = vadd.f32 %v113_v12, %v101_v7  ;;  %v80_v14 = vpop.f32.mrb[3].mxu0 }
  0xdd   :  { %93 = vst.msk [vmem:[%s168_s3] sm:$0xff] %vm92_vm1, %v78_v11  ;;  %v81_v15 = vadd.f32 %v101_v7, %v80_v14 }
  0xde   :  { %96 = vst.msk [vmem:[%s168_s3 + $0x18] sm:$0xff] %vm92_vm1, %v89_v13 }
  0xdf   :  { %94 = vst.msk [vmem:[%s168_s3 + $0x8] sm:$0xff] %vm92_vm1, %v81_v15 }

// kernel: deep_res_lstm_actor_forward.19
= control target key start
LH: loop header
LB: loop body
LE: loop exit
PB: predicated region body
PF: predicated region fallthrough
CT: control target
= control target key end

     0   :  { %vm55_vm0 = vcmask 261120   ;;  %s224_s1 = inlined_call_operand.vmem [shape: bf16[32,32], index: 1, kind: input, shape index: {}]   ;;  %s225_s0 = inlined_call_operand.vmem [shape: bf16[32,32], index: 0, kind: input, shape index: {}]   ;;  %s226_s2 = inlined_call_operand.vmem [shape: f32[1,32], index: 2, kind: input, shape index: {}]   ;;  %s227_s3 = inlined_call_operand.vmem [shape: f32[32,32], index: 3, kind: input, shape index: {}, may-alias: {3,4}]   ;;  %s228_s4 = inlined_call_operand.vmem [shape: f32[32,32], index: 4, kind: output, shape index: {}, may-alias: {3,4}]  }
   0x1   :  { %v150_v0 = vld [vmem:[%s224_s1] sm:$0xff]   ;;  %v151_v1 = vld [vmem:[%s224_s1 + $0x8] sm:$0xff]   ;;  %v113_v6 = vld [vmem:[%s227_s3 + $0x10] sm:$0xff] }
   0x2   :  { %142 = vmatprep.subr.bf16.mxu0 %v150_v0  ;;  %v152_v2 = vld [vmem:[%s225_s0] sm:$0xff]   ;;  %v153_v3 = vld [vmem:[%s225_s0 + $0x8] sm:$0xff]   ;;  %v114_v12 = vld [vmem:[%s227_s3 + $0x18] sm:$0xff] }
   0x3   :  { %143 = vmatpush3.bf16.msra.mxu0 %v150_v0  ;;  %146 = vmatprep.mubr.msk.bf16.mxu0 %vm55_vm0, %v152_v2  ;;  %v131_v4 = vld [vmem:[%s226_s2] ss:$0 sm:$0xff]  ;;  %v112_v16 = vld [vmem:[%s227_s3 + $0x8] sm:$0xff] }
   0x4   :  { %144 = vmatprep.subr.bf16.mxu0 %v151_v1  ;;  %v111_v9 = vld [vmem:[%s227_s3] sm:$0xff] }
   0x7   :  { %145 = vmatpush3.bf16.msra.mxu0 %v151_v1 }
   0xa   :  { %147 = vmatmul.mubr.msk.bf16.vlgmr.msra.gmra.mrb[0].mxu0 %vm55_vm0, %v153_v3 }
  0xdd   :  { %v148_v5 = vpop.f32.mrb[0].mxu0 }
  0xde   :  { %v105_v7 = vadd.f32 %v148_v5, %v131_v4  ;;  %v96_v8 = vpop.f32.mrb[1].mxu0 }
  0xdf   :  { %v97_v10 = vadd.f32 %v131_v4, %v96_v8  ;;  %v149_v11 = vpop.f32.mrb[2].mxu0 }
  0xe0   :  { %v117_v13 = vadd.f32 %v113_v6, %v105_v7  ;;  %v108_v14 = vadd.f32 %v149_v11, %v131_v4  ;;  %v99_v15 = vpop.f32.mrb[3].mxu0 }
  0xe1   :  { %v115_v17 = vadd.f32 %v111_v9, %v97_v10  ;;  %v100_v18 = vadd.f32 %v131_v4, %v99_v15 }
  0xe2   :  { %v121_v19 = vmax.f32 %v117_v13, 0.0  ;;  %v118_v20 = vadd.f32 %v114_v12, %v108_v14 }
  0xe3   :  { %v119_v21 = vmax.f32 %v115_v17, 0.0  ;;  %v116_v22 = vadd.f32 %v112_v16, %v100_v18 }
  0xe4   :  { %125 = vst.msk [vmem:[%s228_s4 + $0x10] sm:$0xff] %vm55_vm0, %v121_v19  ;;  %v122_v23 = vmax.f32 %v118_v20, 0.0 }
  0xe5   :  { %123 = vst.msk [vmem:[%s228_s4] sm:$0xff] %vm55_vm0, %v119_v21  ;;  %v120_v24 = vmax.f32 %v116_v22, 0.0 }
  0xe6   :  { %126 = vst.msk [vmem:[%s228_s4 + $0x18] sm:$0xff] %vm55_vm0, %v122_v23 }
  0xe7   :  { %124 = vst.msk [vmem:[%s228_s4 + $0x8] sm:$0xff] %vm55_vm0, %v120_v24 }

// kernel: deep_res_lstm_actor_forward.17
= control target key start
LH: loop header
LB: loop body
LE: loop exit
PB: predicated region body
PF: predicated region fallthrough
CT: control target
= control target key end

     0   :  { %vm44_vm0 = vcmask 261120   ;;  %s209_s1 = inlined_call_operand.vmem [shape: bf16[32,128], index: 1, kind: input, shape index: {}]   ;;  %s210_s0 = inlined_call_operand.vmem [shape: f32[32,32], index: 0, kind: input, shape index: {}]   ;;  %s211_s2 = inlined_call_operand.vmem [shape: f32[1,128], index: 2, kind: input, shape index: {}]   ;;  %s212_s3 = inlined_call_operand.vmem [shape: bf16[32,128], index: 3, kind: output, shape index: {}]  }
   0x1   :  { %v160_v0 = vld [vmem:[%s209_s1] sm:$0xff]   ;;  %v161_v1 = vld [vmem:[%s209_s1 + $0x8] sm:$0xff]   ;;  %v17_v5 = vld [vmem:[%s210_s0 + $0x10] sm:$0xff] }
   0x2   :  { %152 = vmatprep.subr.bf16.mxu0 %v160_v0  ;;  %v15_v2 = vld [vmem:[%s210_s0] sm:$0xff]  ;;  %v16_v3 = vld [vmem:[%s210_s0 + $0x8] sm:$0xff]  ;;  %v18_v6 = vld [vmem:[%s210_s0 + $0x18] sm:$0xff] }
   0x3   :  { %153 = vmatpush3.bf16.msra.mxu0 %v160_v0  ;;  %v19_v4 = vpack.c.bf16 %v16_v3, %v15_v2  ;;  %v20_v7 = vpack.c.bf16 %v18_v6, %v17_v5  ;;  %v124_v9 = vld [vmem:[%s211_s2] ss:$0 sm:$0xff] }
   0x4   :  { %154 = vmatprep.subr.bf16.mxu0 %v161_v1 }
   0x5   :  { %156 = vmatprep.mubr.msk.bf16.mxu0 %vm44_vm0, %v19_v4 }
   0x7   :  { %155 = vmatpush3.bf16.msra.mxu0 %v161_v1 }
   0xa   :  { %157 = vmatmul.mubr.msk.bf16.vlgmr.msra.gmra.mrb[0].mxu0 %vm44_vm0, %v20_v7 }
  0xdd   :  { %v158_v8 = vpop.f32.mrb[0].mxu0 }
  0xde   :  { %v85_v10 = vpop.f32.mrb[1].mxu0  ;;  %v94_v12 = vadd.f32 %v158_v8, %v124_v9 }
  0xdf   :  { %v159_v11 = vpop.f32.mrb[2].mxu0  ;;  %v86_v15 = vadd.f32 %v124_v9, %v85_v10 }
  0xe0   :  { %v97_v13 = vadd.f32 %v159_v11, %v124_v9  ;;  %v88_v14 = vpop.f32.mrb[3].mxu0 }
  0xe1   :  { %v89_v16 = vadd.f32 %v124_v9, %v88_v14 }
  0xe2   :  { %v145_v17 = vpack.c.bf16 %v97_v13, %v94_v12 }
  0xe3   :  { %v140_v18 = vpack.c.bf16 %v89_v16, %v86_v15 }
  0xe4   :  { %147 = vst [vmem:[%s212_s3 + $0x8] sm:$0xff] %v145_v17  }
  0xe5   :  { %141 = vst [vmem:[%s212_s3] sm:$0xff] %v140_v18  }

// kernel: deep_res_lstm_actor_forward.18
= control target key start
LH: loop header
LB: loop body
LE: loop exit
PB: predicated region body
PF: predicated region fallthrough
CT: control target
= control target key end

     0   :  { %12 = vsyncpa [#allocation5], 0  ;;  %s1330_s0 = inlined_call_operand.vmem [shape: bf16[8,4,128], index: 0, kind: input, shape index: {}]   ;;  %s1331_s1 = inlined_call_operand.vmem [shape: f32[4,32], index: 1, kind: input, shape index: {}]   ;;  %s1332_s2 = inlined_call_operand.vmem [shape: f32[4,32], index: 2, kind: input, shape index: {}]   ;;  %s1333_s3 = inlined_call_operand.vmem [shape: bf16[32,128], index: 3, kind: input, shape index: {}]   ;;  %s1334_s4 = inlined_call_operand.vmem [shape: bf16[8,4,32], index: 4, kind: output, shape index: {0}]   ;;  %s1335_s5 = inlined_call_operand.hbm [shape: f32[4,32], index: 5, kind: output, shape index: {1}]   ;;  %s1336_s6 = inlined_call_operand.hbm [shape: f32[4,32], index: 6, kind: output, shape index: {2}]  }
   0x1   :  { %13 = vsyncpa [#allocation7], 0  ;;  %s1169_s21 = smov 0   ;;  %s1171_s22 = smov 0  }
   0x2   :  { %s1173_s23 = smov 0  }
   0x3 LB: > { %s885_s24 = sadd.s32 4294967295, %s1124_s23   ;;  %s28_s25 = sadd.s32 1, %s1120_s22  ;;  %s1124_s23 = sphi %s1173_s23, %s19_s23   ;;  %s1120_s22 = sphi %s1171_s22, %s1339_s22   ;;  %s1116_s21 = sphi %s1169_s21, %s1338_s21  }
   0x4   : > { %p29_p0 = scmp.ge.s32.totalorder %s28_s25, 2  ;;  %p891_p1 = scmp.ge.s32.totalorder %s1124_s23, 1 }
   0x5   : > { %p257_p2 = scmp.lt.s32.totalorder %s1124_s23, 3 }
   0x6   : > { %s1341_s25 = smov (%p29_p0, %s28_s25), 0 }
   0x7   : > { %p258_p3 = pnand %p891_p1, %p257_p2 }
   0x8   : > { %s892_s26 = sshll.u32 (!%p258_p3), %s1116_s21, 2  ;;  %p896_p5 = scmp.ne.s32.totalorder (!%p258_p3), %s1116_s21, 0 }
   0x9   : > { %261 = sbr.rel (%p258_p3) target bundleno = 2903 (0xb57), region = 36  ;;  %p302_p4 = scmp.lt.s32.totalorder (!%p258_p3), %s892_s26, 7 }
  0x10   : > { %s1343_s26 = smov (!%p302_p4, %s892_s26), 7  ;;  %331 = sbr.rel (%p896_p5) target bundleno = 23 (0x17), region = 40 }
  0x11   : > { %s893_s27 = sshll.u32 %s1343_s26, 1  ;;  %v332_v0 = vld [vmem:[%s1331_s1] sm:$0xf] (!%p896_p5)  ;;  %vm333_vm0 = vcmask (!%p896_p5), 257024  }
  0x12   : > { %s1194_s30 = scalar_lea.vmem %s1330_s0, %s893_s27  ;;  %s1199_s9 = scalar_lea.vmem %s1334_s4, %s893_s27  ;;  %v335_v1 = vld [vmem:[%s1332_s2] sm:$0xf] (!%p896_p5)  ;;  %334 = vst.msk [vmem:[#allocation2] sm:$0xf] (!%p896_p5), %vm333_vm0, %v332_v0 }
  0x13   : > { %336 = vst.msk [vmem:[#allocation3] sm:$0xf] (!%p896_p5), %vm333_vm0, %v335_v1 }
  0x17 PF: > { %v1008_v2 = vld [vmem:[%s1333_s3] sm:$0xff]   ;;  %v1126_v3 = vmov 0.0   ;;  %v1009_v4 = vld [vmem:[%s1333_s3 + $0x8] sm:$0xff]   ;;  %vm1127_vm1 = vmmov 0   ;;  %vm358_vm2 = vcmask 261120   ;;  %s1128_s18 = smov 64  }
  0x18   : > { %932 = vmatprep.subr.bf16.mxu0 %v1126_v3  ;;  %940 = vmatprep.subr.bf16.mxu1 %v1126_v3  ;;  %v343_v7 = vld [vmem:[%s1194_s30] sm:$0x3]  ;;  %s1129_s19 = smov 32   ;;  %v901_v31 = vld [vmem:[%s1194_s30 + $0x2] sm:$0x3]  ;;  %vm443_vm3 = vcmask 254976  }
  0x19   : > { %933 = vmatpush3.bf16.msra.mxu0 %v1008_v2  ;;  %936 = vmatprep.mubr.msk.bf16.mxu0 %vm1127_vm1, %v1126_v3  ;;  %v341_v5 = vld [vmem:[#allocation2] sm:$0xf]  ;;  %v344_v8 = vunpack.c.l.bf16 %v343_v7  ;;  %v447_v32 = vunpack.c.l.bf16 %v901_v31  ;;  %v905_v53 = vld [vmem:[%s1194_s30 + $0x4] sm:$0x3]  ;;  %s1131_s20 = smov 96   ;;  %vm710_vm4 = vcmask 257024  }
  0x1a   : > { %934 = vmatprep.subr.bf16.mxu0 %v1126_v3  ;;  %941 = vmatpush3.bf16.msra.mxu1 %v1008_v2  ;;  %v345_v6 = vpack.c.bf16 %v341_v5, %v341_v5  ;;  %v342_v15 = vld [vmem:[#allocation3] sm:$0xf]  ;;  %v534_v54 = vunpack.c.l.bf16 %v905_v53  ;;  %p913_p6 = scmp.ne.s32.totalorder %s1116_s21, 1 }
  0x1b   : > { %942 = vmatprep.subr.bf16.mxu1 %v1126_v3  ;;  %944 = vmatprep.mubr.msk.bf16.mxu1 %vm1127_vm1, %v1126_v3 }
  0x1d   : > { %935 = vmatpush3.bf16.msra.mxu0 %v1009_v4 }
  0x1e   : > { %943 = vmatpush3.bf16.msra.mxu1 %v1009_v4  ;;  %948 = vmatprep.subr.bf16.mxu0 %v1126_v3 }
  0x1f   : > { %956 = vmatprep.subr.bf16.mxu1 %v1126_v3 }
  0x20   : > { %937 = vmatmul.mubr.msk.bf16.vlgmr.msra.gmra.mrb[0].mxu0 %vm358_vm2, %v345_v6 }
  0x21   : > { %949 = vmatpush3.bf16.msra.mxu0 %v1008_v2  ;;  %952 = vmatprep.mubr.msk.bf16.mxu0 %vm1127_vm1, %v1126_v3 }
  0x22   : > { %950 = vmatprep.subr.bf16.mxu0 %v1126_v3 }
  0x25   : > { %951 = vmatpush3.bf16.msra.mxu0 %v1009_v4 }
  0xf3   : > { %v396_v9 = vpop.f32.mrb[0].mxu0 }
  0xf4   : > { %v402_v10 = vadd.f32 %v396_v9, %v344_v8  ;;  %v938_v11 = vpop.f32.mrb[1].mxu0 }
  0xf5   : > { %v399_v12 = vpop.f32.mrb[2].mxu0  ;;  %v909_v11 = vld [vmem:[%s1194_s30 + $0x6] sm:$0x3] }
  0xf6   : > { %1010 = vtanh.f32 %v402_v10  ;;  %v939_v13 = vpop.f32.mrb[3].mxu0  ;;  %v900_v16 = vmul.f32 -1.442695, %v402_v10  ;;  %v621_v12 = vunpack.c.l.bf16 %v909_v11 }
  0xf8   : > { %1012 = vpow2.f32 %v900_v16 }
 0x100   : > { %v1011_v14 = vpop.eup %1010 }
 0x101   : > { %416 = vrot.lane.b32.xlu0 %v1011_v14, %s1128_s18 }
 0x102   : > { %v1013_v17 = vpop.eup %1012 }
 0x103   : > { %v406_v18 = vadd.f32 1.0, %v1013_v17 }
 0x105   : > { %411 = vrot.lane.b32.xlu0 %v342_v15, %s1129_s19  ;;  %1014 = vrcp.f32 %v406_v18 }
 0x10f   : > { %v1015_v19 = vpop.eup %1014 }
 0x173   : > { %v417_v20 = vpop.permute.xlu0 %416 }
 0x174   : > { %v419_v21 = vmul.f32 %v1015_v19, %v417_v20 }
 0x176   : > { %421 = vrot.lane.b32.xlu1 %v419_v21, %s1129_s19 }
 0x177   : > { %v412_v22 = vpop.permute.xlu0 %411 }
 0x178   : > { %v414_v23 = vmul.f32 %v1015_v19, %v412_v22  ;;  %v1130_v22 = vmov 1983009808  }
 0x1e8   : > { %v422_v24 = vpop.permute.xlu1 %421 }
 0x1e9   : > { %v424_v25 = vadd.f32 %v422_v24, %v414_v23  ;;  %v434_v23 = vunpack.c.l.s4 %v1130_v22  ;;  %v436_v24 = vlaneseq }
 0x1eb   : > { %1016 = vtanh.f32 %v424_v25 }
 0x1f5   : > { %v1017_v26 = vpop.eup %1016 }
 0x1f6   : > { %427 = vrot.lane.b32.xlu1 %v1017_v26, %s1128_s18  ;;  %v437_v26 = vshrl.u32 %v436_v24, 7 }
 0x268   : > { %v428_v27 = vpop.permute.xlu1 %427 }
 0x269   : > { %v430_v28 = vmul.f32 %v1015_v19, %v428_v27 }
 0x26b   : > { %v1223_v29 = vpack.c.bf16 %v430_v28, %v430_v28 }
 0x26d   : > { %448 = vrot.lane.b32.xlu0 %v1223_v29, %s1129_s19 }
 0x2df   : > { %v449_v30 = vpop.permute.xlu0 %448 }
 0x2e0   : > { %945 = vmatmul.mubr.msk.bf16.vlgmr.msra.gmra.mrb[0].mxu1 %vm358_vm2, %v449_v30 }
 0x2e1   : > { %957 = vmatpush3.bf16.msra.mxu1 %v1008_v2  ;;  %960 = vmatprep.mubr.msk.bf16.mxu1 %vm1127_vm1, %v1126_v3 }
 0x2e2   : > { %958 = vmatprep.subr.bf16.mxu1 %v1126_v3 }
 0x2e5   : > { %959 = vmatpush3.bf16.msra.mxu1 %v1009_v4 }
 0x3b3   : > { %v487_v33 = vpop.f32.mrb[0].mxu1 }
 0x3b4   : > { %v493_v34 = vadd.f32 %v487_v33, %v447_v32  ;;  %v946_v35 = vpop.f32.mrb[1].mxu1 }
 0x3b5   : > { %v490_v36 = vpop.f32.mrb[2].mxu1 }
 0x3b6   : > { %1018 = vtanh.f32 %v493_v34  ;;  %v947_v37 = vpop.f32.mrb[3].mxu1  ;;  %v903_v39 = vmul.f32 -1.442695, %v493_v34 }
 0x3b8   : > { %1020 = vpow2.f32 %v903_v39 }
 0x3c0   : > { %v1019_v38 = vpop.eup %1018 }
 0x3c1   : > { %503 = vrot.lane.b32.xlu1 %v1019_v38, %s1128_s18 }
 0x3c2   : > { %v1021_v40 = vpop.eup %1020 }
 0x3c3   : > { %v497_v41 = vadd.f32 1.0, %v1021_v40 }
 0x3c5   : > { %1022 = vrcp.f32 %v497_v41 }
 0x3cf   : > { %v1023_v42 = vpop.eup %1022 }
 0x3d0   : > { %v501_v45 = vmul.f32 %v1023_v42, %v424_v25  ;;  %v435_v25 = vunpack.c.0.s8 %v434_v23 }
 0x3d2   : > { %v438_v30 = vsub.s32 %v435_v25, %v437_v26 }
 0x3d4   : > { %v439_v32 = vrot.slane %v1223_v29, %v438_v30 }
 0x433   : > { %v504_v43 = vpop.permute.xlu1 %503 }
 0x434   : > { %v506_v44 = vmul.f32 %v1023_v42, %v504_v43 }
 0x436   : > { %508 = vrot.lane.b32.xlu0 %v506_v44, %s1129_s19 }
 0x4a8   : > { %v509_v46 = vpop.permute.xlu0 %508 }
 0x4a9   : > { %v511_v47 = vadd.f32 %v509_v46, %v501_v45 }
 0x4ab   : > { %1024 = vtanh.f32 %v511_v47 }
 0x4b5   : > { %v1025_v48 = vpop.eup %1024 }
 0x4b6   : > { %514 = vrot.lane.b32.xlu1 %v1025_v48, %s1128_s18 }
 0x528   : > { %v515_v49 = vpop.permute.xlu1 %514 }
 0x529   : > { %v517_v50 = vmul.f32 %v1023_v42, %v515_v49 }
 0x52b   : > { %v1233_v51 = vpack.c.bf16 %v517_v50, %v517_v50 }
 0x52d   : > { %535 = vrot.lane.b32.xlu0 %v1233_v51, %s1129_s19  ;;  %v526_v29 = vrot.slane %v1233_v51, %v438_v30 }
 0x59f   : > { %v536_v52 = vpop.permute.xlu0 %535 }
 0x5a0   : > { %953 = vmatmul.mubr.msk.bf16.vlgmr.msra.gmra.mrb[4].mxu0 %vm358_vm2, %v536_v52 }
 0x673   : > { %v574_v55 = vpop.f32.mrb[4].mxu0 }
 0x674   : > { %v580_v56 = vadd.f32 %v574_v55, %v534_v54  ;;  %v954_v57 = vpop.f32.mrb[5].mxu0 }
 0x675   : > { %v577_v58 = vpop.f32.mrb[6].mxu0 }
 0x676   : > { %1026 = vtanh.f32 %v580_v56  ;;  %v955_v59 = vpop.f32.mrb[7].mxu0  ;;  %v907_v61 = vmul.f32 -1.442695, %v580_v56 }
 0x678   : > { %1028 = vpow2.f32 %v907_v61 }
 0x680   : > { %v1027_v60 = vpop.eup %1026 }
 0x681   : > { %590 = vrot.lane.b32.xlu1 %v1027_v60, %s1128_s18 }
 0x682   : > { %v1029_v62 = vpop.eup %1028 }
 0x683   : > { %v584_v63 = vadd.f32 1.0, %v1029_v62 }
 0x685   : > { %1030 = vrcp.f32 %v584_v63 }
 0x68f   : > { %v1031_v0 = vpop.eup %1030 }
 0x690   : > { %v588_v3 = vmul.f32 %v1031_v0, %v511_v47 }
 0x6f3   : > { %v591_v1 = vpop.permute.xlu1 %590 }
 0x6f4   : > { %v593_v2 = vmul.f32 %v1031_v0, %v591_v1 }
 0x6f6   : > { %595 = vrot.lane.b32.xlu0 %v593_v2, %s1129_s19 }
 0x768   : > { %v596_v4 = vpop.permute.xlu0 %595 }
 0x769   : > { %v598_v5 = vadd.f32 %v596_v4, %v588_v3 }
 0x76b   : > { %1032 = vtanh.f32 %v598_v5 }
 0x775   : > { %v1033_v6 = vpop.eup %1032 }
 0x776   : > { %601 = vrot.lane.b32.xlu1 %v1033_v6, %s1128_s18 }
 0x7e8   : > { %v602_v7 = vpop.permute.xlu1 %601 }
 0x7e9   : > { %v604_v8 = vmul.f32 %v1031_v0, %v602_v7 }
 0x7eb   : > { %v605_v9 = vpack.c.bf16 %v604_v8, %v604_v8 }
 0x7ed   : > { %622 = vrot.lane.b32.xlu0 %v605_v9, %s1129_s19  ;;  %v613_v33 = vrot.slane %v605_v9, %v438_v30 }
 0x85f   : > { %v623_v10 = vpop.permute.xlu0 %622 }
 0x860   : > { %961 = vmatmul.mubr.msk.bf16.vlgmr.msra.gmra.mrb[4].mxu1 %vm358_vm2, %v623_v10 }
 0x933   : > { %v661_v13 = vpop.f32.mrb[4].mxu1 }
 0x934   : > { %v667_v14 = vadd.f32 %v661_v13, %v621_v12  ;;  %v962_v15 = vpop.f32.mrb[5].mxu1 }
 0x935   : > { %v664_v16 = vpop.f32.mrb[6].mxu1 }
 0x936   : > { %1034 = vtanh.f32 %v667_v14  ;;  %v963_v17 = vpop.f32.mrb[7].mxu1  ;;  %v911_v19 = vmul.f32 -1.442695, %v667_v14 }
 0x938   : > { %1036 = vpow2.f32 %v911_v19 }
 0x940   : > { %v1035_v18 = vpop.eup %1034 }
 0x941   : > { %677 = vrot.lane.b32.xlu1 %v1035_v18, %s1128_s18 }
 0x942   : > { %v1037_v20 = vpop.eup %1036 }
 0x943   : > { %v671_v21 = vadd.f32 1.0, %v1037_v20 }
 0x945   : > { %1038 = vrcp.f32 %v671_v21 }
 0x94f   : > { %v1039_v27 = vpop.eup %1038 }
 0x950   : > { %v675_v34 = vmul.f32 %v1039_v27, %v598_v5 }
 0x9b3   : > { %v678_v28 = vpop.permute.xlu1 %677 }
 0x9b4   : > { %v680_v31 = vmul.f32 %v1039_v27, %v678_v28 }
 0x9b6   : > { %682 = vrot.lane.b32.xlu0 %v680_v31, %s1129_s19 }
 0x9ba   : > { %440 = vrot.lane.b32.xlu0 %v439_v32, %s1129_s19 }
 0x9be   : > { %614 = vrot.lane.b32.xlu0 %v613_v33, %s1129_s19 }
 0xa28   : > { %v683_v35 = vpop.permute.xlu0 %682 }
 0xa29   : > { %v685_v36 = vadd.f32 %v683_v35, %v675_v34 }
 0xa2b   : > { %1040 = vtanh.f32 %v685_v36 }
 0xa2c   : > { %v441_v37 = vpop.permute.xlu0 %440 }
 0xa2d   : > { %444 = vst.msk [vmem:[%s1199_s9] sm:$0x3] %vm443_vm3, %v441_v37 }
 0xa30   : > { %v615_v43 = vpop.permute.xlu0 %614 }
 0xa31   : > { %908 = vst.msk [vmem:[%s1199_s9 + $0x4] sm:$0x3] %vm443_vm3, %v615_v43 }
 0xa35   : > { %v1041_v38 = vpop.eup %1040 }
 0xa36   : > { %688 = vrot.lane.b32.xlu1 %v1041_v38, %s1128_s18 }
 0xa3a   : > { %527 = vrot.lane.b32.xlu1 %v526_v29, %s1129_s19 }
 0xaa8   : > { %v689_v39 = vpop.permute.xlu1 %688 }
 0xaa9   : > { %v691_v40 = vmul.f32 %v1039_v27, %v689_v39 }
 0xaab   : > { %v692_v41 = vpack.c.bf16 %v691_v40, %v691_v40  ;;  %707 = vrot.lane.b32.xlu0 %v691_v40, %s1129_s19 }
 0xaac   : > { %v528_v42 = vpop.permute.xlu1 %527 }
 0xaad   : > { %904 = vst.msk [vmem:[%s1199_s9 + $0x2] sm:$0x3] %vm443_vm3, %v528_v42  ;;  %v700_v44 = vrot.slane %v692_v41, %v438_v30 }
 0xaaf   : > { %701 = vrot.lane.b32.xlu1 %v700_v44, %s1129_s19 }
 0xab3   : > { %713 = vrot.lane.b32.xlu1 %v685_v36, %s1131_s20 }
 0xb1d   : > { %v708_v45 = vpop.permute.xlu0 %707 }
 0xb1e   : > { %711 = vst.msk [vmem:[#allocation2] sm:$0xf] %vm710_vm4, %v708_v45  ;;  %721 = vst.msk [vmem:[#allocation4] sm:$0xf] (!%p913_p6), %vm710_vm4, %v708_v45 }
 0xb20   : > { %720 = sbr.rel (%p913_p6) target bundleno = 2855 (0xb27), region = 44 }
 0xb21   : > { %v702_v46 = vpop.permute.xlu1 %701 }
 0xb22   : > { %912 = vst.msk [vmem:[%s1199_s9 + $0x6] sm:$0x3] %vm443_vm3, %v702_v46 }
 0xb25   : > { %v714_v47 = vpop.permute.xlu1 %713 }
 0xb26   : > { %716 = vst.msk [vmem:[#allocation3] sm:$0xf] %vm710_vm4, %v714_v47  ;;  %722 = vst.msk [vmem:[#allocation6] sm:$0xf] (!%p913_p6), %vm710_vm4, %v714_v47 }
 0xb27 PF: > { %p1266_p7 = scmp.eq.s32.totalorder %s885_s24, 1  ;;  %s1132_s27 = smov [#allocation4]  }
 0xb28   : > { %s744_s28 = sshll.u32 %s1132_s27, 4  ;;  %s1133_s29 = smov [#allocation6]   ;;  %s745_s28 = int_to_ptr.vmem [resolvable:$true] %s744_s28 }
 0xb29   : > { %s757_s30 = sshll.u32 %s1133_s29, 4  ;;  %s1042_s7 = scalar_lea.vmem %s745_s28, 64  ;;  %s1270_s30 = int_to_ptr.vmem [resolvable:$true] %s757_s30 }
 0xb2a   : > { %p1043_p8 = scmp.ne.s32.totalorder %s745_s28, %s1042_s7  ;;  %p1049_p11 = scmp.lt.s32.totalorder %s745_s28, %s745_s28 }
 0xb2b   : > { %p1050_p12 = scmp.lt.s32.totalorder %s1042_s7, %s1042_s7 }
 0xb2c   : > { %p1044_p9 = pnand %p1043_p8, %p1266_p7 }
 0xb2d   : > { %p1051_p13 = por %p1050_p12, %p1049_p11 }
 0xb2e   : > { %p1045_p10 = pneg %p1044_p9 }
 0xb30   : > { %p1052_p0 = pnand %p1051_p13, %p1045_p10 }
 0xb32   : > { %1055 = shalt.err (!%p1052_p0)
}
 0xb33   : > { %s1056_s8 = scalar_lea.hbm %s1335_s5, 64 }
 0xb34   : > { %p1057_p1 = scmp.ne.s32.totalorder %s1335_s5, %s1056_s8  ;;  %p1062_p4 = scmp.lt.u32.totalorder %s1056_s8, %s1335_s5 }
 0xb36   : > { %p1058_p2 = pnand %p1057_p1, %p1266_p7 }
 0xb38   : > { %p1059_p3 = pneg %p1058_p2 }
 0xb3a   : > { %p1064_p5 = pnand %p1062_p4, %p1059_p3 }
 0xb3c   : > { %1067 = shalt.err (!%p1064_p5)
}
 0xb3d   : > { %965 = dma.vmem_to_hbm [thread:$0]  (%p1266_p7), %s745_s28, 64, %s1335_s5, [#allocation5]  }
 0xb3e   : > { %s1068_s15 = scalar_lea.vmem %s1270_s30, 64  ;;  %p1075_p10 = scmp.lt.s32.totalorder %s1270_s30, %s1270_s30 }
 0xb3f   : > { %p1069_p6 = scmp.ne.s32.totalorder %s1270_s30, %s1068_s15  ;;  %p1076_p11 = scmp.lt.s32.totalorder %s1068_s15, %s1068_s15 }
 0xb41   : > { %p1070_p8 = pnand %p1069_p6, %p1266_p7  ;;  %p1077_p12 = por %p1076_p11, %p1075_p10 }
 0xb43   : > { %p1071_p9 = pneg %p1070_p8 }
 0xb45   : > { %p1078_p13 = pnand %p1077_p12, %p1071_p9 }
 0xb47   : > { %1081 = shalt.err (!%p1078_p13)
}
 0xb48   : > { %s1082_s18 = scalar_lea.hbm %s1336_s6, 64 }
 0xb49   : > { %p1083_p0 = scmp.ne.s32.totalorder %s1336_s6, %s1082_s18  ;;  %p1088_p3 = scmp.lt.u32.totalorder %s1082_s18, %s1336_s6 }
 0xb4b   : > { %p1084_p1 = pnand %p1083_p0, %p1266_p7 }
 0xb4d   : > { %p1085_p2 = pneg %p1084_p1 }
 0xb4f   : > { %p1090_p4 = pnand %p1088_p3, %p1085_p2 }
 0xb51   : > { %1093 = shalt.err (!%p1090_p4)
}
 0xb52   : > { %967 = dma.vmem_to_hbm [thread:$0]  (%p1266_p7), %s1270_s30, 64, %s1336_s6, [#allocation7]  }
 0xb53   : > { %1107 = dma.done.wait (%p1266_p7), [#allocation5], 64  }
 0xb54   : > { %1109 = vsyncadd (%p1266_p7), [#allocation5], 4294967232 }
 0xb55   : > { %1111 = dma.done.wait (%p1266_p7), [#allocation7], 64  }
 0xb56   : > { %1113 = vsyncadd (%p1266_p7), [#allocation7], 4294967232 }
 0xb57 PF: > { %s19_s23 = sadd.s32 1, %s1124_s23   ;;  %s1338_s21 = smov %s1120_s22 }
 0xb58   : > { %p16_p5 = scmp.ge.s32.totalorder %s19_s23, 4   ;;  %s1339_s22 = smov %s1341_s25 }
 0xb5a   :  { %18 = sbr.rel (!%p16_p5) target bundleno = 3 (0x3), region = 105 }
 0xb61   :  { %785 = vsyncpa [#allocation5], 1 }
 0xb62   :  { %787 = vsyncpa [#allocation5 + $0x1], 1 }
 0xb63   :  { %788 = vsyncpa [#allocation7], 1 }

// kernel: deep_res_lstm_actor_forward.23
= control target key start
LH: loop header
LB: loop body
LE: loop exit
PB: predicated region body
PF: predicated region fallthrough
CT: control target
= control target key end

     0   :  { %s527_s12 = smov 0   ;;  %s529_s13 = smov 0   ;;  %s575_s0 = inlined_call_operand.vmem [shape: f32[32,32], index: 0, kind: input, shape index: {}]   ;;  %s576_s1 = inlined_call_operand.vmem [shape: bf16[8,32,64], index: 1, kind: input, shape index: {}]   ;;  %s577_s2 = inlined_call_operand.vmem [shape: f32[8,1,64], index: 2, kind: input, shape index: {}]   ;;  %s578_s3 = inlined_call_operand.vmem [shape: f32[8,32,64], index: 3, kind: output, shape index: {}]  }
   0x1   :  { %s531_s14 = smov 0  }
   0x2 LB: > { %s22_s15 = sadd.s32 1, %s501_s13  ;;  %p431_p0 = scmp.ge.s32.totalorder %s505_s14, 1  ;;  %s505_s14 = sphi %s531_s14, %s13_s14   ;;  %s501_s13 = sphi %s529_s13, %s580_s13   ;;  %s497_s12 = sphi %s527_s12, %s579_s12  }
   0x3   : > { %p23_p1 = scmp.ge.s32.totalorder %s22_s15, 8  ;;  %p170_p2 = scmp.lt.s32.totalorder %s505_s14, 9 }
   0x5   : > { %s582_s15 = smov (%p23_p1, %s22_s15), 0  ;;  %p171_p3 = pnand %p431_p0, %p170_p2 }
   0x6   : > { %p212_p4 = scmp.lt.s32.totalorder (!%p171_p3), %s497_s12, 7  ;;  %v231_v0 = vld [vmem:[%s575_s0] sm:$0xff] (!%p171_p3)  ;;  %v232_v1 = vld [vmem:[%s575_s0 + $0x8] sm:$0xff] (!%p171_p3)  ;;  %vm260_vm0 = vcmask (!%p171_p3), 261120   ;;  %v233_v5 = vld [vmem:[%s575_s0 + $0x10] sm:$0xff] (!%p171_p3)  ;;  %vm316_vm1 = vcmask (!%p171_p3), 523264  }
   0x7   : > { %174 = sbr.rel (%p171_p3) target bundleno = 244 (0xf4), region = 32  ;;  %v235_v2 = vpack.c.bf16 (!%p171_p3), %v232_v1, %v231_v0  ;;  %v234_v6 = vld [vmem:[%s575_s0 + $0x18] sm:$0xff] (!%p171_p3) }
   0x8   : > { %v236_v7 = vpack.c.bf16 (!%p171_p3), %v234_v6, %v233_v5 }
   0x9   : > { %453 = vmatprep.mubr.msk.bf16.mxu0 (!%p171_p3), %vm260_vm0, %v235_v2 }
   0xe   : > { %s584_s12 = smov (!%p212_p4, %s497_s12), 7 }
   0xf   : > { %s443_s20 = sshll.u32 %s584_s12, 4  ;;  %s219_s30 = scalar_lea.vmem %s577_s2, %s584_s12 }
  0x10   : > { %s216_s23 = scalar_lea.vmem %s576_s1, %s443_s20  ;;  %s444_s4 = sshll.u32 %s584_s12, 5  ;;  %v436_v8 = vld [vmem:[%s219_s30] ss:$0 sm:$0xff] }
  0x11   : > { %v481_v3 = vld [vmem:[%s216_s23] sm:$0xff]   ;;  %v482_v4 = vld [vmem:[%s216_s23 + $0x8] sm:$0xff]   ;;  %s228_s7 = scalar_lea.vmem %s578_s3, %s444_s4 }
  0x12   : > { %449 = vmatprep.subr.bf16.mxu0 %v481_v3 }
  0x13   : > { %450 = vmatpush3.bf16.msra.mxu0 %v481_v3 }
  0x14   : > { %451 = vmatprep.subr.bf16.mxu0 %v482_v4 }
  0x17   : > { %452 = vmatpush3.bf16.msra.mxu0 %v482_v4 }
  0x1a   : > { %454 = vmatmul.mubr.msk.bf16.vlgmr.msra.gmra.mrb[0].mxu0 %vm260_vm0, %v236_v7 }
  0xed   : > { %v455_v9 = vpop.f32.mrb[0].mxu0 }
  0xee   : > { %v310_v10 = vadd.f32 %v455_v9, %v436_v8  ;;  %v301_v11 = vpop.f32.mrb[1].mxu0 }
  0xef   : > { %v302_v12 = vadd.f32 %v436_v8, %v301_v11  ;;  %v456_v13 = vpop.f32.mrb[2].mxu0 }
  0xf0   : > { %319 = vst.msk [vmem:[%s228_s7 + $0x10] sm:$0xff] %vm316_vm1, %v310_v10  ;;  %v313_v14 = vadd.f32 %v456_v13, %v436_v8  ;;  %v304_v15 = vpop.f32.mrb[3].mxu0 }
  0xf1   : > { %317 = vst.msk [vmem:[%s228_s7] sm:$0xff] %vm316_vm1, %v302_v12  ;;  %v305_v16 = vadd.f32 %v436_v8, %v304_v15 }
  0xf2   : > { %320 = vst.msk [vmem:[%s228_s7 + $0x18] sm:$0xff] %vm316_vm1, %v313_v14 }
  0xf3   : > { %318 = vst.msk [vmem:[%s228_s7 + $0x8] sm:$0xff] %vm316_vm1, %v305_v16 }
  0xf4 PF: > { %s13_s14 = sadd.s32 1, %s505_s14   ;;  %s579_s12 = smov %s501_s13 }
  0xf5   : > { %p10_p5 = scmp.ge.s32.totalorder %s13_s14, 10   ;;  %s580_s13 = smov %s582_s15 }
  0xf7   :  { %12 = sbr.rel (!%p10_p5) target bundleno = 2 (0x2), region = 68 }

// kernel: deep_res_lstm_actor_forward.24
= control target key start
LH: loop header
LB: loop body
LE: loop exit
PB: predicated region body
PF: predicated region fallthrough
CT: control target
= control target key end

     0   :  { %vm72_vm0 = vcmask 523264   ;;  %vm255_vm1 = vcmask 257024   ;;  %vm157_vm2 = vcmask 261120   ;;  %s439_s1 = inlined_call_operand.vmem [shape: bf16[64,32], index: 1, kind: input, shape index: {}]   ;;  %s440_s0 = inlined_call_operand.vmem [shape: f32[8,32,64], index: 0, kind: input, shape index: {}]   ;;  %s441_s3 = inlined_call_operand.vmem [shape: bf16[32,128], index: 3, kind: input, shape index: {}]   ;;  %s442_s2 = inlined_call_operand.vmem [shape: f32[1,32], index: 2, kind: input, shape index: {}]   ;;  %s443_s6 = inlined_call_operand.vmem [shape: bf16[32,32], index: 6, kind: output, shape index: {1}]   ;;  %s444_s4 = inlined_call_operand.vmem [shape: f32[1,128], index: 4, kind: input, shape index: {}]   ;;  %s445_s5 = inlined_call_operand.vmem [shape: f32[32,128], index: 5, kind: output, shape index: {0}]  }
   0x1   :  { %v322_v0 = vld [vmem:[%s439_s1] sm:$0xff]   ;;  %v323_v1 = vld [vmem:[%s439_s1 + $0x8] sm:$0xff]   ;;  %v324_v2 = vld [vmem:[%s439_s1 + $0x10] sm:$0xff]  }
   0x2   :  { %302 = vmatprep.subr.bf16.mxu0 %v322_v0  ;;  %v23_v3 = vld [vmem:[%s440_s0] sm:$0xff]  ;;  %v24_v4 = vld [vmem:[%s440_s0 + $0x8] sm:$0xff]  ;;  %v25_v8 = vld [vmem:[%s440_s0 + $0x10] sm:$0xff] }
   0x3   :  { %303 = vmatpush3.bf16.msra.mxu0 %v322_v0  ;;  %v27_v5 = vmax.f32 %v23_v3, 0.0  ;;  %v28_v6 = vmax.f32 %v24_v4, 0.0  ;;  %v26_v9 = vld [vmem:[%s440_s0 + $0x18] sm:$0xff]  ;;  %v29_v11 = vmax.f32 %v25_v8, 0.0  ;;  %v326_v14 = vld [vmem:[%s441_s3] sm:$0xff]   ;;  %v327_v15 = vld [vmem:[%s441_s3 + $0x8] sm:$0xff]  }
   0x4   :  { %304 = vmatprep.subr.bf16.mxu0 %v323_v1  ;;  %v325_v10 = vld [vmem:[%s439_s1 + $0x18] sm:$0xff]   ;;  %v30_v12 = vmax.f32 %v26_v9, 0.0  ;;  %314 = vmatprep.subr.bf16.mxu1 %v326_v14  ;;  %v268_v16 = vld [vmem:[%s442_s2] ss:$0 sm:$0xff] }
   0x5   :  { %v31_v7 = vpack.c.bf16 %v28_v6, %v27_v5  ;;  %315 = vmatpush3.bf16.msra.mxu1 %v326_v14  ;;  %v275_v35 = vld [vmem:[%s444_s4] ss:$0 sm:$0xff] }
   0x6   :  { %v32_v13 = vpack.c.bf16 %v30_v12, %v29_v11  ;;  %316 = vmatprep.subr.bf16.mxu1 %v327_v15 }
   0x7   :  { %305 = vmatpush3.bf16.msra.mxu0 %v323_v1  ;;  %310 = vmatprep.mubr.msk.bf16.mxu0 %vm72_vm0, %v31_v7 }
   0x8   :  { %306 = vmatprep.subr.bf16.mxu0 %v324_v2 }
   0x9   :  { %317 = vmatpush3.bf16.msra.mxu1 %v327_v15 }
   0xb   :  { %307 = vmatpush3.bf16.msra.mxu0 %v324_v2 }
   0xc   :  { %308 = vmatprep.subr.bf16.mxu0 %v325_v10 }
   0xf   :  { %309 = vmatpush3.bf16.msra.mxu0 %v325_v10 }
  0x12   :  { %311 = vmatmul.mubr.msk.bf16.vlgmr.msra.gmra.mrb[0].mxu0 %vm72_vm0, %v32_v13 }
  0xe5   :  { %v312_v17 = vpop.f32.mrb[0].mxu0 }
  0xe6   :  { %v122_v18 = vadd.f32 %v312_v17, %v268_v16  ;;  %v113_v19 = vpop.f32.mrb[1].mxu0 }
  0xe7   :  { %v114_v20 = vadd.f32 %v268_v16, %v113_v19  ;;  %v313_v21 = vpop.f32.mrb[2].mxu0 }
  0xe8   :  { %v130_v22 = vmax.f32 %v122_v18, 0.0  ;;  %v125_v23 = vadd.f32 %v313_v21, %v268_v16  ;;  %v116_v24 = vpop.f32.mrb[3].mxu0 }
  0xe9   :  { %v128_v25 = vmax.f32 %v114_v20, 0.0  ;;  %v117_v26 = vadd.f32 %v268_v16, %v116_v24 }
  0xea   :  { %v290_v27 = vpack.c.bf16 %v130_v22, %v130_v22  ;;  %v131_v28 = vmax.f32 %v125_v23, 0.0 }
  0xeb   :  { %v288_v29 = vpack.c.bf16 %v128_v25, %v128_v25  ;;  %v129_v30 = vmax.f32 %v117_v26, 0.0 }
  0xec   :  { %258 = vst.msk [vmem:[%s443_s6 + $0x8] sm:$0xf] %vm255_vm1, %v290_v27  ;;  %v133_v31 = vpack.c.bf16 %v131_v28, %v130_v22  ;;  %v291_v32 = vpack.c.bf16 %v131_v28, %v131_v28 }
  0xed   :  { %256 = vst.msk [vmem:[%s443_s6] sm:$0xf] %vm255_vm1, %v288_v29  ;;  %v289_v33 = vpack.c.bf16 %v129_v30, %v129_v30  ;;  %v132_v34 = vpack.c.bf16 %v129_v30, %v128_v25 }
  0xee   :  { %259 = vst.msk [vmem:[%s443_s6 + $0xc] sm:$0xf] %vm255_vm1, %v291_v32 }
  0xef   :  { %257 = vst.msk [vmem:[%s443_s6 + $0x4] sm:$0xf] %vm255_vm1, %v289_v33  ;;  %318 = vmatprep.mubr.msk.bf16.mxu1 %vm157_vm2, %v132_v34 }
  0xf0   :  { %319 = vmatmul.mubr.msk.bf16.vlgmr.msra.gmra.mrb[0].mxu1 %vm157_vm2, %v133_v31 }
 0x1c3   :  { %v320_v36 = vpop.f32.mrb[0].mxu1 }
 0x1c4   :  { %v207_v37 = vadd.f32 %v320_v36, %v275_v35  ;;  %v198_v38 = vpop.f32.mrb[1].mxu1 }
 0x1c5   :  { %v199_v39 = vadd.f32 %v275_v35, %v198_v38  ;;  %v321_v40 = vpop.f32.mrb[2].mxu1 }
 0x1c6   :  { %v282_v41 = vmul.f32 -1.442695, %v207_v37  ;;  %v210_v42 = vadd.f32 %v321_v40, %v275_v35  ;;  %v201_v43 = vpop.f32.mrb[3].mxu1 }
 0x1c7   :  { %v280_v44 = vmul.f32 -1.442695, %v199_v39  ;;  %v202_v45 = vadd.f32 %v275_v35, %v201_v43 }
 0x1c8   :  { %328 = vpow2.f32 %v282_v41  ;;  %v283_v46 = vmul.f32 -1.442695, %v210_v42 }
 0x1c9   :  { %330 = vpow2.f32 %v280_v44  ;;  %v281_v47 = vmul.f32 -1.442695, %v202_v45 }
 0x1ca   :  { %332 = vpow2.f32 %v283_v46 }
 0x1cb   :  { %334 = vpow2.f32 %v281_v47 }
 0x1d2   :  { %v329_v48 = vpop.eup %328 }
 0x1d3   :  { %v331_v49 = vpop.eup %330  ;;  %v227_v50 = vadd.f32 1.0, %v329_v48 }
 0x1d4   :  { %v333_v51 = vpop.eup %332  ;;  %v225_v52 = vadd.f32 1.0, %v331_v49 }
 0x1d5   :  { %v335_v53 = vpop.eup %334  ;;  %336 = vrcp.f32 %v227_v50  ;;  %v228_v54 = vadd.f32 1.0, %v333_v51 }
 0x1d6   :  { %338 = vrcp.f32 %v225_v52  ;;  %v226_v55 = vadd.f32 1.0, %v335_v53 }
 0x1d7   :  { %340 = vrcp.f32 %v228_v54 }
 0x1d8   :  { %342 = vrcp.f32 %v226_v55 }
 0x1df   :  { %v337_v56 = vpop.eup %336 }
 0x1e0   :  { %v339_v57 = vpop.eup %338  ;;  %239 = vst [vmem:[%s445_s5 + $0x10] sm:$0xff] %v337_v56 }
 0x1e1   :  { %v341_v58 = vpop.eup %340  ;;  %237 = vst [vmem:[%s445_s5] sm:$0xff] %v339_v57 }
 0x1e2   :  { %v343_v59 = vpop.eup %342  ;;  %240 = vst [vmem:[%s445_s5 + $0x18] sm:$0xff] %v341_v58 }
 0x1e3   :  { %238 = vst [vmem:[%s445_s5 + $0x8] sm:$0xff] %v343_v59 }

// kernel: deep_res_lstm_actor_forward.27
= control target key start
LH: loop header
LB: loop body
LE: loop exit
PB: predicated region body
PF: predicated region fallthrough
CT: control target
= control target key end

     0   :  { %vm66_vm0 = vcmask 261120   ;;  %vm171_vm1 = vcmask 523264   ;;  %vm353_vm2 = vcmask 257024   ;;  %s589_s2 = inlined_call_operand.vmem [shape: bf16[32,64], index: 2, kind: input, shape index: {}]   ;;  %s590_s1 = inlined_call_operand.vmem [shape: bf16[32,32], index: 1, kind: input, shape index: {}]   ;;  %s591_s3 = inlined_call_operand.vmem [shape: bf16[64,32], index: 3, kind: input, shape index: {}]   ;;  %s592_s0 = inlined_call_operand.vmem [shape: f32[8,32,64], index: 0, kind: input, shape index: {}]   ;;  %s593_s5 = inlined_call_operand.vmem [shape: bf16[32,128], index: 5, kind: input, shape index: {}]   ;;  %s594_s4 = inlined_call_operand.vmem [shape: f32[1,32], index: 4, kind: input, shape index: {}]   ;;  %s595_s8 = inlined_call_operand.vmem [shape: bf16[32,32], index: 8, kind: output, shape index: {1}]   ;;  %s596_s6 = inlined_call_operand.vmem [shape: f32[1,128], index: 6, kind: input, shape index: {}]   ;;  %s597_s7 = inlined_call_operand.vmem [shape: f32[32,128], index: 7, kind: output, shape index: {0}]  }
   0x1   :  { %v442_v0 = vld [vmem:[%s589_s2] sm:$0xff]   ;;  %v443_v1 = vld [vmem:[%s589_s2 + $0x8] sm:$0xff]   ;;  %v448_v6 = vld [vmem:[%s591_s3 + $0x10] sm:$0xff]  }
   0x2   :  { %414 = vmatprep.subr.bf16.mxu0 %v442_v0  ;;  %v444_v2 = vld [vmem:[%s590_s1] sm:$0xff]   ;;  %v447_v4 = vld [vmem:[%s591_s3 + $0x8] sm:$0xff]   ;;  %v449_v7 = vld [vmem:[%s591_s3 + $0x18] sm:$0xff]  }
   0x3   :  { %415 = vmatpush3.bf16.msra.mxu0 %v442_v0  ;;  %418 = vmatprep.mubr.msk.bf16.mxu0 %vm66_vm0, %v444_v2  ;;  %v446_v3 = vld [vmem:[%s591_s3] sm:$0xff]   ;;  %v445_v5 = vld [vmem:[%s590_s1 + $0x8] sm:$0xff]   ;;  %v368_v8 = vld [vmem:[%s592_s0 + $0x70] sm:$0xff] }
   0x4   :  { %416 = vmatprep.subr.bf16.mxu0 %v443_v1  ;;  %422 = vmatprep.subr.bf16.mxu1 %v446_v3  ;;  %v366_v9 = vld [vmem:[%s592_s0 + $0x60] sm:$0xff]  ;;  %v369_v11 = vld [vmem:[%s592_s0 + $0x78] sm:$0xff]  ;;  %v367_v14 = vld [vmem:[%s592_s0 + $0x68] sm:$0xff] }
   0x5   :  { %423 = vmatpush3.bf16.msra.mxu1 %v446_v3  ;;  %v450_v26 = vld [vmem:[%s593_s5] sm:$0xff]   ;;  %v451_v27 = vld [vmem:[%s593_s5 + $0x8] sm:$0xff]  }
   0x6   :  { %424 = vmatprep.subr.bf16.mxu1 %v447_v4  ;;  %v376_v28 = vld [vmem:[%s594_s4] ss:$0 sm:$0xff] }
   0x7   :  { %417 = vmatpush3.bf16.msra.mxu0 %v443_v1  ;;  %v383_v47 = vld [vmem:[%s596_s6] ss:$0 sm:$0xff] }
   0x8   :  { %434 = vmatprep.subr.bf16.mxu0 %v450_v26 }
   0x9   :  { %425 = vmatpush3.bf16.msra.mxu1 %v447_v4 }
   0xa   :  { %419 = vmatmul.mubr.msk.bf16.vlgmr.msra.gmra.mrb[0].mxu0 %vm66_vm0, %v445_v5  ;;  %426 = vmatprep.subr.bf16.mxu1 %v448_v6 }
   0xb   :  { %435 = vmatpush3.bf16.msra.mxu0 %v450_v26 }
   0xc   :  { %436 = vmatprep.subr.bf16.mxu0 %v451_v27 }
   0xd   :  { %427 = vmatpush3.bf16.msra.mxu1 %v448_v6 }
   0xe   :  { %428 = vmatprep.subr.bf16.mxu1 %v449_v7 }
   0xf   :  { %437 = vmatpush3.bf16.msra.mxu0 %v451_v27 }
  0x11   :  { %429 = vmatpush3.bf16.msra.mxu1 %v449_v7 }
  0xdd   :  { %v420_v10 = vpop.f32.mrb[0].mxu0 }
  0xde   :  { %v124_v12 = vadd.f32 %v420_v10, %v368_v8  ;;  %v107_v13 = vpop.f32.mrb[1].mxu0 }
  0xdf   :  { %v122_v15 = vadd.f32 %v366_v9, %v107_v13  ;;  %v421_v16 = vpop.f32.mrb[2].mxu0 }
  0xe0   :  { %v125_v17 = vadd.f32 %v421_v16, %v369_v11  ;;  %v110_v18 = vpop.f32.mrb[3].mxu0  ;;  %v128_v20 = vmax.f32 %v124_v12, 0.0 }
  0xe1   :  { %v123_v19 = vadd.f32 %v367_v14, %v110_v18  ;;  %v126_v22 = vmax.f32 %v122_v15, 0.0 }
  0xe2   :  { %v129_v21 = vmax.f32 %v125_v17, 0.0 }
  0xe3   :  { %v127_v23 = vmax.f32 %v123_v19, 0.0 }
  0xe4   :  { %v131_v24 = vpack.c.bf16 %v129_v21, %v128_v20 }
  0xe5   :  { %v130_v25 = vpack.c.bf16 %v127_v23, %v126_v22 }
  0xe7   :  { %430 = vmatprep.mubr.msk.bf16.mxu1 %vm171_vm1, %v130_v25 }
  0xe8   :  { %431 = vmatmul.mubr.msk.bf16.vlgmr.msra.gmra.mrb[0].mxu1 %vm171_vm1, %v131_v24 }
 0x1bb   :  { %v432_v29 = vpop.f32.mrb[0].mxu1 }
 0x1bc   :  { %v221_v30 = vadd.f32 %v432_v29, %v376_v28  ;;  %v212_v31 = vpop.f32.mrb[1].mxu1 }
 0x1bd   :  { %v213_v32 = vadd.f32 %v376_v28, %v212_v31  ;;  %v433_v33 = vpop.f32.mrb[2].mxu1 }
 0x1be   :  { %v229_v34 = vmax.f32 %v221_v30, 0.0  ;;  %v224_v35 = vadd.f32 %v433_v33, %v376_v28  ;;  %v215_v36 = vpop.f32.mrb[3].mxu1 }
 0x1bf   :  { %v227_v37 = vmax.f32 %v213_v32, 0.0  ;;  %v216_v38 = vadd.f32 %v376_v28, %v215_v36 }
 0x1c0   :  { %v398_v39 = vpack.c.bf16 %v229_v34, %v229_v34  ;;  %v230_v40 = vmax.f32 %v224_v35, 0.0 }
 0x1c1   :  { %v396_v41 = vpack.c.bf16 %v227_v37, %v227_v37  ;;  %v228_v42 = vmax.f32 %v216_v38, 0.0 }
 0x1c2   :  { %356 = vst.msk [vmem:[%s595_s8 + $0x8] sm:$0xf] %vm353_vm2, %v398_v39  ;;  %v232_v43 = vpack.c.bf16 %v230_v40, %v229_v34  ;;  %v399_v44 = vpack.c.bf16 %v230_v40, %v230_v40 }
 0x1c3   :  { %354 = vst.msk [vmem:[%s595_s8] sm:$0xf] %vm353_vm2, %v396_v41  ;;  %v231_v45 = vpack.c.bf16 %v228_v42, %v227_v37  ;;  %v397_v46 = vpack.c.bf16 %v228_v42, %v228_v42 }
 0x1c4   :  { %357 = vst.msk [vmem:[%s595_s8 + $0xc] sm:$0xf] %vm353_vm2, %v399_v44 }
 0x1c5   :  { %355 = vst.msk [vmem:[%s595_s8 + $0x4] sm:$0xf] %vm353_vm2, %v397_v46  ;;  %438 = vmatprep.mubr.msk.bf16.mxu0 %vm66_vm0, %v231_v45 }
 0x1c6   :  { %439 = vmatmul.mubr.msk.bf16.vlgmr.msra.gmra.mrb[4].mxu0 %vm66_vm0, %v232_v43 }
 0x299   :  { %v440_v48 = vpop.f32.mrb[4].mxu0 }
 0x29a   :  { %v305_v49 = vadd.f32 %v440_v48, %v383_v47  ;;  %v296_v50 = vpop.f32.mrb[5].mxu0 }
 0x29b   :  { %v297_v51 = vadd.f32 %v383_v47, %v296_v50  ;;  %v441_v52 = vpop.f32.mrb[6].mxu0 }
 0x29c   :  { %v390_v53 = vmul.f32 -1.442695, %v305_v49  ;;  %v308_v54 = vadd.f32 %v441_v52, %v383_v47  ;;  %v299_v55 = vpop.f32.mrb[7].mxu0 }
 0x29d   :  { %v388_v56 = vmul.f32 -1.442695, %v297_v51  ;;  %v300_v57 = vadd.f32 %v383_v47, %v299_v55 }
 0x29e   :  { %452 = vpow2.f32 %v390_v53  ;;  %v391_v58 = vmul.f32 -1.442695, %v308_v54 }
 0x29f   :  { %454 = vpow2.f32 %v388_v56  ;;  %v389_v59 = vmul.f32 -1.442695, %v300_v57 }
 0x2a0   :  { %456 = vpow2.f32 %v391_v58 }
 0x2a1   :  { %458 = vpow2.f32 %v389_v59 }
 0x2a8   :  { %v453_v60 = vpop.eup %452 }
 0x2a9   :  { %v455_v61 = vpop.eup %454  ;;  %v325_v62 = vadd.f32 1.0, %v453_v60 }
 0x2aa   :  { %v457_v63 = vpop.eup %456  ;;  %v323_v0 = vadd.f32 1.0, %v455_v61 }
 0x2ab   :  { %v459_v1 = vpop.eup %458  ;;  %460 = vrcp.f32 %v325_v62  ;;  %v326_v2 = vadd.f32 1.0, %v457_v63 }
 0x2ac   :  { %462 = vrcp.f32 %v323_v0  ;;  %v324_v3 = vadd.f32 1.0, %v459_v1 }
 0x2ad   :  { %464 = vrcp.f32 %v326_v2 }
 0x2ae   :  { %466 = vrcp.f32 %v324_v3 }
 0x2b5   :  { %v461_v4 = vpop.eup %460 }
 0x2b6   :  { %v463_v5 = vpop.eup %462  ;;  %337 = vst [vmem:[%s597_s7 + $0x10] sm:$0xff] %v461_v4 }
 0x2b7   :  { %v465_v6 = vpop.eup %464  ;;  %335 = vst [vmem:[%s597_s7] sm:$0xff] %v463_v5 }
 0x2b8   :  { %v467_v7 = vpop.eup %466  ;;  %338 = vst [vmem:[%s597_s7 + $0x18] sm:$0xff] %v465_v6 }
 0x2b9   :  { %336 = vst [vmem:[%s597_s7 + $0x8] sm:$0xff] %v467_v7 }

// kernel: deep_res_lstm_actor_forward.26
= control target key start
LH: loop header
LB: loop body
LE: loop exit
PB: predicated region body
PF: predicated region fallthrough
CT: control target
= control target key end

     0   :  { %vm66_vm0 = vcmask 261120   ;;  %vm171_vm1 = vcmask 523264   ;;  %vm353_vm2 = vcmask 257024   ;;  %s589_s2 = inlined_call_operand.vmem [shape: bf16[32,64], index: 2, kind: input, shape index: {}]   ;;  %s590_s1 = inlined_call_operand.vmem [shape: bf16[32,32], index: 1, kind: input, shape index: {}]   ;;  %s591_s3 = inlined_call_operand.vmem [shape: bf16[64,32], index: 3, kind: input, shape index: {}]   ;;  %s592_s0 = inlined_call_operand.vmem [shape: f32[8,32,64], index: 0, kind: input, shape index: {}]   ;;  %s593_s5 = inlined_call_operand.vmem [shape: bf16[32,128], index: 5, kind: input, shape index: {}]   ;;  %s594_s4 = inlined_call_operand.vmem [shape: f32[1,32], index: 4, kind: input, shape index: {}]   ;;  %s595_s8 = inlined_call_operand.vmem [shape: bf16[32,32], index: 8, kind: output, shape index: {1}]   ;;  %s596_s6 = inlined_call_operand.vmem [shape: f32[1,128], index: 6, kind: input, shape index: {}]   ;;  %s597_s7 = inlined_call_operand.vmem [shape: f32[32,128], index: 7, kind: output, shape index: {0}]  }
   0x1   :  { %v442_v0 = vld [vmem:[%s589_s2] sm:$0xff]   ;;  %v443_v1 = vld [vmem:[%s589_s2 + $0x8] sm:$0xff]   ;;  %v448_v6 = vld [vmem:[%s591_s3 + $0x10] sm:$0xff]  }
   0x2   :  { %414 = vmatprep.subr.bf16.mxu0 %v442_v0  ;;  %v444_v2 = vld [vmem:[%s590_s1] sm:$0xff]   ;;  %v447_v4 = vld [vmem:[%s591_s3 + $0x8] sm:$0xff]   ;;  %v449_v7 = vld [vmem:[%s591_s3 + $0x18] sm:$0xff]  }
   0x3   :  { %415 = vmatpush3.bf16.msra.mxu0 %v442_v0  ;;  %418 = vmatprep.mubr.msk.bf16.mxu0 %vm66_vm0, %v444_v2  ;;  %v446_v3 = vld [vmem:[%s591_s3] sm:$0xff]   ;;  %v445_v5 = vld [vmem:[%s590_s1 + $0x8] sm:$0xff]   ;;  %v368_v8 = vld [vmem:[%s592_s0 + $0x50] sm:$0xff] }
   0x4   :  { %416 = vmatprep.subr.bf16.mxu0 %v443_v1  ;;  %422 = vmatprep.subr.bf16.mxu1 %v446_v3  ;;  %v366_v9 = vld [vmem:[%s592_s0 + $0x40] sm:$0xff]  ;;  %v369_v11 = vld [vmem:[%s592_s0 + $0x58] sm:$0xff]  ;;  %v367_v14 = vld [vmem:[%s592_s0 + $0x48] sm:$0xff] }
   0x5   :  { %423 = vmatpush3.bf16.msra.mxu1 %v446_v3  ;;  %v450_v26 = vld [vmem:[%s593_s5] sm:$0xff]   ;;  %v451_v27 = vld [vmem:[%s593_s5 + $0x8] sm:$0xff]  }
   0x6   :  { %424 = vmatprep.subr.bf16.mxu1 %v447_v4  ;;  %v376_v28 = vld [vmem:[%s594_s4] ss:$0 sm:$0xff] }
   0x7   :  { %417 = vmatpush3.bf16.msra.mxu0 %v443_v1  ;;  %v383_v47 = vld [vmem:[%s596_s6] ss:$0 sm:$0xff] }
   0x8   :  { %434 = vmatprep.subr.bf16.mxu0 %v450_v26 }
   0x9   :  { %425 = vmatpush3.bf16.msra.mxu1 %v447_v4 }
   0xa   :  { %419 = vmatmul.mubr.msk.bf16.vlgmr.msra.gmra.mrb[0].mxu0 %vm66_vm0, %v445_v5  ;;  %426 = vmatprep.subr.bf16.mxu1 %v448_v6 }
   0xb   :  { %435 = vmatpush3.bf16.msra.mxu0 %v450_v26 }
   0xc   :  { %436 = vmatprep.subr.bf16.mxu0 %v451_v27 }
   0xd   :  { %427 = vmatpush3.bf16.msra.mxu1 %v448_v6 }
   0xe   :  { %428 = vmatprep.subr.bf16.mxu1 %v449_v7 }
   0xf   :  { %437 = vmatpush3.bf16.msra.mxu0 %v451_v27 }
  0x11   :  { %429 = vmatpush3.bf16.msra.mxu1 %v449_v7 }
  0xdd   :  { %v420_v10 = vpop.f32.mrb[0].mxu0 }
  0xde   :  { %v124_v12 = vadd.f32 %v420_v10, %v368_v8  ;;  %v107_v13 = vpop.f32.mrb[1].mxu0 }
  0xdf   :  { %v122_v15 = vadd.f32 %v366_v9, %v107_v13  ;;  %v421_v16 = vpop.f32.mrb[2].mxu0 }
  0xe0   :  { %v125_v17 = vadd.f32 %v421_v16, %v369_v11  ;;  %v110_v18 = vpop.f32.mrb[3].mxu0  ;;  %v128_v20 = vmax.f32 %v124_v12, 0.0 }
  0xe1   :  { %v123_v19 = vadd.f32 %v367_v14, %v110_v18  ;;  %v126_v22 = vmax.f32 %v122_v15, 0.0 }
  0xe2   :  { %v129_v21 = vmax.f32 %v125_v17, 0.0 }
  0xe3   :  { %v127_v23 = vmax.f32 %v123_v19, 0.0 }
  0xe4   :  { %v131_v24 = vpack.c.bf16 %v129_v21, %v128_v20 }
  0xe5   :  { %v130_v25 = vpack.c.bf16 %v127_v23, %v126_v22 }
  0xe7   :  { %430 = vmatprep.mubr.msk.bf16.mxu1 %vm171_vm1, %v130_v25 }
  0xe8   :  { %431 = vmatmul.mubr.msk.bf16.vlgmr.msra.gmra.mrb[0].mxu1 %vm171_vm1, %v131_v24 }
 0x1bb   :  { %v432_v29 = vpop.f32.mrb[0].mxu1 }
 0x1bc   :  { %v221_v30 = vadd.f32 %v432_v29, %v376_v28  ;;  %v212_v31 = vpop.f32.mrb[1].mxu1 }
 0x1bd   :  { %v213_v32 = vadd.f32 %v376_v28, %v212_v31  ;;  %v433_v33 = vpop.f32.mrb[2].mxu1 }
 0x1be   :  { %v229_v34 = vmax.f32 %v221_v30, 0.0  ;;  %v224_v35 = vadd.f32 %v433_v33, %v376_v28  ;;  %v215_v36 = vpop.f32.mrb[3].mxu1 }
 0x1bf   :  { %v227_v37 = vmax.f32 %v213_v32, 0.0  ;;  %v216_v38 = vadd.f32 %v376_v28, %v215_v36 }
 0x1c0   :  { %v398_v39 = vpack.c.bf16 %v229_v34, %v229_v34  ;;  %v230_v40 = vmax.f32 %v224_v35, 0.0 }
 0x1c1   :  { %v396_v41 = vpack.c.bf16 %v227_v37, %v227_v37  ;;  %v228_v42 = vmax.f32 %v216_v38, 0.0 }
 0x1c2   :  { %356 = vst.msk [vmem:[%s595_s8 + $0x8] sm:$0xf] %vm353_vm2, %v398_v39  ;;  %v232_v43 = vpack.c.bf16 %v230_v40, %v229_v34  ;;  %v399_v44 = vpack.c.bf16 %v230_v40, %v230_v40 }
 0x1c3   :  { %354 = vst.msk [vmem:[%s595_s8] sm:$0xf] %vm353_vm2, %v396_v41  ;;  %v231_v45 = vpack.c.bf16 %v228_v42, %v227_v37  ;;  %v397_v46 = vpack.c.bf16 %v228_v42, %v228_v42 }
 0x1c4   :  { %357 = vst.msk [vmem:[%s595_s8 + $0xc] sm:$0xf] %vm353_vm2, %v399_v44 }
 0x1c5   :  { %355 = vst.msk [vmem:[%s595_s8 + $0x4] sm:$0xf] %vm353_vm2, %v397_v46  ;;  %438 = vmatprep.mubr.msk.bf16.mxu0 %vm66_vm0, %v231_v45 }
 0x1c6   :  { %439 = vmatmul.mubr.msk.bf16.vlgmr.msra.gmra.mrb[4].mxu0 %vm66_vm0, %v232_v43 }
 0x299   :  { %v440_v48 = vpop.f32.mrb[4].mxu0 }
 0x29a   :  { %v305_v49 = vadd.f32 %v440_v48, %v383_v47  ;;  %v296_v50 = vpop.f32.mrb[5].mxu0 }
 0x29b   :  { %v297_v51 = vadd.f32 %v383_v47, %v296_v50  ;;  %v441_v52 = vpop.f32.mrb[6].mxu0 }
 0x29c   :  { %v390_v53 = vmul.f32 -1.442695, %v305_v49  ;;  %v308_v54 = vadd.f32 %v441_v52, %v383_v47  ;;  %v299_v55 = vpop.f32.mrb[7].mxu0 }
 0x29d   :  { %v388_v56 = vmul.f32 -1.442695, %v297_v51  ;;  %v300_v57 = vadd.f32 %v383_v47, %v299_v55 }
 0x29e   :  { %452 = vpow2.f32 %v390_v53  ;;  %v391_v58 = vmul.f32 -1.442695, %v308_v54 }
 0x29f   :  { %454 = vpow2.f32 %v388_v56  ;;  %v389_v59 = vmul.f32 -1.442695, %v300_v57 }
 0x2a0   :  { %456 = vpow2.f32 %v391_v58 }
 0x2a1   :  { %458 = vpow2.f32 %v389_v59 }
 0x2a8   :  { %v453_v60 = vpop.eup %452 }
 0x2a9   :  { %v455_v61 = vpop.eup %454  ;;  %v325_v62 = vadd.f32 1.0, %v453_v60 }
 0x2aa   :  { %v457_v63 = vpop.eup %456  ;;  %v323_v0 = vadd.f32 1.0, %v455_v61 }
 0x2ab   :  { %v459_v1 = vpop.eup %458  ;;  %460 = vrcp.f32 %v325_v62  ;;  %v326_v2 = vadd.f32 1.0, %v457_v63 }
 0x2ac   :  { %462 = vrcp.f32 %v323_v0  ;;  %v324_v3 = vadd.f32 1.0, %v459_v1 }
 0x2ad   :  { %464 = vrcp.f32 %v326_v2 }
 0x2ae   :  { %466 = vrcp.f32 %v324_v3 }
 0x2b5   :  { %v461_v4 = vpop.eup %460 }
 0x2b6   :  { %v463_v5 = vpop.eup %462  ;;  %337 = vst [vmem:[%s597_s7 + $0x10] sm:$0xff] %v461_v4 }
 0x2b7   :  { %v465_v6 = vpop.eup %464  ;;  %335 = vst [vmem:[%s597_s7] sm:$0xff] %v463_v5 }
 0x2b8   :  { %v467_v7 = vpop.eup %466  ;;  %338 = vst [vmem:[%s597_s7 + $0x18] sm:$0xff] %v465_v6 }
 0x2b9   :  { %336 = vst [vmem:[%s597_s7 + $0x8] sm:$0xff] %v467_v7 }

// kernel: deep_res_lstm_actor_forward.25
= control target key start
LH: loop header
LB: loop body
LE: loop exit
PB: predicated region body
PF: predicated region fallthrough
CT: control target
= control target key end

     0   :  { %vm66_vm0 = vcmask 261120   ;;  %vm171_vm1 = vcmask 523264   ;;  %vm353_vm2 = vcmask 257024   ;;  %s589_s2 = inlined_call_operand.vmem [shape: bf16[32,64], index: 2, kind: input, shape index: {}]   ;;  %s590_s1 = inlined_call_operand.vmem [shape: bf16[32,32], index: 1, kind: input, shape index: {}]   ;;  %s591_s3 = inlined_call_operand.vmem [shape: bf16[64,32], index: 3, kind: input, shape index: {}]   ;;  %s592_s0 = inlined_call_operand.vmem [shape: f32[8,32,64], index: 0, kind: input, shape index: {}]   ;;  %s593_s5 = inlined_call_operand.vmem [shape: bf16[32,128], index: 5, kind: input, shape index: {}]   ;;  %s594_s4 = inlined_call_operand.vmem [shape: f32[1,32], index: 4, kind: input, shape index: {}]   ;;  %s595_s8 = inlined_call_operand.vmem [shape: bf16[32,32], index: 8, kind: output, shape index: {1}]   ;;  %s596_s6 = inlined_call_operand.vmem [shape: f32[1,128], index: 6, kind: input, shape index: {}]   ;;  %s597_s7 = inlined_call_operand.vmem [shape: f32[32,128], index: 7, kind: output, shape index: {0}]  }
   0x1   :  { %v442_v0 = vld [vmem:[%s589_s2] sm:$0xff]   ;;  %v443_v1 = vld [vmem:[%s589_s2 + $0x8] sm:$0xff]   ;;  %v448_v6 = vld [vmem:[%s591_s3 + $0x10] sm:$0xff]  }
   0x2   :  { %414 = vmatprep.subr.bf16.mxu0 %v442_v0  ;;  %v444_v2 = vld [vmem:[%s590_s1] sm:$0xff]   ;;  %v447_v4 = vld [vmem:[%s591_s3 + $0x8] sm:$0xff]   ;;  %v449_v7 = vld [vmem:[%s591_s3 + $0x18] sm:$0xff]  }
   0x3   :  { %415 = vmatpush3.bf16.msra.mxu0 %v442_v0  ;;  %418 = vmatprep.mubr.msk.bf16.mxu0 %vm66_vm0, %v444_v2  ;;  %v446_v3 = vld [vmem:[%s591_s3] sm:$0xff]   ;;  %v445_v5 = vld [vmem:[%s590_s1 + $0x8] sm:$0xff]   ;;  %v368_v8 = vld [vmem:[%s592_s0 + $0x30] sm:$0xff] }
   0x4   :  { %416 = vmatprep.subr.bf16.mxu0 %v443_v1  ;;  %422 = vmatprep.subr.bf16.mxu1 %v446_v3  ;;  %v366_v9 = vld [vmem:[%s592_s0 + $0x20] sm:$0xff]  ;;  %v369_v11 = vld [vmem:[%s592_s0 + $0x38] sm:$0xff]  ;;  %v367_v14 = vld [vmem:[%s592_s0 + $0x28] sm:$0xff] }
   0x5   :  { %423 = vmatpush3.bf16.msra.mxu1 %v446_v3  ;;  %v450_v26 = vld [vmem:[%s593_s5] sm:$0xff]   ;;  %v451_v27 = vld [vmem:[%s593_s5 + $0x8] sm:$0xff]  }
   0x6   :  { %424 = vmatprep.subr.bf16.mxu1 %v447_v4  ;;  %v376_v28 = vld [vmem:[%s594_s4] ss:$0 sm:$0xff] }
   0x7   :  { %417 = vmatpush3.bf16.msra.mxu0 %v443_v1  ;;  %v383_v47 = vld [vmem:[%s596_s6] ss:$0 sm:$0xff] }
   0x8   :  { %434 = vmatprep.subr.bf16.mxu0 %v450_v26 }
   0x9   :  { %425 = vmatpush3.bf16.msra.mxu1 %v447_v4 }
   0xa   :  { %419 = vmatmul.mubr.msk.bf16.vlgmr.msra.gmra.mrb[0].mxu0 %vm66_vm0, %v445_v5  ;;  %426 = vmatprep.subr.bf16.mxu1 %v448_v6 }
   0xb   :  { %435 = vmatpush3.bf16.msra.mxu0 %v450_v26 }
   0xc   :  { %436 = vmatprep.subr.bf16.mxu0 %v451_v27 }
   0xd   :  { %427 = vmatpush3.bf16.msra.mxu1 %v448_v6 }
   0xe   :  { %428 = vmatprep.subr.bf16.mxu1 %v449_v7 }
   0xf   :  { %437 = vmatpush3.bf16.msra.mxu0 %v451_v27 }
  0x11   :  { %429 = vmatpush3.bf16.msra.mxu1 %v449_v7 }
  0xdd   :  { %v420_v10 = vpop.f32.mrb[0].mxu0 }
  0xde   :  { %v124_v12 = vadd.f32 %v420_v10, %v368_v8  ;;  %v107_v13 = vpop.f32.mrb[1].mxu0 }
  0xdf   :  { %v122_v15 = vadd.f32 %v366_v9, %v107_v13  ;;  %v421_v16 = vpop.f32.mrb[2].mxu0 }
  0xe0   :  { %v125_v17 = vadd.f32 %v421_v16, %v369_v11  ;;  %v110_v18 = vpop.f32.mrb[3].mxu0  ;;  %v128_v20 = vmax.f32 %v124_v12, 0.0 }
  0xe1   :  { %v123_v19 = vadd.f32 %v367_v14, %v110_v18  ;;  %v126_v22 = vmax.f32 %v122_v15, 0.0 }
  0xe2   :  { %v129_v21 = vmax.f32 %v125_v17, 0.0 }
  0xe3   :  { %v127_v23 = vmax.f32 %v123_v19, 0.0 }
  0xe4   :  { %v131_v24 = vpack.c.bf16 %v129_v21, %v128_v20 }
  0xe5   :  { %v130_v25 = vpack.c.bf16 %v127_v23, %v126_v22 }
  0xe7   :  { %430 = vmatprep.mubr.msk.bf16.mxu1 %vm171_vm1, %v130_v25 }
  0xe8   :  { %431 = vmatmul.mubr.msk.bf16.vlgmr.msra.gmra.mrb[0].mxu1 %vm171_vm1, %v131_v24 }
 0x1bb   :  { %v432_v29 = vpop.f32.mrb[0].mxu1 }
 0x1bc   :  { %v221_v30 = vadd.f32 %v432_v29, %v376_v28  ;;  %v212_v31 = vpop.f32.mrb[1].mxu1 }
 0x1bd   :  { %v213_v32 = vadd.f32 %v376_v28, %v212_v31  ;;  %v433_v33 = vpop.f32.mrb[2].mxu1 }
 0x1be   :  { %v229_v34 = vmax.f32 %v221_v30, 0.0  ;;  %v224_v35 = vadd.f32 %v433_v33, %v376_v28  ;;  %v215_v36 = vpop.f32.mrb[3].mxu1 }
 0x1bf   :  { %v227_v37 = vmax.f32 %v213_v32, 0.0  ;;  %v216_v38 = vadd.f32 %v376_v28, %v215_v36 }
 0x1c0   :  { %v398_v39 = vpack.c.bf16 %v229_v34, %v229_v34  ;;  %v230_v40 = vmax.f32 %v224_v35, 0.0 }
 0x1c1   :  { %v396_v41 = vpack.c.bf16 %v227_v37, %v227_v37  ;;  %v228_v42 = vmax.f32 %v216_v38, 0.0 }
 0x1c2   :  { %356 = vst.msk [vmem:[%s595_s8 + $0x8] sm:$0xf] %vm353_vm2, %v398_v39  ;;  %v232_v43 = vpack.c.bf16 %v230_v40, %v229_v34  ;;  %v399_v44 = vpack.c.bf16 %v230_v40, %v230_v40 }
 0x1c3   :  { %354 = vst.msk [vmem:[%s595_s8] sm:$0xf] %vm353_vm2, %v396_v41  ;;  %v231_v45 = vpack.c.bf16 %v228_v42, %v227_v37  ;;  %v397_v46 = vpack.c.bf16 %v228_v42, %v228_v42 }
 0x1c4   :  { %357 = vst.msk [vmem:[%s595_s8 + $0xc] sm:$0xf] %vm353_vm2, %v399_v44 }
 0x1c5   :  { %355 = vst.msk [vmem:[%s595_s8 + $0x4] sm:$0xf] %vm353_vm2, %v397_v46  ;;  %438 = vmatprep.mubr.msk.bf16.mxu0 %vm66_vm0, %v231_v45 }
 0x1c6   :  { %439 = vmatmul.mubr.msk.bf16.vlgmr.msra.gmra.mrb[4].mxu0 %vm66_vm0, %v232_v43 }
 0x299   :  { %v440_v48 = vpop.f32.mrb[4].mxu0 }
 0x29a   :  { %v305_v49 = vadd.f32 %v440_v48, %v383_v47  ;;  %v296_v50 = vpop.f32.mrb[5].mxu0 }
 0x29b   :  { %v297_v51 = vadd.f32 %v383_v47, %v296_v50  ;;  %v441_v52 = vpop.f32.mrb[6].mxu0 }
 0x29c   :  { %v390_v53 = vmul.f32 -1.442695, %v305_v49  ;;  %v308_v54 = vadd.f32 %v441_v52, %v383_v47  ;;  %v299_v55 = vpop.f32.mrb[7].mxu0 }
 0x29d   :  { %v388_v56 = vmul.f32 -1.442695, %v297_v51  ;;  %v300_v57 = vadd.f32 %v383_v47, %v299_v55 }
 0x29e   :  { %452 = vpow2.f32 %v390_v53  ;;  %v391_v58 = vmul.f32 -1.442695, %v308_v54 }
 0x29f   :  { %454 = vpow2.f32 %v388_v56  ;;  %v389_v59 = vmul.f32 -1.442695, %v300_v57 }
 0x2a0   :  { %456 = vpow2.f32 %v391_v58 }
 0x2a1   :  { %458 = vpow2.f32 %v389_v59 }
 0x2a8   :  { %v453_v60 = vpop.eup %452 }
 0x2a9   :  { %v455_v61 = vpop.eup %454  ;;  %v325_v62 = vadd.f32 1.0, %v453_v60 }
 0x2aa   :  { %v457_v63 = vpop.eup %456  ;;  %v323_v0 = vadd.f32 1.0, %v455_v61 }
 0x2ab   :  { %v459_v1 = vpop.eup %458  ;;  %460 = vrcp.f32 %v325_v62  ;;  %v326_v2 = vadd.f32 1.0, %v457_v63 }
 0x2ac   :  { %462 = vrcp.f32 %v323_v0  ;;  %v324_v3 = vadd.f32 1.0, %v459_v1 }
 0x2ad   :  { %464 = vrcp.f32 %v326_v2 }
 0x2ae   :  { %466 = vrcp.f32 %v324_v3 }
 0x2b5   :  { %v461_v4 = vpop.eup %460 }
 0x2b6   :  { %v463_v5 = vpop.eup %462  ;;  %337 = vst [vmem:[%s597_s7 + $0x10] sm:$0xff] %v461_v4 }
 0x2b7   :  { %v465_v6 = vpop.eup %464  ;;  %335 = vst [vmem:[%s597_s7] sm:$0xff] %v463_v5 }
 0x2b8   :  { %v467_v7 = vpop.eup %466  ;;  %338 = vst [vmem:[%s597_s7 + $0x18] sm:$0xff] %v465_v6 }
 0x2b9   :  { %336 = vst [vmem:[%s597_s7 + $0x8] sm:$0xff] %v467_v7 }

// kernel: deep_res_lstm_actor_forward.28
= control target key start
LH: loop header
LB: loop body
LE: loop exit
PB: predicated region body
PF: predicated region fallthrough
CT: control target
= control target key end

     0   :  { %vm66_vm0 = vcmask 261120   ;;  %vm171_vm1 = vcmask 523264   ;;  %vm353_vm2 = vcmask 257024   ;;  %s589_s2 = inlined_call_operand.vmem [shape: bf16[32,64], index: 2, kind: input, shape index: {}]   ;;  %s590_s1 = inlined_call_operand.vmem [shape: bf16[32,32], index: 1, kind: input, shape index: {}]   ;;  %s591_s3 = inlined_call_operand.vmem [shape: bf16[64,32], index: 3, kind: input, shape index: {}]   ;;  %s592_s0 = inlined_call_operand.vmem [shape: f32[8,32,64], index: 0, kind: input, shape index: {}]   ;;  %s593_s5 = inlined_call_operand.vmem [shape: bf16[32,128], index: 5, kind: input, shape index: {}]   ;;  %s594_s4 = inlined_call_operand.vmem [shape: f32[1,32], index: 4, kind: input, shape index: {}]   ;;  %s595_s8 = inlined_call_operand.vmem [shape: bf16[32,32], index: 8, kind: output, shape index: {1}]   ;;  %s596_s6 = inlined_call_operand.vmem [shape: f32[1,128], index: 6, kind: input, shape index: {}]   ;;  %s597_s7 = inlined_call_operand.vmem [shape: f32[32,128], index: 7, kind: output, shape index: {0}]  }
   0x1   :  { %v442_v0 = vld [vmem:[%s589_s2] sm:$0xff]   ;;  %v443_v1 = vld [vmem:[%s589_s2 + $0x8] sm:$0xff]   ;;  %v448_v6 = vld [vmem:[%s591_s3 + $0x10] sm:$0xff]  }
   0x2   :  { %414 = vmatprep.subr.bf16.mxu0 %v442_v0  ;;  %v444_v2 = vld [vmem:[%s590_s1] sm:$0xff]   ;;  %v447_v4 = vld [vmem:[%s591_s3 + $0x8] sm:$0xff]   ;;  %v449_v7 = vld [vmem:[%s591_s3 + $0x18] sm:$0xff]  }
   0x3   :  { %415 = vmatpush3.bf16.msra.mxu0 %v442_v0  ;;  %418 = vmatprep.mubr.msk.bf16.mxu0 %vm66_vm0, %v444_v2  ;;  %v446_v3 = vld [vmem:[%s591_s3] sm:$0xff]   ;;  %v445_v5 = vld [vmem:[%s590_s1 + $0x8] sm:$0xff]   ;;  %v368_v8 = vld [vmem:[%s592_s0 + $0x90] sm:$0xff] }
   0x4   :  { %416 = vmatprep.subr.bf16.mxu0 %v443_v1  ;;  %422 = vmatprep.subr.bf16.mxu1 %v446_v3  ;;  %v366_v9 = vld [vmem:[%s592_s0 + $0x80] sm:$0xff]  ;;  %v369_v11 = vld [vmem:[%s592_s0 + $0x98] sm:$0xff]  ;;  %v367_v14 = vld [vmem:[%s592_s0 + $0x88] sm:$0xff] }
   0x5   :  { %423 = vmatpush3.bf16.msra.mxu1 %v446_v3  ;;  %v450_v26 = vld [vmem:[%s593_s5] sm:$0xff]   ;;  %v451_v27 = vld [vmem:[%s593_s5 + $0x8] sm:$0xff]  }
   0x6   :  { %424 = vmatprep.subr.bf16.mxu1 %v447_v4  ;;  %v376_v28 = vld [vmem:[%s594_s4] ss:$0 sm:$0xff] }
   0x7   :  { %417 = vmatpush3.bf16.msra.mxu0 %v443_v1  ;;  %v383_v47 = vld [vmem:[%s596_s6] ss:$0 sm:$0xff] }
   0x8   :  { %434 = vmatprep.subr.bf16.mxu0 %v450_v26 }
   0x9   :  { %425 = vmatpush3.bf16.msra.mxu1 %v447_v4 }
   0xa   :  { %419 = vmatmul.mubr.msk.bf16.vlgmr.msra.gmra.mrb[0].mxu0 %vm66_vm0, %v445_v5  ;;  %426 = vmatprep.subr.bf16.mxu1 %v448_v6 }
   0xb   :  { %435 = vmatpush3.bf16.msra.mxu0 %v450_v26 }
   0xc   :  { %436 = vmatprep.subr.bf16.mxu0 %v451_v27 }
   0xd   :  { %427 = vmatpush3.bf16.msra.mxu1 %v448_v6 }
   0xe   :  { %428 = vmatprep.subr.bf16.mxu1 %v449_v7 }
   0xf   :  { %437 = vmatpush3.bf16.msra.mxu0 %v451_v27 }
  0x11   :  { %429 = vmatpush3.bf16.msra.mxu1 %v449_v7 }
  0xdd   :  { %v420_v10 = vpop.f32.mrb[0].mxu0 }
  0xde   :  { %v124_v12 = vadd.f32 %v420_v10, %v368_v8  ;;  %v107_v13 = vpop.f32.mrb[1].mxu0 }
  0xdf   :  { %v122_v15 = vadd.f32 %v366_v9, %v107_v13  ;;  %v421_v16 = vpop.f32.mrb[2].mxu0 }
  0xe0   :  { %v125_v17 = vadd.f32 %v421_v16, %v369_v11  ;;  %v110_v18 = vpop.f32.mrb[3].mxu0  ;;  %v128_v20 = vmax.f32 %v124_v12, 0.0 }
  0xe1   :  { %v123_v19 = vadd.f32 %v367_v14, %v110_v18  ;;  %v126_v22 = vmax.f32 %v122_v15, 0.0 }
  0xe2   :  { %v129_v21 = vmax.f32 %v125_v17, 0.0 }
  0xe3   :  { %v127_v23 = vmax.f32 %v123_v19, 0.0 }
  0xe4   :  { %v131_v24 = vpack.c.bf16 %v129_v21, %v128_v20 }
  0xe5   :  { %v130_v25 = vpack.c.bf16 %v127_v23, %v126_v22 }
  0xe7   :  { %430 = vmatprep.mubr.msk.bf16.mxu1 %vm171_vm1, %v130_v25 }
  0xe8   :  { %431 = vmatmul.mubr.msk.bf16.vlgmr.msra.gmra.mrb[0].mxu1 %vm171_vm1, %v131_v24 }
 0x1bb   :  { %v432_v29 = vpop.f32.mrb[0].mxu1 }
 0x1bc   :  { %v221_v30 = vadd.f32 %v432_v29, %v376_v28  ;;  %v212_v31 = vpop.f32.mrb[1].mxu1 }
 0x1bd   :  { %v213_v32 = vadd.f32 %v376_v28, %v212_v31  ;;  %v433_v33 = vpop.f32.mrb[2].mxu1 }
 0x1be   :  { %v229_v34 = vmax.f32 %v221_v30, 0.0  ;;  %v224_v35 = vadd.f32 %v433_v33, %v376_v28  ;;  %v215_v36 = vpop.f32.mrb[3].mxu1 }
 0x1bf   :  { %v227_v37 = vmax.f32 %v213_v32, 0.0  ;;  %v216_v38 = vadd.f32 %v376_v28, %v215_v36 }
 0x1c0   :  { %v398_v39 = vpack.c.bf16 %v229_v34, %v229_v34  ;;  %v230_v40 = vmax.f32 %v224_v35, 0.0 }
 0x1c1   :  { %v396_v41 = vpack.c.bf16 %v227_v37, %v227_v37  ;;  %v228_v42 = vmax.f32 %v216_v38, 0.0 }
 0x1c2   :  { %356 = vst.msk [vmem:[%s595_s8 + $0x8] sm:$0xf] %vm353_vm2, %v398_v39  ;;  %v232_v43 = vpack.c.bf16 %v230_v40, %v229_v34  ;;  %v399_v44 = vpack.c.bf16 %v230_v40, %v230_v40 }
 0x1c3   :  { %354 = vst.msk [vmem:[%s595_s8] sm:$0xf] %vm353_vm2, %v396_v41  ;;  %v231_v45 = vpack.c.bf16 %v228_v42, %v227_v37  ;;  %v397_v46 = vpack.c.bf16 %v228_v42, %v228_v42 }
 0x1c4   :  { %357 = vst.msk [vmem:[%s595_s8 + $0xc] sm:$0xf] %vm353_vm2, %v399_v44 }
 0x1c5   :  { %355 = vst.msk [vmem:[%s595_s8 + $0x4] sm:$0xf] %vm353_vm2, %v397_v46  ;;  %438 = vmatprep.mubr.msk.bf16.mxu0 %vm66_vm0, %v231_v45 }
 0x1c6   :  { %439 = vmatmul.mubr.msk.bf16.vlgmr.msra.gmra.mrb[4].mxu0 %vm66_vm0, %v232_v43 }
 0x299   :  { %v440_v48 = vpop.f32.mrb[4].mxu0 }
 0x29a   :  { %v305_v49 = vadd.f32 %v440_v48, %v383_v47  ;;  %v296_v50 = vpop.f32.mrb[5].mxu0 }
 0x29b   :  { %v297_v51 = vadd.f32 %v383_v47, %v296_v50  ;;  %v441_v52 = vpop.f32.mrb[6].mxu0 }
 0x29c   :  { %v390_v53 = vmul.f32 -1.442695, %v305_v49  ;;  %v308_v54 = vadd.f32 %v441_v52, %v383_v47  ;;  %v299_v55 = vpop.f32.mrb[7].mxu0 }
 0x29d   :  { %v388_v56 = vmul.f32 -1.442695, %v297_v51  ;;  %v300_v57 = vadd.f32 %v383_v47, %v299_v55 }
 0x29e   :  { %452 = vpow2.f32 %v390_v53  ;;  %v391_v58 = vmul.f32 -1.442695, %v308_v54 }
 0x29f   :  { %454 = vpow2.f32 %v388_v56  ;;  %v389_v59 = vmul.f32 -1.442695, %v300_v57 }
 0x2a0   :  { %456 = vpow2.f32 %v391_v58 }
 0x2a1   :  { %458 = vpow2.f32 %v389_v59 }
 0x2a8   :  { %v453_v60 = vpop.eup %452 }
 0x2a9   :  { %v455_v61 = vpop.eup %454  ;;  %v325_v62 = vadd.f32 1.0, %v453_v60 }
 0x2aa   :  { %v457_v63 = vpop.eup %456  ;;  %v323_v0 = vadd.f32 1.0, %v455_v61 }
 0x2ab   :  { %v459_v1 = vpop.eup %458  ;;  %460 = vrcp.f32 %v325_v62  ;;  %v326_v2 = vadd.f32 1.0, %v457_v63 }
 0x2ac   :  { %462 = vrcp.f32 %v323_v0  ;;  %v324_v3 = vadd.f32 1.0, %v459_v1 }
 0x2ad   :  { %464 = vrcp.f32 %v326_v2 }
 0x2ae   :  { %466 = vrcp.f32 %v324_v3 }
 0x2b5   :  { %v461_v4 = vpop.eup %460 }
 0x2b6   :  { %v463_v5 = vpop.eup %462  ;;  %337 = vst [vmem:[%s597_s7 + $0x10] sm:$0xff] %v461_v4 }
 0x2b7   :  { %v465_v6 = vpop.eup %464  ;;  %335 = vst [vmem:[%s597_s7] sm:$0xff] %v463_v5 }
 0x2b8   :  { %v467_v7 = vpop.eup %466  ;;  %338 = vst [vmem:[%s597_s7 + $0x18] sm:$0xff] %v465_v6 }
 0x2b9   :  { %336 = vst [vmem:[%s597_s7 + $0x8] sm:$0xff] %v467_v7 }

// kernel: deep_res_lstm_actor_forward.30
= control target key start
LH: loop header
LB: loop body
LE: loop exit
PB: predicated region body
PF: predicated region fallthrough
CT: control target
= control target key end

     0   :  { %vm67_vm0 = vcmask 261120   ;;  %s588_s0 = inlined_call_operand.vmem [shape: f32[8,32,64], index: 0, kind: input, shape index: {}]   ;;  %s589_s1 = inlined_call_operand.vmem [shape: bf16[32,32], index: 1, kind: input, shape index: {}]   ;;  %s590_s2 = inlined_call_operand.vmem [shape: bf16[32,64], index: 2, kind: input, shape index: {}]   ;;  %s591_s3 = inlined_call_operand.vmem [shape: bf16[64,32], index: 3, kind: input, shape index: {}]   ;;  %s592_s4 = inlined_call_operand.vmem [shape: f32[1,32], index: 4, kind: input, shape index: {}]   ;;  %s593_s5 = inlined_call_operand.vmem [shape: bf16[32,128], index: 5, kind: input, shape index: {}]   ;;  %s594_s6 = inlined_call_operand.vmem [shape: f32[1,128], index: 6, kind: input, shape index: {}]   ;;  %s595_s7 = inlined_call_operand.hbm [shape: f32[32,128], index: 7, kind: output, shape index: {0}]   ;;  %s596_s8 = inlined_call_operand.vmem [shape: bf16[32,32], index: 8, kind: output, shape index: {1}]  }
   0x1   :  { %v430_v0 = vld [vmem:[%s590_s2] sm:$0xff]   ;;  %v431_v1 = vld [vmem:[%s590_s2 + $0x8] sm:$0xff]  }
   0x2   :  { %399 = vmatprep.subr.bf16.mxu0 %v430_v0  ;;  %v432_v2 = vld [vmem:[%s589_s1] sm:$0xff]   ;;  %v435_v4 = vld [vmem:[%s591_s3 + $0x8] sm:$0xff]  }
   0x3   :  { %400 = vmatpush3.bf16.msra.mxu0 %v430_v0  ;;  %403 = vmatprep.mubr.msk.bf16.mxu0 %vm67_vm0, %v432_v2  ;;  %v434_v3 = vld [vmem:[%s591_s3] sm:$0xff]   ;;  %v433_v5 = vld [vmem:[%s589_s1 + $0x8] sm:$0xff]  }
   0x4   :  { %401 = vmatprep.subr.bf16.mxu0 %v431_v1  ;;  %407 = vmatprep.subr.bf16.mxu1 %v434_v3 }
   0x5   :  { %408 = vmatpush3.bf16.msra.mxu1 %v434_v3 }
   0x6   :  { %409 = vmatprep.subr.bf16.mxu1 %v435_v4 }
   0x7   :  { %402 = vmatpush3.bf16.msra.mxu0 %v431_v1 }
   0x8   :  { %14 = vsyncpa [#allocation3], 0  ;;  %v436_v6 = vld [vmem:[%s591_s3 + $0x10] sm:$0xff]   ;;  %v437_v7 = vld [vmem:[%s591_s3 + $0x18] sm:$0xff]   ;;  %vm172_vm1 = vcmask 523264   ;;  %vm330_vm2 = vcmask 257024  }
   0x9   :  { %410 = vmatpush3.bf16.msra.mxu1 %v435_v4  ;;  %v357_v8 = vld [vmem:[%s588_s0 + $0xd0] sm:$0xff]  ;;  %v355_v9 = vld [vmem:[%s588_s0 + $0xc0] sm:$0xff]  ;;  %v358_v11 = vld [vmem:[%s588_s0 + $0xd8] sm:$0xff]  ;;  %s464_s16 = smov [#allocation2]  }
   0xa   :  { %404 = vmatmul.mubr.msk.bf16.vlgmr.msra.gmra.mrb[0].mxu0 %vm67_vm0, %v433_v5  ;;  %411 = vmatprep.subr.bf16.mxu1 %v436_v6  ;;  %v356_v14 = vld [vmem:[%s588_s0 + $0xc8] sm:$0xff]  ;;  %v438_v26 = vld [vmem:[%s593_s5] sm:$0xff]   ;;  %s340_s17 = sshll.u32 %s464_s16, 4  ;;  %s341_s17 = int_to_ptr.vmem [resolvable:$true] %s340_s17 }
   0xb   :  { %419 = vmatprep.subr.bf16.mxu0 %v438_v26  ;;  %v439_v27 = vld [vmem:[%s593_s5 + $0x8] sm:$0xff]   ;;  %v365_v28 = vld [vmem:[%s592_s4] ss:$0 sm:$0xff]  ;;  %p445_p1 = scmp.lt.s32.totalorder %s341_s17, %s341_s17 }
   0xc   :  { %420 = vmatpush3.bf16.msra.mxu0 %v438_v26  ;;  %v372_v47 = vld [vmem:[%s594_s6] ss:$0 sm:$0xff] }
   0xd   :  { %412 = vmatpush3.bf16.msra.mxu1 %v436_v6  ;;  %421 = vmatprep.subr.bf16.mxu0 %v439_v27 }
   0xe   :  { %413 = vmatprep.subr.bf16.mxu1 %v437_v7 }
  0x10   :  { %422 = vmatpush3.bf16.msra.mxu0 %v439_v27 }
  0x11   :  { %414 = vmatpush3.bf16.msra.mxu1 %v437_v7 }
  0xdd   :  { %v405_v10 = vpop.f32.mrb[0].mxu0 }
  0xde   :  { %v125_v12 = vadd.f32 %v405_v10, %v357_v8  ;;  %v108_v13 = vpop.f32.mrb[1].mxu0 }
  0xdf   :  { %v123_v15 = vadd.f32 %v355_v9, %v108_v13  ;;  %v406_v16 = vpop.f32.mrb[2].mxu0 }
  0xe0   :  { %v126_v17 = vadd.f32 %v406_v16, %v358_v11  ;;  %v111_v18 = vpop.f32.mrb[3].mxu0  ;;  %v129_v20 = vmax.f32 %v125_v12, 0.0 }
  0xe1   :  { %v124_v19 = vadd.f32 %v356_v14, %v111_v18  ;;  %v127_v22 = vmax.f32 %v123_v15, 0.0 }
  0xe2   :  { %v130_v21 = vmax.f32 %v126_v17, 0.0 }
  0xe3   :  { %v128_v23 = vmax.f32 %v124_v19, 0.0 }
  0xe4   :  { %v132_v24 = vpack.c.bf16 %v130_v21, %v129_v20 }
  0xe5   :  { %v131_v25 = vpack.c.bf16 %v128_v23, %v127_v22 }
  0xe7   :  { %415 = vmatprep.mubr.msk.bf16.mxu1 %vm172_vm1, %v131_v25 }
  0xe8   :  { %416 = vmatmul.mubr.msk.bf16.vlgmr.msra.gmra.mrb[0].mxu1 %vm172_vm1, %v132_v24 }
 0x1bb   :  { %v417_v29 = vpop.f32.mrb[0].mxu1 }
 0x1bc   :  { %v222_v30 = vadd.f32 %v417_v29, %v365_v28  ;;  %v213_v31 = vpop.f32.mrb[1].mxu1 }
 0x1bd   :  { %v214_v32 = vadd.f32 %v365_v28, %v213_v31  ;;  %v418_v33 = vpop.f32.mrb[2].mxu1 }
 0x1be   :  { %v230_v34 = vmax.f32 %v222_v30, 0.0  ;;  %v225_v35 = vadd.f32 %v418_v33, %v365_v28  ;;  %v216_v36 = vpop.f32.mrb[3].mxu1 }
 0x1bf   :  { %v228_v37 = vmax.f32 %v214_v32, 0.0  ;;  %v217_v38 = vadd.f32 %v365_v28, %v216_v36 }
 0x1c0   :  { %v383_v39 = vpack.c.bf16 %v230_v34, %v230_v34  ;;  %v231_v40 = vmax.f32 %v225_v35, 0.0 }
 0x1c1   :  { %v381_v41 = vpack.c.bf16 %v228_v37, %v228_v37  ;;  %v229_v42 = vmax.f32 %v217_v38, 0.0 }
 0x1c2   :  { %333 = vst.msk [vmem:[%s596_s8 + $0x8] sm:$0xf] %vm330_vm2, %v383_v39  ;;  %v233_v43 = vpack.c.bf16 %v231_v40, %v230_v34  ;;  %v384_v44 = vpack.c.bf16 %v231_v40, %v231_v40 }
 0x1c3   :  { %331 = vst.msk [vmem:[%s596_s8] sm:$0xf] %vm330_vm2, %v381_v41  ;;  %v232_v45 = vpack.c.bf16 %v229_v42, %v228_v37  ;;  %v382_v46 = vpack.c.bf16 %v229_v42, %v229_v42 }
 0x1c4   :  { %334 = vst.msk [vmem:[%s596_s8 + $0xc] sm:$0xf] %vm330_vm2, %v384_v44 }
 0x1c5   :  { %332 = vst.msk [vmem:[%s596_s8 + $0x4] sm:$0xf] %vm330_vm2, %v382_v46  ;;  %423 = vmatprep.mubr.msk.bf16.mxu0 %vm67_vm0, %v232_v45  ;;  %s440_s8 = scalar_lea.vmem %s341_s17, 512 }
 0x1c6   :  { %424 = vmatmul.mubr.msk.bf16.vlgmr.msra.gmra.mrb[4].mxu0 %vm67_vm0, %v233_v43  ;;  %p441_p0 = scmp.ne.s32.totalorder %s341_s17, %s440_s8  ;;  %p446_p2 = scmp.lt.s32.totalorder %s440_s8, %s440_s8 }
 0x1c8   :  { %p447_p3 = por %p446_p2, %p445_p1 }
 0x1ca   :  { %p448_p4 = pnand %p447_p3, %p441_p0 }
 0x299   :  { %v425_v48 = vpop.f32.mrb[4].mxu0 }
 0x29a   :  { %v306_v49 = vadd.f32 %v425_v48, %v372_v47  ;;  %v297_v50 = vpop.f32.mrb[5].mxu0 }
 0x29b   :  { %v298_v51 = vadd.f32 %v372_v47, %v297_v50  ;;  %v426_v52 = vpop.f32.mrb[6].mxu0 }
 0x29c   :  { %314 = vst [vmem:[#allocation2 + $0x10] sm:$0xff] %v306_v49  ;;  %v309_v53 = vadd.f32 %v426_v52, %v372_v47  ;;  %v300_v54 = vpop.f32.mrb[7].mxu0 }
 0x29d   :  { %312 = vst [vmem:[#allocation2] sm:$0xff] %v298_v51  ;;  %v301_v55 = vadd.f32 %v372_v47, %v300_v54 }
 0x29e   :  { %315 = vst [vmem:[#allocation2 + $0x18] sm:$0xff] %v309_v53 }
 0x29f   :  { %313 = vst [vmem:[#allocation2 + $0x8] sm:$0xff] %v301_v55 }
 0x2a0   :  { %451 = shalt.err (!%p448_p4)
}
 0x2a1   :  { %s452_s19 = scalar_lea.hbm %s595_s7, 512 }
 0x2a2   :  { %p453_p5 = scmp.ne.s32.totalorder %s595_s7, %s452_s19  ;;  %p456_p6 = scmp.lt.u32.totalorder %s452_s19, %s595_s7 }
 0x2a4   :  { %p458_p7 = pnand %p456_p6, %p453_p5 }
 0x2a6   :  { %461 = shalt.err (!%p458_p7)
}
 0x2a7   :  { %s465_s23 = smov 128   ;;  %s466_s24 = smov 8  }
 0x2a8   :  { %346 = dma.vmem_to_hbm [thread:$0]  %s341_s17, 512, %s595_s7, [#allocation3], %s465_s23, %s465_s23, %s466_s24  }
 0x2a9   :  { %462 = dma.done.wait [#allocation3], 512  }
 0x2aa   :  { %463 = vsyncadd [#allocation3], 4294966784 }
 0x2ab   :  { %354 = vsyncpa [#allocation3], 1 }

// kernel: deep_res_lstm_actor_forward.31
= control target key start
LH: loop header
LB: loop body
LE: loop exit
PB: predicated region body
PF: predicated region fallthrough
CT: control target
= control target key end

     0   :  { %vm67_vm0 = vcmask 261120   ;;  %s588_s0 = inlined_call_operand.vmem [shape: f32[8,32,64], index: 0, kind: input, shape index: {}]   ;;  %s589_s1 = inlined_call_operand.vmem [shape: bf16[32,32], index: 1, kind: input, shape index: {}]   ;;  %s590_s2 = inlined_call_operand.vmem [shape: bf16[32,64], index: 2, kind: input, shape index: {}]   ;;  %s591_s3 = inlined_call_operand.vmem [shape: bf16[64,32], index: 3, kind: input, shape index: {}]   ;;  %s592_s4 = inlined_call_operand.vmem [shape: f32[1,32], index: 4, kind: input, shape index: {}]   ;;  %s593_s5 = inlined_call_operand.vmem [shape: bf16[32,128], index: 5, kind: input, shape index: {}]   ;;  %s594_s6 = inlined_call_operand.vmem [shape: f32[1,128], index: 6, kind: input, shape index: {}]   ;;  %s595_s7 = inlined_call_operand.vmem [shape: f32[32,128], index: 7, kind: output, shape index: {0}]   ;;  %s596_s8 = inlined_call_operand.hbm [shape: bf16[32,32], index: 8, kind: output, shape index: {1}]  }
   0x1   :  { %v430_v0 = vld [vmem:[%s590_s2] sm:$0xff]   ;;  %v431_v1 = vld [vmem:[%s590_s2 + $0x8] sm:$0xff]  }
   0x2   :  { %399 = vmatprep.subr.bf16.mxu0 %v430_v0  ;;  %v432_v2 = vld [vmem:[%s589_s1] sm:$0xff]   ;;  %v435_v4 = vld [vmem:[%s591_s3 + $0x8] sm:$0xff]  }
   0x3   :  { %400 = vmatpush3.bf16.msra.mxu0 %v430_v0  ;;  %403 = vmatprep.mubr.msk.bf16.mxu0 %vm67_vm0, %v432_v2  ;;  %v434_v3 = vld [vmem:[%s591_s3] sm:$0xff]   ;;  %v433_v5 = vld [vmem:[%s589_s1 + $0x8] sm:$0xff]  }
   0x4   :  { %401 = vmatprep.subr.bf16.mxu0 %v431_v1  ;;  %407 = vmatprep.subr.bf16.mxu1 %v434_v3 }
   0x5   :  { %408 = vmatpush3.bf16.msra.mxu1 %v434_v3 }
   0x6   :  { %409 = vmatprep.subr.bf16.mxu1 %v435_v4 }
   0x7   :  { %402 = vmatpush3.bf16.msra.mxu0 %v431_v1 }
   0x8   :  { %14 = vsyncpa [#allocation3], 0  ;;  %v436_v6 = vld [vmem:[%s591_s3 + $0x10] sm:$0xff]   ;;  %v437_v7 = vld [vmem:[%s591_s3 + $0x18] sm:$0xff]   ;;  %vm172_vm1 = vcmask 523264   ;;  %vm330_vm2 = vcmask 257024  }
   0x9   :  { %410 = vmatpush3.bf16.msra.mxu1 %v435_v4  ;;  %v357_v8 = vld [vmem:[%s588_s0 + $0xf0] sm:$0xff]  ;;  %v355_v9 = vld [vmem:[%s588_s0 + $0xe0] sm:$0xff]  ;;  %v358_v11 = vld [vmem:[%s588_s0 + $0xf8] sm:$0xff] }
   0xa   :  { %404 = vmatmul.mubr.msk.bf16.vlgmr.msra.gmra.mrb[0].mxu0 %vm67_vm0, %v433_v5  ;;  %411 = vmatprep.subr.bf16.mxu1 %v436_v6  ;;  %v356_v14 = vld [vmem:[%s588_s0 + $0xe8] sm:$0xff]  ;;  %v438_v26 = vld [vmem:[%s593_s5] sm:$0xff]  }
   0xb   :  { %419 = vmatprep.subr.bf16.mxu0 %v438_v26  ;;  %v439_v27 = vld [vmem:[%s593_s5 + $0x8] sm:$0xff]   ;;  %v365_v28 = vld [vmem:[%s592_s4] ss:$0 sm:$0xff]  ;;  %s464_s4 = smov [#allocation2]  }
   0xc   :  { %420 = vmatpush3.bf16.msra.mxu0 %v438_v26  ;;  %s342_s5 = sshll.u32 %s464_s4, 4  ;;  %s343_s5 = int_to_ptr.vmem [resolvable:$true] %s342_s5 }
   0xd   :  { %412 = vmatpush3.bf16.msra.mxu1 %v436_v6  ;;  %421 = vmatprep.subr.bf16.mxu0 %v439_v27  ;;  %s440_s9 = scalar_lea.vmem %s343_s5, 256  ;;  %p445_p1 = scmp.lt.s32.totalorder %s343_s5, %s343_s5 }
   0xe   :  { %413 = vmatprep.subr.bf16.mxu1 %v437_v7  ;;  %p441_p0 = scmp.ne.s32.totalorder %s343_s5, %s440_s9  ;;  %p446_p2 = scmp.lt.s32.totalorder %s440_s9, %s440_s9 }
  0x10   :  { %422 = vmatpush3.bf16.msra.mxu0 %v439_v27  ;;  %p447_p3 = por %p446_p2, %p445_p1 }
  0x11   :  { %414 = vmatpush3.bf16.msra.mxu1 %v437_v7 }
  0x12   :  { %p448_p4 = pnand %p447_p3, %p441_p0 }
  0xdd   :  { %v405_v10 = vpop.f32.mrb[0].mxu0 }
  0xde   :  { %v125_v12 = vadd.f32 %v405_v10, %v357_v8  ;;  %v108_v13 = vpop.f32.mrb[1].mxu0 }
  0xdf   :  { %v123_v15 = vadd.f32 %v355_v9, %v108_v13  ;;  %v406_v16 = vpop.f32.mrb[2].mxu0 }
  0xe0   :  { %v126_v17 = vadd.f32 %v406_v16, %v358_v11  ;;  %v111_v18 = vpop.f32.mrb[3].mxu0  ;;  %v129_v20 = vmax.f32 %v125_v12, 0.0 }
  0xe1   :  { %v124_v19 = vadd.f32 %v356_v14, %v111_v18  ;;  %v127_v22 = vmax.f32 %v123_v15, 0.0 }
  0xe2   :  { %v130_v21 = vmax.f32 %v126_v17, 0.0 }
  0xe3   :  { %v128_v23 = vmax.f32 %v124_v19, 0.0 }
  0xe4   :  { %v132_v24 = vpack.c.bf16 %v130_v21, %v129_v20 }
  0xe5   :  { %v131_v25 = vpack.c.bf16 %v128_v23, %v127_v22 }
  0xe7   :  { %415 = vmatprep.mubr.msk.bf16.mxu1 %vm172_vm1, %v131_v25 }
  0xe8   :  { %416 = vmatmul.mubr.msk.bf16.vlgmr.msra.gmra.mrb[0].mxu1 %vm172_vm1, %v132_v24 }
 0x1bb   :  { %v417_v29 = vpop.f32.mrb[0].mxu1 }
 0x1bc   :  { %v222_v30 = vadd.f32 %v417_v29, %v365_v28  ;;  %v213_v31 = vpop.f32.mrb[1].mxu1 }
 0x1bd   :  { %v214_v32 = vadd.f32 %v365_v28, %v213_v31  ;;  %v418_v33 = vpop.f32.mrb[2].mxu1 }
 0x1be   :  { %v230_v34 = vmax.f32 %v222_v30, 0.0  ;;  %v225_v35 = vadd.f32 %v418_v33, %v365_v28  ;;  %v216_v36 = vpop.f32.mrb[3].mxu1 }
 0x1bf   :  { %v228_v37 = vmax.f32 %v214_v32, 0.0  ;;  %v217_v38 = vadd.f32 %v365_v28, %v216_v36 }
 0x1c0   :  { %v383_v39 = vpack.c.bf16 %v230_v34, %v230_v34  ;;  %v231_v40 = vmax.f32 %v225_v35, 0.0 }
 0x1c1   :  { %v381_v41 = vpack.c.bf16 %v228_v37, %v228_v37  ;;  %v229_v42 = vmax.f32 %v217_v38, 0.0 }
 0x1c2   :  { %333 = vst.msk [vmem:[#allocation2 + $0x8] sm:$0xf] %vm330_vm2, %v383_v39  ;;  %v233_v43 = vpack.c.bf16 %v231_v40, %v230_v34  ;;  %v384_v44 = vpack.c.bf16 %v231_v40, %v231_v40 }
 0x1c3   :  { %331 = vst.msk [vmem:[#allocation2] sm:$0xf] %vm330_vm2, %v381_v41  ;;  %v232_v45 = vpack.c.bf16 %v229_v42, %v228_v37  ;;  %v382_v46 = vpack.c.bf16 %v229_v42, %v229_v42 }
 0x1c4   :  { %334 = vst.msk [vmem:[#allocation2 + $0xc] sm:$0xf] %vm330_vm2, %v384_v44 }
 0x1c5   :  { %332 = vst.msk [vmem:[#allocation2 + $0x4] sm:$0xf] %vm330_vm2, %v382_v46  ;;  %423 = vmatprep.mubr.msk.bf16.mxu0 %vm67_vm0, %v232_v45 }
 0x1c6   :  { %424 = vmatmul.mubr.msk.bf16.vlgmr.msra.gmra.mrb[4].mxu0 %vm67_vm0, %v233_v43 }
 0x1c7   :  { %451 = shalt.err (!%p448_p4)
}
 0x1c8   :  { %s452_s12 = scalar_lea.hbm %s596_s8, 256 }
 0x1c9   :  { %p453_p5 = scmp.ne.s32.totalorder %s596_s8, %s452_s12  ;;  %p456_p6 = scmp.lt.u32.totalorder %s452_s12, %s596_s8 }
 0x1cb   :  { %p458_p7 = pnand %p456_p6, %p453_p5 }
 0x1cd   :  { %461 = shalt.err (!%p458_p7)
}
 0x1ce   :  { %s465_s16 = smov 64   ;;  %s466_s17 = smov 4   ;;  %v372_v47 = vld [vmem:[%s594_s6] ss:$0 sm:$0xff] }
 0x1cf   :  { %348 = dma.vmem_to_hbm [thread:$0]  %s343_s5, 256, %s596_s8, [#allocation3], %s465_s16, %s465_s16, %s466_s17  }
 0x299   :  { %v425_v48 = vpop.f32.mrb[4].mxu0 }
 0x29a   :  { %v306_v49 = vadd.f32 %v425_v48, %v372_v47  ;;  %v297_v50 = vpop.f32.mrb[5].mxu0 }
 0x29b   :  { %v298_v51 = vadd.f32 %v372_v47, %v297_v50  ;;  %v426_v52 = vpop.f32.mrb[6].mxu0 }
 0x29c   :  { %314 = vst [vmem:[%s595_s7 + $0x10] sm:$0xff] %v306_v49  ;;  %v309_v53 = vadd.f32 %v426_v52, %v372_v47  ;;  %v300_v54 = vpop.f32.mrb[7].mxu0 }
 0x29d   :  { %312 = vst [vmem:[%s595_s7] sm:$0xff] %v298_v51  ;;  %v301_v55 = vadd.f32 %v372_v47, %v300_v54 }
 0x29e   :  { %315 = vst [vmem:[%s595_s7 + $0x18] sm:$0xff] %v309_v53 }
 0x29f   :  { %313 = vst [vmem:[%s595_s7 + $0x8] sm:$0xff] %v301_v55 }
 0x2a0   :  { %462 = dma.done.wait [#allocation3], 256  }
 0x2a1   :  { %463 = vsyncadd [#allocation3], 4294967040 }
 0x2a2   :  { %354 = vsyncpa [#allocation3], 1 }

// kernel: deep_res_lstm_actor_forward.29
= control target key start
LH: loop header
LB: loop body
LE: loop exit
PB: predicated region body
PF: predicated region fallthrough
CT: control target
= control target key end

     0   :  { %vm67_vm0 = vcmask 261120   ;;  %s588_s0 = inlined_call_operand.vmem [shape: f32[8,32,64], index: 0, kind: input, shape index: {}]   ;;  %s589_s1 = inlined_call_operand.vmem [shape: bf16[32,32], index: 1, kind: input, shape index: {}]   ;;  %s590_s2 = inlined_call_operand.vmem [shape: bf16[32,64], index: 2, kind: input, shape index: {}]   ;;  %s591_s3 = inlined_call_operand.vmem [shape: bf16[64,32], index: 3, kind: input, shape index: {}]   ;;  %s592_s4 = inlined_call_operand.vmem [shape: f32[1,32], index: 4, kind: input, shape index: {}]   ;;  %s593_s5 = inlined_call_operand.vmem [shape: bf16[32,128], index: 5, kind: input, shape index: {}]   ;;  %s594_s6 = inlined_call_operand.vmem [shape: f32[1,128], index: 6, kind: input, shape index: {}]   ;;  %s595_s7 = inlined_call_operand.hbm [shape: f32[32,128], index: 7, kind: output, shape index: {0}]   ;;  %s596_s8 = inlined_call_operand.vmem [shape: bf16[32,32], index: 8, kind: output, shape index: {1}]  }
   0x1   :  { %v430_v0 = vld [vmem:[%s590_s2] sm:$0xff]   ;;  %v431_v1 = vld [vmem:[%s590_s2 + $0x8] sm:$0xff]  }
   0x2   :  { %399 = vmatprep.subr.bf16.mxu0 %v430_v0  ;;  %v432_v2 = vld [vmem:[%s589_s1] sm:$0xff]   ;;  %v435_v4 = vld [vmem:[%s591_s3 + $0x8] sm:$0xff]  }
   0x3   :  { %400 = vmatpush3.bf16.msra.mxu0 %v430_v0  ;;  %403 = vmatprep.mubr.msk.bf16.mxu0 %vm67_vm0, %v432_v2  ;;  %v434_v3 = vld [vmem:[%s591_s3] sm:$0xff]   ;;  %v433_v5 = vld [vmem:[%s589_s1 + $0x8] sm:$0xff]  }
   0x4   :  { %401 = vmatprep.subr.bf16.mxu0 %v431_v1  ;;  %407 = vmatprep.subr.bf16.mxu1 %v434_v3 }
   0x5   :  { %408 = vmatpush3.bf16.msra.mxu1 %v434_v3 }
   0x6   :  { %409 = vmatprep.subr.bf16.mxu1 %v435_v4 }
   0x7   :  { %402 = vmatpush3.bf16.msra.mxu0 %v431_v1 }
   0x8   :  { %14 = vsyncpa [#allocation3], 0  ;;  %v436_v6 = vld [vmem:[%s591_s3 + $0x10] sm:$0xff]   ;;  %v437_v7 = vld [vmem:[%s591_s3 + $0x18] sm:$0xff]   ;;  %vm172_vm1 = vcmask 523264   ;;  %vm330_vm2 = vcmask 257024  }
   0x9   :  { %410 = vmatpush3.bf16.msra.mxu1 %v435_v4  ;;  %v357_v8 = vld [vmem:[%s588_s0 + $0xb0] sm:$0xff]  ;;  %v355_v9 = vld [vmem:[%s588_s0 + $0xa0] sm:$0xff]  ;;  %v358_v11 = vld [vmem:[%s588_s0 + $0xb8] sm:$0xff]  ;;  %s464_s16 = smov [#allocation2]  }
   0xa   :  { %404 = vmatmul.mubr.msk.bf16.vlgmr.msra.gmra.mrb[0].mxu0 %vm67_vm0, %v433_v5  ;;  %411 = vmatprep.subr.bf16.mxu1 %v436_v6  ;;  %v356_v14 = vld [vmem:[%s588_s0 + $0xa8] sm:$0xff]  ;;  %v438_v26 = vld [vmem:[%s593_s5] sm:$0xff]   ;;  %s340_s17 = sshll.u32 %s464_s16, 4  ;;  %s341_s17 = int_to_ptr.vmem [resolvable:$true] %s340_s17 }
   0xb   :  { %419 = vmatprep.subr.bf16.mxu0 %v438_v26  ;;  %v439_v27 = vld [vmem:[%s593_s5 + $0x8] sm:$0xff]   ;;  %v365_v28 = vld [vmem:[%s592_s4] ss:$0 sm:$0xff]  ;;  %p445_p1 = scmp.lt.s32.totalorder %s341_s17, %s341_s17 }
   0xc   :  { %420 = vmatpush3.bf16.msra.mxu0 %v438_v26  ;;  %v372_v47 = vld [vmem:[%s594_s6] ss:$0 sm:$0xff] }
   0xd   :  { %412 = vmatpush3.bf16.msra.mxu1 %v436_v6  ;;  %421 = vmatprep.subr.bf16.mxu0 %v439_v27 }
   0xe   :  { %413 = vmatprep.subr.bf16.mxu1 %v437_v7 }
  0x10   :  { %422 = vmatpush3.bf16.msra.mxu0 %v439_v27 }
  0x11   :  { %414 = vmatpush3.bf16.msra.mxu1 %v437_v7 }
  0xdd   :  { %v405_v10 = vpop.f32.mrb[0].mxu0 }
  0xde   :  { %v125_v12 = vadd.f32 %v405_v10, %v357_v8  ;;  %v108_v13 = vpop.f32.mrb[1].mxu0 }
  0xdf   :  { %v123_v15 = vadd.f32 %v355_v9, %v108_v13  ;;  %v406_v16 = vpop.f32.mrb[2].mxu0 }
  0xe0   :  { %v126_v17 = vadd.f32 %v406_v16, %v358_v11  ;;  %v111_v18 = vpop.f32.mrb[3].mxu0  ;;  %v129_v20 = vmax.f32 %v125_v12, 0.0 }
  0xe1   :  { %v124_v19 = vadd.f32 %v356_v14, %v111_v18  ;;  %v127_v22 = vmax.f32 %v123_v15, 0.0 }
  0xe2   :  { %v130_v21 = vmax.f32 %v126_v17, 0.0 }
  0xe3   :  { %v128_v23 = vmax.f32 %v124_v19, 0.0 }
  0xe4   :  { %v132_v24 = vpack.c.bf16 %v130_v21, %v129_v20 }
  0xe5   :  { %v131_v25 = vpack.c.bf16 %v128_v23, %v127_v22 }
  0xe7   :  { %415 = vmatprep.mubr.msk.bf16.mxu1 %vm172_vm1, %v131_v25 }
  0xe8   :  { %416 = vmatmul.mubr.msk.bf16.vlgmr.msra.gmra.mrb[0].mxu1 %vm172_vm1, %v132_v24 }
 0x1bb   :  { %v417_v29 = vpop.f32.mrb[0].mxu1 }
 0x1bc   :  { %v222_v30 = vadd.f32 %v417_v29, %v365_v28  ;;  %v213_v31 = vpop.f32.mrb[1].mxu1 }
 0x1bd   :  { %v214_v32 = vadd.f32 %v365_v28, %v213_v31  ;;  %v418_v33 = vpop.f32.mrb[2].mxu1 }
 0x1be   :  { %v230_v34 = vmax.f32 %v222_v30, 0.0  ;;  %v225_v35 = vadd.f32 %v418_v33, %v365_v28  ;;  %v216_v36 = vpop.f32.mrb[3].mxu1 }
 0x1bf   :  { %v228_v37 = vmax.f32 %v214_v32, 0.0  ;;  %v217_v38 = vadd.f32 %v365_v28, %v216_v36 }
 0x1c0   :  { %v383_v39 = vpack.c.bf16 %v230_v34, %v230_v34  ;;  %v231_v40 = vmax.f32 %v225_v35, 0.0 }
 0x1c1   :  { %v381_v41 = vpack.c.bf16 %v228_v37, %v228_v37  ;;  %v229_v42 = vmax.f32 %v217_v38, 0.0 }
 0x1c2   :  { %333 = vst.msk [vmem:[%s596_s8 + $0x8] sm:$0xf] %vm330_vm2, %v383_v39  ;;  %v233_v43 = vpack.c.bf16 %v231_v40, %v230_v34  ;;  %v384_v44 = vpack.c.bf16 %v231_v40, %v231_v40 }
 0x1c3   :  { %331 = vst.msk [vmem:[%s596_s8] sm:$0xf] %vm330_vm2, %v381_v41  ;;  %v232_v45 = vpack.c.bf16 %v229_v42, %v228_v37  ;;  %v382_v46 = vpack.c.bf16 %v229_v42, %v229_v42 }
 0x1c4   :  { %334 = vst.msk [vmem:[%s596_s8 + $0xc] sm:$0xf] %vm330_vm2, %v384_v44 }
 0x1c5   :  { %332 = vst.msk [vmem:[%s596_s8 + $0x4] sm:$0xf] %vm330_vm2, %v382_v46  ;;  %423 = vmatprep.mubr.msk.bf16.mxu0 %vm67_vm0, %v232_v45  ;;  %s440_s8 = scalar_lea.vmem %s341_s17, 512 }
 0x1c6   :  { %424 = vmatmul.mubr.msk.bf16.vlgmr.msra.gmra.mrb[4].mxu0 %vm67_vm0, %v233_v43  ;;  %p441_p0 = scmp.ne.s32.totalorder %s341_s17, %s440_s8  ;;  %p446_p2 = scmp.lt.s32.totalorder %s440_s8, %s440_s8 }
 0x1c8   :  { %p447_p3 = por %p446_p2, %p445_p1 }
 0x1ca   :  { %p448_p4 = pnand %p447_p3, %p441_p0 }
 0x299   :  { %v425_v48 = vpop.f32.mrb[4].mxu0 }
 0x29a   :  { %v306_v49 = vadd.f32 %v425_v48, %v372_v47  ;;  %v297_v50 = vpop.f32.mrb[5].mxu0 }
 0x29b   :  { %v298_v51 = vadd.f32 %v372_v47, %v297_v50  ;;  %v426_v52 = vpop.f32.mrb[6].mxu0 }
 0x29c   :  { %314 = vst [vmem:[#allocation2 + $0x10] sm:$0xff] %v306_v49  ;;  %v309_v53 = vadd.f32 %v426_v52, %v372_v47  ;;  %v300_v54 = vpop.f32.mrb[7].mxu0 }
 0x29d   :  { %312 = vst [vmem:[#allocation2] sm:$0xff] %v298_v51  ;;  %v301_v55 = vadd.f32 %v372_v47, %v300_v54 }
 0x29e   :  { %315 = vst [vmem:[#allocation2 + $0x18] sm:$0xff] %v309_v53 }
 0x29f   :  { %313 = vst [vmem:[#allocation2 + $0x8] sm:$0xff] %v301_v55 }
 0x2a0   :  { %451 = shalt.err (!%p448_p4)
}
 0x2a1   :  { %s452_s19 = scalar_lea.hbm %s595_s7, 512 }
 0x2a2   :  { %p453_p5 = scmp.ne.s32.totalorder %s595_s7, %s452_s19  ;;  %p456_p6 = scmp.lt.u32.totalorder %s452_s19, %s595_s7 }
 0x2a4   :  { %p458_p7 = pnand %p456_p6, %p453_p5 }
 0x2a6   :  { %461 = shalt.err (!%p458_p7)
}
 0x2a7   :  { %s465_s23 = smov 128   ;;  %s466_s24 = smov 8  }
 0x2a8   :  { %346 = dma.vmem_to_hbm [thread:$0]  %s341_s17, 512, %s595_s7, [#allocation3], %s465_s23, %s465_s23, %s466_s24  }
 0x2a9   :  { %462 = dma.done.wait [#allocation3], 512  }
 0x2aa   :  { %463 = vsyncadd [#allocation3], 4294966784 }
 0x2ab   :  { %354 = vsyncpa [#allocation3], 1 }

</bundles_post_ra>
